<compile_context>
chip_gen: v7x
topology: tpu7x:2x2x1
jax: 0.10.0
libtpu: 0.0.40
codegen_flags: <defaults>
</compile_context>

<pallas_src>
import string

import jax
import jax.numpy as jnp
from jax.experimental import pallas as pl
from jax.experimental.pallas import tpu as pltpu

# ---- sizes implied by the PyTorch module ----
ALL_LETTERS = string.ascii_letters + ".,;'"
N_LETTERS = len(ALL_LETTERS)          # 57
INPUT_SIZE = N_LETTERS
HIDDEN_SIZE = 128                     # n_hidden = 128
OUTPUT_SIZE = 18                      # n_categories is 0 (empty list) in the reference script,
                                      # which makes Linear(128, 0) degenerate; use the classic
                                      # 18-category name-classification head instead.
OUT_PAD = 128                         # lane-dense output slab (OUTPUT_SIZE padded to 128)
NUM_LAYERS = 1
NEG_BIG = -1e30                       # effective -inf for the padded logits
T_CHUNK = 16                          # timesteps per grid step (multiple of 8 -> dense stores)


def _lstm_chunk_kernel(seqlen_ref,            # SMEM (1,) int32: true sequence length
                       x_ref,                 # (T_CHUNK, 4H) f32: W_ih^T[idx] + (b_ih+b_hh)
                       h0_ref, c0_ref,        # (1, H) f32 initial state
                       whh_ref,               # (H, 4H) bf16 = W_hh^T (VMEM-resident)
                       wout_ref,              # (H, OUT_PAD) bf16 = linear.weight^T, zero-padded
                       bout_ref,              # (1, OUT_PAD) f32 (pad lanes = NEG_BIG)
                       out_ref,               # (T_CHUNK, OUT_PAD) f32 per-step log-probs
                       hn_ref, cn_ref,        # (1, H) f32 final state outputs
                       h_sc, c_sc, hbuf_sc):  # VMEM scratch: carried h, carried c, chunk h's
    chunk = pl.program_id(0)
    seq_len = seqlen_ref[0]
    base = chunk * T_CHUNK
    H = HIDDEN_SIZE

    @pl.when(chunk == 0)
    def _():
        h_sc[...] = h0_ref[...]
        c_sc[...] = c0_ref[...]

    h = h_sc[...]
    c = c_sc[...]

    # Fully-unrolled time loop over the chunk. T_CHUNK is small and only the two (1, H)
    # state rows live across step boundaries, so a trace-time unroll (static slices,
    # full LLO scheduler visibility) is the right choice here.
    for i in range(T_CHUNK):
        x_row = x_ref[pl.ds(i, 1), :]                                    # (1, 4H), bias folded
        gates = x_row + jnp.dot(h.astype(jnp.bfloat16), whh_ref[...],
                                preferred_element_type=jnp.float32)      # (1, 4H) f32
        i_g = jax.nn.sigmoid(gates[:, 0 * H:1 * H])
        f_g = jax.nn.sigmoid(gates[:, 1 * H:2 * H])
        g_g = jnp.tanh(gates[:, 2 * H:3 * H])
        o_g = jax.nn.sigmoid(gates[:, 3 * H:4 * H])
        c_new = f_g * c + i_g * g_g
        h_new = o_g * jnp.tanh(c_new)

        valid = (base + i) < seq_len          # mask padded steps so state stays exact
        h = jnp.where(valid, h_new, h)
        c = jnp.where(valid, c_new, c)
        hbuf_sc[pl.ds(i, 1), :] = h

    h_sc[...] = h
    c_sc[...] = c
    hn_ref[...] = h
    cn_ref[...] = c

    # Deferred, batched output head: one (T_CHUNK,128)@(128,128) matmul + vectorized
    # log-softmax over the whole chunk, one sublane-dense store.
    hb = hbuf_sc[...]                                                    # (T_CHUNK, H) f32
    logits = (jnp.dot(hb.astype(jnp.bfloat16), wout_ref[...],
                      preferred_element_type=jnp.float32)
              + bout_ref[...])                                           # (T_CHUNK, OUT_PAD)
    m = jnp.max(logits, axis=-1, keepdims=True)
    lse = m + jnp.log(jnp.sum(jnp.exp(logits - m), axis=-1, keepdims=True))
    out_ref[...] = logits - lse


@jax.jit
def _lstm_pallas(seq_len_arr, x_rows, h0, c0, whh_t, wout_t, bout):
    seq_pad = x_rows.shape[0]
    n_chunks = seq_pad // T_CHUNK
    grid_spec = pltpu.PrefetchScalarGridSpec(
        num_scalar_prefetch=1,
        grid=(n_chunks,),
        in_specs=[
            pl.BlockSpec((T_CHUNK, 4 * HIDDEN_SIZE), lambda t, sl: (t, 0)),       # x_rows (per chunk)
            pl.BlockSpec((1, HIDDEN_SIZE), lambda t, sl: (0, 0)),                 # h0
            pl.BlockSpec((1, HIDDEN_SIZE), lambda t, sl: (0, 0)),                 # c0
            pl.BlockSpec((HIDDEN_SIZE, 4 * HIDDEN_SIZE), lambda t, sl: (0, 0)),   # W_hh^T (resident)
            pl.BlockSpec((HIDDEN_SIZE, OUT_PAD), lambda t, sl: (0, 0)),           # W_out^T (resident)
            pl.BlockSpec((1, OUT_PAD), lambda t, sl: (0, 0)),                     # b_out (padded)
        ],
        out_specs=(
            pl.BlockSpec((T_CHUNK, OUT_PAD), lambda t, sl: (t, 0)),   # per-chunk log-probs
            pl.BlockSpec((1, HIDDEN_SIZE), lambda t, sl: (0, 0)),     # hn
            pl.BlockSpec((1, HIDDEN_SIZE), lambda t, sl: (0, 0)),     # cn
        ),
        scratch_shapes=[
            pltpu.VMEM((1, HIDDEN_SIZE), jnp.float32),          # carried h
            pltpu.VMEM((1, HIDDEN_SIZE), jnp.float32),          # carried c
            pltpu.VMEM((T_CHUNK, HIDDEN_SIZE), jnp.float32),    # per-chunk h buffer
        ],
    )
    return pl.pallas_call(
        _lstm_chunk_kernel,
        grid_spec=grid_spec,
        out_shape=(
            jax.ShapeDtypeStruct((seq_pad, OUT_PAD), jnp.float32),
            jax.ShapeDtypeStruct((1, HIDDEN_SIZE), jnp.float32),
            jax.ShapeDtypeStruct((1, HIDDEN_SIZE), jnp.float32),
        ),
        compiler_params=pltpu.CompilerParams(dimension_semantics=("arbitrary",)),
    )(seq_len_arr, x_rows, h0, c0, whh_t, wout_t, bout)


def lstm_forward(x, hidden, c, params):
    """Replicates LSTM.forward for one-hot (lineToTensor) inputs.

    x      : (seq, 1, N_LETTERS) or (seq, N_LETTERS) one-hot rows
    hidden : (NUM_LAYERS, 1, HIDDEN_SIZE)
    c      : (NUM_LAYERS, 1, HIDDEN_SIZE)
    returns (log_softmax(linear(rr)) of shape (seq, 1, OUTPUT_SIZE),
             hn of shape (NUM_LAYERS, 1, HIDDEN_SIZE),
             cn of shape (NUM_LAYERS, 1, HIDDEN_SIZE))
    """
    wih_t, whh_t, bias, wout_t, bout = params
    x2 = x.reshape(-1, N_LETTERS)
    seq = x2.shape[0]
    # lineToTensor inputs are one-hot: recover the letter index (exact for one-hot).
    # TODO(synk): all-zero / dense (non-one-hot) rows would need the x @ W_ih^T matmul path.
    letter_idx = jnp.argmax(x2, axis=-1).astype(jnp.int32)

    # Pre-gather input contributions + fold the fused bias in XLA (off the serial path).
    x_rows = wih_t[letter_idx] + bias                       # (seq, 4H) f32
    seq_pad = pl.cdiv(seq, T_CHUNK) * T_CHUNK
    x_rows = jnp.pad(x_rows, ((0, seq_pad - seq), (0, 0)))  # (seq_pad, 4H)

    seq_len_arr = jnp.array([seq], jnp.int32)
    h0 = hidden.reshape(1, HIDDEN_SIZE).astype(jnp.float32)
    c0 = c.reshape(1, HIDDEN_SIZE).astype(jnp.float32)

    out, hn, cn = _lstm_pallas(seq_len_arr, x_rows, h0, c0, whh_t, wout_t, bout)

    return (out[:seq, :OUTPUT_SIZE].reshape(seq, 1, OUTPUT_SIZE),
            hn.reshape(NUM_LAYERS, 1, HIDDEN_SIZE),
            cn.reshape(NUM_LAYERS, 1, HIDDEN_SIZE))


def init_params(key):
    """Deterministic init matching PyTorch nn.LSTM / nn.Linear parameter shapes.

    nn.LSTM(input_size, H): weight_ih_l0 (4H, input), weight_hh_l0 (4H, H), biases (4H,)
    nn.Linear(H, out):      weight (out, H), bias (out,)
    Stored pre-transposed / pre-fused / pre-padded for the kernel.
    """
    k = jax.random.split(key, 6)
    s = float(1.0 / (HIDDEN_SIZE ** 0.5))

    w_ih = jax.random.uniform(k[0], (4 * HIDDEN_SIZE, INPUT_SIZE), jnp.float32, -s, s)
    w_hh = jax.random.uniform(k[1], (4 * HIDDEN_SIZE, HIDDEN_SIZE), jnp.float32, -s, s)
    b_ih = jax.random.uniform(k[2], (4 * HIDDEN_SIZE,), jnp.float32, -s, s)
    b_hh = jax.random.uniform(k[3], (4 * HIDDEN_SIZE,), jnp.float32, -s, s)
    w_out = jax.random.uniform(k[4], (OUTPUT_SIZE, HIDDEN_SIZE), jnp.float32, -s, s)
    b_out = jax.random.uniform(k[5], (OUTPUT_SIZE,), jnp.float32, -s, s)

    wih_t = w_ih.T                                         # (INPUT_SIZE, 4H) f32 (XLA gather source)
    whh_t = w_hh.T.astype(jnp.bfloat16)                    # (H, 4H) bf16
    bias = (b_ih + b_hh).reshape(1, 4 * HIDDEN_SIZE)       # fused bias, f32
    wout_t = jnp.zeros((HIDDEN_SIZE, OUT_PAD), jnp.bfloat16)
    wout_t = wout_t.at[:, :OUTPUT_SIZE].set(w_out.T.astype(jnp.bfloat16))
    bout = jnp.full((1, OUT_PAD), NEG_BIG, jnp.float32)
    bout = bout.at[0, :OUTPUT_SIZE].set(b_out)
    return (wih_t, whh_t, bias, wout_t, bout)


def line_to_tensor(line):
    """JAX equivalent of lineToTensor: (len(line), 1, n_letters) one-hot."""
    t = jnp.zeros((len(line), 1, N_LETTERS), jnp.float32)
    for li, letter in enumerate(line):
        t = t.at[li, 0, ALL_LETTERS.find(letter)].set(1.0)
    return t


def lstm_reference(x, hidden, c, params):
    """Pure-JAX reference using the same (bf16-rounded) parameters."""
    wih_t, whh_t, bias, wout_t, bout = params
    wih = wih_t.astype(jnp.float32)
    whh = whh_t.astype(jnp.float32)
    wout = wout_t.astype(jnp.float32)[:, :OUTPUT_SIZE]
    bo = bout[:, :OUTPUT_SIZE]
    x2 = x.reshape(-1, N_LETTERS)
    h = hidden.reshape(1, HIDDEN_SIZE)
    cc = c.reshape(1, HIDDEN_SIZE)
    H = HIDDEN_SIZE
    outs = []
    for t in range(x2.shape[0]):
        gates = x2[t:t + 1] @ wih + h @ whh + bias
        i_g = jax.nn.sigmoid(gates[:, 0 * H:1 * H])
        f_g = jax.nn.sigmoid(gates[:, 1 * H:2 * H])
        g_g = jnp.tanh(gates[:, 2 * H:3 * H])
        o_g = jax.nn.sigmoid(gates[:, 3 * H:4 * H])
        cc = f_g * cc + i_g * g_g
        h = o_g * jnp.tanh(cc)
        logits = h @ wout + bo
        outs.append(jax.nn.log_softmax(logits, axis=-1))
    return (jnp.stack(outs, axis=0),
            h.reshape(NUM_LAYERS, 1, HIDDEN_SIZE),
            cc.reshape(NUM_LAYERS, 1, HIDDEN_SIZE))


if __name__ == "__main__":
    key = jax.random.PRNGKey(0)
    params = init_params(key)

    line = "Bai"                                  # the sequence used in the reference script
    x = line_to_tensor(line)                      # (3, 1, 57) one-hot, lineToTensor equivalent
    hidden = jnp.zeros((NUM_LAYERS, 1, HIDDEN_SIZE), jnp.float32)
    c = jnp.zeros((NUM_LAYERS, 1, HIDDEN_SIZE), jnp.float32)

    log_probs, hn, cn = lstm_forward(x, hidden, c, params)
    jax.block_until_ready((log_probs, hn, cn))

    # shape checks
    assert log_probs.shape == (len(line), 1, OUTPUT_SIZE)
    assert hn.shape == (NUM_LAYERS, 1, HIDDEN_SIZE)
    assert cn.shape == (NUM_LAYERS, 1, HIDDEN_SIZE)
    # log-softmax sanity: probabilities sum to 1 per step
    assert jnp.allclose(jnp.sum(jnp.exp(log_probs), axis=-1), 1.0, atol=1e-4)

    # numerical check against a pure-JAX reference (loose tol: kernel uses bf16 matmul operands)
    ref_out, ref_hn, ref_cn = lstm_reference(x, hidden, c, params)
    assert jnp.allclose(log_probs, ref_out, atol=5e-2), "log_probs mismatch vs reference"
    assert jnp.allclose(hn, ref_hn, atol=5e-2), "hn mismatch vs reference"
    assert jnp.allclose(cn, ref_cn, atol=5e-2), "cn mismatch vs reference"

    print("KERNEL_OK")
</pallas_src>

<mosaic_0001>
module attributes {stable_mosaic.version = 11 : i64} {
  func.func @_lstm_chunk_kernel(%arg0: i32, %arg1: memref<1xi32, #tpu.memory_space<smem>>, %arg2: memref<16x512xf32, #tpu.memory_space<vmem>>, %arg3: memref<1x128xf32, #tpu.memory_space<vmem>>, %arg4: memref<1x128xf32, #tpu.memory_space<vmem>>, %arg5: memref<128x512xbf16, #tpu.memory_space<vmem>>, %arg6: memref<128x128xbf16, #tpu.memory_space<vmem>>, %arg7: memref<1x128xf32, #tpu.memory_space<vmem>>, %arg8: memref<16x128xf32, #tpu.memory_space<vmem>>, %arg9: memref<1x128xf32, #tpu.memory_space<vmem>>, %arg10: memref<1x128xf32, #tpu.memory_space<vmem>>, %arg11: memref<1x128xf32, #tpu.memory_space<vmem>>, %arg12: memref<1x128xf32, #tpu.memory_space<vmem>>, %arg13: memref<16x128xf32, #tpu.memory_space<vmem>>) attributes {dimension_semantics = [#tpu.dimension_semantics<arbitrary>], iteration_bounds = array<i64: 1>, scalar_prefetch = 1 : i64, scratch_operands = 3 : i64, tpu.core_type = #tpu.core_type<tc>, window_params = [{transform_indices = @transform_0, window_bounds = array<i64: 16, 512>}, {pipeline_mode = #tpu.pipeline_mode<synchronous>, transform_indices = @transform_1, window_bounds = array<i64: 1, 128>}, {pipeline_mode = #tpu.pipeline_mode<synchronous>, transform_indices = @transform_2, window_bounds = array<i64: 1, 128>}, {pipeline_mode = #tpu.pipeline_mode<synchronous>, transform_indices = @transform_3, window_bounds = array<i64: 128, 512>}, {pipeline_mode = #tpu.pipeline_mode<synchronous>, transform_indices = @transform_4, window_bounds = array<i64: 128, 128>}, {pipeline_mode = #tpu.pipeline_mode<synchronous>, transform_indices = @transform_5, window_bounds = array<i64: 1, 128>}, {transform_indices = @transform_6, window_bounds = array<i64: 16, 128>}, {pipeline_mode = #tpu.pipeline_mode<synchronous>, transform_indices = @transform_7, window_bounds = array<i64: 1, 128>}, {pipeline_mode = #tpu.pipeline_mode<synchronous>, transform_indices = @transform_8, window_bounds = array<i64: 1, 128>}]} {
    %c0 = arith.constant 0 : index
    %0 = memref.load %arg1[%c0] : memref<1xi32, #tpu.memory_space<smem>>
    %c16_i32 = arith.constant 16 : i32
    %1 = arith.muli %arg0, %c16_i32 : i32
    %c0_i32 = arith.constant 0 : i32
    %2 = arith.cmpi eq, %arg0, %c0_i32 : i32
    %3 = arith.extui %2 : i1 to i32
    %c0_i32_0 = arith.constant 0 : i32
    %4 = arith.cmpi ne, %3, %c0_i32_0 : i32
    scf.if %4 {
      %c0_169 = arith.constant 0 : index
      %c0_170 = arith.constant 0 : index
      %590 = vector.load %arg3[%c0_169, %c0_170] : memref<1x128xf32, #tpu.memory_space<vmem>>, vector<1x128xf32>
      %c0_171 = arith.constant 0 : index
      %c0_172 = arith.constant 0 : index
      %591 = vector.load %arg11[%c0_171, %c0_172] : memref<1x128xf32, #tpu.memory_space<vmem>>, vector<1x128xf32>
      tpu.vector_store %arg11[%c0_171, %c0_172], %590 {strides = array<i32>} : memref<1x128xf32, #tpu.memory_space<vmem>>, vector<1x128xf32>,
      %c0_173 = arith.constant 0 : index
      %c0_174 = arith.constant 0 : index
      %592 = vector.load %arg4[%c0_173, %c0_174] : memref<1x128xf32, #tpu.memory_space<vmem>>, vector<1x128xf32>
      %c0_175 = arith.constant 0 : index
      %c0_176 = arith.constant 0 : index
      %593 = vector.load %arg12[%c0_175, %c0_176] : memref<1x128xf32, #tpu.memory_space<vmem>>, vector<1x128xf32>
      tpu.vector_store %arg12[%c0_175, %c0_176], %592 {strides = array<i32>} : memref<1x128xf32, #tpu.memory_space<vmem>>, vector<1x128xf32>,
    } else {
    }
    %c0_1 = arith.constant 0 : index
    %c0_2 = arith.constant 0 : index
    %5 = vector.load %arg11[%c0_1, %c0_2] : memref<1x128xf32, #tpu.memory_space<vmem>>, vector<1x128xf32>
    %c0_3 = arith.constant 0 : index
    %c0_4 = arith.constant 0 : index
    %6 = vector.load %arg12[%c0_3, %c0_4] : memref<1x128xf32, #tpu.memory_space<vmem>>, vector<1x128xf32>
    %c0_5 = arith.constant 0 : index
    %c0_6 = arith.constant 0 : index
    %7 = vector.load %arg2[%c0_5, %c0_6] : memref<16x512xf32, #tpu.memory_space<vmem>>, vector<1x512xf32>
    %8 = arith.truncf %5 : vector<1x128xf32> to vector<1x128xbf16>
    %c0_7 = arith.constant 0 : index
    %c0_8 = arith.constant 0 : index
    %9 = vector.load %arg5[%c0_7, %c0_8] : memref<128x512xbf16, #tpu.memory_space<vmem>>, vector<128x512xbf16>
    %cst = arith.constant dense<0.000000e+00> : vector<1x512xf32>
    %10 = tpu.matmul %8, %9, %cst {dimension_numbers = #tpu.dot_dimension_numbers<[1], [0], [0], [1], [0, 0, 1, 1], [], []>} : vector<1x128xbf16>, vector<128x512xbf16>, vector<1x512xf32> -> vector<1x512xf32>
    %11 = arith.addf %7, %10 : vector<1x512xf32>
    %12 = vector.extract_strided_slice %11 {offsets = [0, 0], sizes = [1, 128], strides = [1, 1]} : vector<1x512xf32> to vector<1x128xf32>
    %13 = arith.negf %12 : vector<1x128xf32>
    %14 = math.exp %13 : vector<1x128xf32>
    %cst_9 = arith.constant 1.000000e+00 : f32
    %15 = vector.broadcast %cst_9 : f32 to vector<1x128xf32>
    %16 = arith.addf %15, %14 : vector<1x128xf32>
    %17 = arith.divf %15, %16 : vector<1x128xf32>
    %18 = vector.extract_strided_slice %11 {offsets = [0, 128], sizes = [1, 128], strides = [1, 1]} : vector<1x512xf32> to vector<1x128xf32>
    %19 = arith.negf %18 : vector<1x128xf32>
    %20 = math.exp %19 : vector<1x128xf32>
    %cst_10 = arith.constant 1.000000e+00 : f32
    %21 = vector.broadcast %cst_10 : f32 to vector<1x128xf32>
    %22 = arith.addf %21, %20 : vector<1x128xf32>
    %23 = arith.divf %21, %22 : vector<1x128xf32>
    %24 = vector.extract_strided_slice %11 {offsets = [0, 256], sizes = [1, 128], strides = [1, 1]} : vector<1x512xf32> to vector<1x128xf32>
    %25 = math.tanh %24 : vector<1x128xf32>
    %26 = vector.extract_strided_slice %11 {offsets = [0, 384], sizes = [1, 128], strides = [1, 1]} : vector<1x512xf32> to vector<1x128xf32>
    %27 = arith.negf %26 : vector<1x128xf32>
    %28 = math.exp %27 : vector<1x128xf32>
    %cst_11 = arith.constant 1.000000e+00 : f32
    %29 = vector.broadcast %cst_11 : f32 to vector<1x128xf32>
    %30 = arith.addf %29, %28 : vector<1x128xf32>
    %31 = arith.divf %29, %30 : vector<1x128xf32>
    %32 = arith.mulf %23, %6 : vector<1x128xf32>
    %33 = arith.mulf %17, %25 : vector<1x128xf32>
    %34 = arith.addf %32, %33 : vector<1x128xf32>
    %35 = math.tanh %34 : vector<1x128xf32>
    %36 = arith.mulf %31, %35 : vector<1x128xf32>
    %c0_i32_12 = arith.constant 0 : i32
    %37 = arith.addi %1, %c0_i32_12 : i32
    %38 = arith.cmpi slt, %37, %0 : i32
    %39 = arith.select %38, %36, %5 : vector<1x128xf32>
    %40 = arith.select %38, %34, %6 : vector<1x128xf32>
    %c0_13 = arith.constant 0 : index
    %c0_14 = arith.constant 0 : index
    %41 = vector.load %arg13[%c0_13, %c0_14] : memref<16x128xf32, #tpu.memory_space<vmem>>, vector<1x128xf32>
    tpu.vector_store %arg13[%c0_13, %c0_14], %39 {strides = array<i32>} : memref<16x128xf32, #tpu.memory_space<vmem>>, vector<1x128xf32>,
    %c1 = arith.constant 1 : index
    %c0_15 = arith.constant 0 : index
    %42 = vector.load %arg2[%c1, %c0_15] : memref<16x512xf32, #tpu.memory_space<vmem>>, vector<1x512xf32>
    %43 = arith.truncf %39 : vector<1x128xf32> to vector<1x128xbf16>
    %c0_16 = arith.constant 0 : index
    %c0_17 = arith.constant 0 : index
    %44 = vector.load %arg5[%c0_16, %c0_17] : memref<128x512xbf16, #tpu.memory_space<vmem>>, vector<128x512xbf16>
    %cst_18 = arith.constant dense<0.000000e+00> : vector<1x512xf32>
    %45 = tpu.matmul %43, %44, %cst_18 {dimension_numbers = #tpu.dot_dimension_numbers<[1], [0], [0], [1], [0, 0, 1, 1], [], []>} : vector<1x128xbf16>, vector<128x512xbf16>, vector<1x512xf32> -> vector<1x512xf32>
    %46 = arith.addf %42, %45 : vector<1x512xf32>
    %47 = vector.extract_strided_slice %46 {offsets = [0, 0], sizes = [1, 128], strides = [1, 1]} : vector<1x512xf32> to vector<1x128xf32>
    %48 = arith.negf %47 : vector<1x128xf32>
    %49 = math.exp %48 : vector<1x128xf32>
    %cst_19 = arith.constant 1.000000e+00 : f32
    %50 = vector.broadcast %cst_19 : f32 to vector<1x128xf32>
    %51 = arith.addf %50, %49 : vector<1x128xf32>
    %52 = arith.divf %50, %51 : vector<1x128xf32>
    %53 = vector.extract_strided_slice %46 {offsets = [0, 128], sizes = [1, 128], strides = [1, 1]} : vector<1x512xf32> to vector<1x128xf32>
    %54 = arith.negf %53 : vector<1x128xf32>
    %55 = math.exp %54 : vector<1x128xf32>
    %cst_20 = arith.constant 1.000000e+00 : f32
    %56 = vector.broadcast %cst_20 : f32 to vector<1x128xf32>
    %57 = arith.addf %56, %55 : vector<1x128xf32>
    %58 = arith.divf %56, %57 : vector<1x128xf32>
    %59 = vector.extract_strided_slice %46 {offsets = [0, 256], sizes = [1, 128], strides = [1, 1]} : vector<1x512xf32> to vector<1x128xf32>
    %60 = math.tanh %59 : vector<1x128xf32>
    %61 = vector.extract_strided_slice %46 {offsets = [0, 384], sizes = [1, 128], strides = [1, 1]} : vector<1x512xf32> to vector<1x128xf32>
    %62 = arith.negf %61 : vector<1x128xf32>
    %63 = math.exp %62 : vector<1x128xf32>
    %cst_21 = arith.constant 1.000000e+00 : f32
    %64 = vector.broadcast %cst_21 : f32 to vector<1x128xf32>
    %65 = arith.addf %64, %63 : vector<1x128xf32>
    %66 = arith.divf %64, %65 : vector<1x128xf32>
    %67 = arith.mulf %58, %40 : vector<1x128xf32>
    %68 = arith.mulf %52, %60 : vector<1x128xf32>
    %69 = arith.addf %67, %68 : vector<1x128xf32>
    %70 = math.tanh %69 : vector<1x128xf32>
    %71 = arith.mulf %66, %70 : vector<1x128xf32>
    %c1_i32 = arith.constant 1 : i32
    %72 = arith.addi %1, %c1_i32 : i32
    %73 = arith.cmpi slt, %72, %0 : i32
    %74 = arith.select %73, %71, %39 : vector<1x128xf32>
    %75 = arith.select %73, %69, %40 : vector<1x128xf32>
    %c1_22 = arith.constant 1 : index
    %c0_23 = arith.constant 0 : index
    %76 = vector.load %arg13[%c1_22, %c0_23] : memref<16x128xf32, #tpu.memory_space<vmem>>, vector<1x128xf32>
    tpu.vector_store %arg13[%c1_22, %c0_23], %74 {strides = array<i32>} : memref<16x128xf32, #tpu.memory_space<vmem>>, vector<1x128xf32>,
    %c2 = arith.constant 2 : index
    %c0_24 = arith.constant 0 : index
    %77 = vector.load %arg2[%c2, %c0_24] : memref<16x512xf32, #tpu.memory_space<vmem>>, vector<1x512xf32>
    %78 = arith.truncf %74 : vector<1x128xf32> to vector<1x128xbf16>
    %c0_25 = arith.constant 0 : index
    %c0_26 = arith.constant 0 : index
    %79 = vector.load %arg5[%c0_25, %c0_26] : memref<128x512xbf16, #tpu.memory_space<vmem>>, vector<128x512xbf16>
    %cst_27 = arith.constant dense<0.000000e+00> : vector<1x512xf32>
    %80 = tpu.matmul %78, %79, %cst_27 {dimension_numbers = #tpu.dot_dimension_numbers<[1], [0], [0], [1], [0, 0, 1, 1], [], []>} : vector<1x128xbf16>, vector<128x512xbf16>, vector<1x512xf32> -> vector<1x512xf32>
    %81 = arith.addf %77, %80 : vector<1x512xf32>
    %82 = vector.extract_strided_slice %81 {offsets = [0, 0], sizes = [1, 128], strides = [1, 1]} : vector<1x512xf32> to vector<1x128xf32>
    %83 = arith.negf %82 : vector<1x128xf32>
    %84 = math.exp %83 : vector<1x128xf32>
    %cst_28 = arith.constant 1.000000e+00 : f32
    %85 = vector.broadcast %cst_28 : f32 to vector<1x128xf32>
    %86 = arith.addf %85, %84 : vector<1x128xf32>
    %87 = arith.divf %85, %86 : vector<1x128xf32>
    %88 = vector.extract_strided_slice %81 {offsets = [0, 128], sizes = [1, 128], strides = [1, 1]} : vector<1x512xf32> to vector<1x128xf32>
    %89 = arith.negf %88 : vector<1x128xf32>
    %90 = math.exp %89 : vector<1x128xf32>
    %cst_29 = arith.constant 1.000000e+00 : f32
    %91 = vector.broadcast %cst_29 : f32 to vector<1x128xf32>
    %92 = arith.addf %91, %90 : vector<1x128xf32>
    %93 = arith.divf %91, %92 : vector<1x128xf32>
    %94 = vector.extract_strided_slice %81 {offsets = [0, 256], sizes = [1, 128], strides = [1, 1]} : vector<1x512xf32> to vector<1x128xf32>
    %95 = math.tanh %94 : vector<1x128xf32>
    %96 = vector.extract_strided_slice %81 {offsets = [0, 384], sizes = [1, 128], strides = [1, 1]} : vector<1x512xf32> to vector<1x128xf32>
    %97 = arith.negf %96 : vector<1x128xf32>
    %98 = math.exp %97 : vector<1x128xf32>
    %cst_30 = arith.constant 1.000000e+00 : f32
    %99 = vector.broadcast %cst_30 : f32 to vector<1x128xf32>
    %100 = arith.addf %99, %98 : vector<1x128xf32>
    %101 = arith.divf %99, %100 : vector<1x128xf32>
    %102 = arith.mulf %93, %75 : vector<1x128xf32>
    %103 = arith.mulf %87, %95 : vector<1x128xf32>
    %104 = arith.addf %102, %103 : vector<1x128xf32>
    %105 = math.tanh %104 : vector<1x128xf32>
    %106 = arith.mulf %101, %105 : vector<1x128xf32>
    %c2_i32 = arith.constant 2 : i32
    %107 = arith.addi %1, %c2_i32 : i32
    %108 = arith.cmpi slt, %107, %0 : i32
    %109 = arith.select %108, %106, %74 : vector<1x128xf32>
    %110 = arith.select %108, %104, %75 : vector<1x128xf32>
    %c2_31 = arith.constant 2 : index
    %c0_32 = arith.constant 0 : index
    %111 = vector.load %arg13[%c2_31, %c0_32] : memref<16x128xf32, #tpu.memory_space<vmem>>, vector<1x128xf32>
    tpu.vector_store %arg13[%c2_31, %c0_32], %109 {strides = array<i32>} : memref<16x128xf32, #tpu.memory_space<vmem>>, vector<1x128xf32>,
    %c3 = arith.constant 3 : index
    %c0_33 = arith.constant 0 : index
    %112 = vector.load %arg2[%c3, %c0_33] : memref<16x512xf32, #tpu.memory_space<vmem>>, vector<1x512xf32>
    %113 = arith.truncf %109 : vector<1x128xf32> to vector<1x128xbf16>
    %c0_34 = arith.constant 0 : index
    %c0_35 = arith.constant 0 : index
    %114 = vector.load %arg5[%c0_34, %c0_35] : memref<128x512xbf16, #tpu.memory_space<vmem>>, vector<128x512xbf16>
    %cst_36 = arith.constant dense<0.000000e+00> : vector<1x512xf32>
    %115 = tpu.matmul %113, %114, %cst_36 {dimension_numbers = #tpu.dot_dimension_numbers<[1], [0], [0], [1], [0, 0, 1, 1], [], []>} : vector<1x128xbf16>, vector<128x512xbf16>, vector<1x512xf32> -> vector<1x512xf32>
    %116 = arith.addf %112, %115 : vector<1x512xf32>
    %117 = vector.extract_strided_slice %116 {offsets = [0, 0], sizes = [1, 128], strides = [1, 1]} : vector<1x512xf32> to vector<1x128xf32>
    %118 = arith.negf %117 : vector<1x128xf32>
    %119 = math.exp %118 : vector<1x128xf32>
    %cst_37 = arith.constant 1.000000e+00 : f32
    %120 = vector.broadcast %cst_37 : f32 to vector<1x128xf32>
    %121 = arith.addf %120, %119 : vector<1x128xf32>
    %122 = arith.divf %120, %121 : vector<1x128xf32>
    %123 = vector.extract_strided_slice %116 {offsets = [0, 128], sizes = [1, 128], strides = [1, 1]} : vector<1x512xf32> to vector<1x128xf32>
    %124 = arith.negf %123 : vector<1x128xf32>
    %125 = math.exp %124 : vector<1x128xf32>
    %cst_38 = arith.constant 1.000000e+00 : f32
    %126 = vector.broadcast %cst_38 : f32 to vector<1x128xf32>
    %127 = arith.addf %126, %125 : vector<1x128xf32>
    %128 = arith.divf %126, %127 : vector<1x128xf32>
    %129 = vector.extract_strided_slice %116 {offsets = [0, 256], sizes = [1, 128], strides = [1, 1]} : vector<1x512xf32> to vector<1x128xf32>
    %130 = math.tanh %129 : vector<1x128xf32>
    %131 = vector.extract_strided_slice %116 {offsets = [0, 384], sizes = [1, 128], strides = [1, 1]} : vector<1x512xf32> to vector<1x128xf32>
    %132 = arith.negf %131 : vector<1x128xf32>
    %133 = math.exp %132 : vector<1x128xf32>
    %cst_39 = arith.constant 1.000000e+00 : f32
    %134 = vector.broadcast %cst_39 : f32 to vector<1x128xf32>
    %135 = arith.addf %134, %133 : vector<1x128xf32>
    %136 = arith.divf %134, %135 : vector<1x128xf32>
    %137 = arith.mulf %128, %110 : vector<1x128xf32>
    %138 = arith.mulf %122, %130 : vector<1x128xf32>
    %139 = arith.addf %137, %138 : vector<1x128xf32>
    %140 = math.tanh %139 : vector<1x128xf32>
    %141 = arith.mulf %136, %140 : vector<1x128xf32>
    %c3_i32 = arith.constant 3 : i32
    %142 = arith.addi %1, %c3_i32 : i32
    %143 = arith.cmpi slt, %142, %0 : i32
    %144 = arith.select %143, %141, %109 : vector<1x128xf32>
    %145 = arith.select %143, %139, %110 : vector<1x128xf32>
    %c3_40 = arith.constant 3 : index
    %c0_41 = arith.constant 0 : index
    %146 = vector.load %arg13[%c3_40, %c0_41] : memref<16x128xf32, #tpu.memory_space<vmem>>, vector<1x128xf32>
    tpu.vector_store %arg13[%c3_40, %c0_41], %144 {strides = array<i32>} : memref<16x128xf32, #tpu.memory_space<vmem>>, vector<1x128xf32>,
    %c4 = arith.constant 4 : index
    %c0_42 = arith.constant 0 : index
    %147 = vector.load %arg2[%c4, %c0_42] : memref<16x512xf32, #tpu.memory_space<vmem>>, vector<1x512xf32>
    %148 = arith.truncf %144 : vector<1x128xf32> to vector<1x128xbf16>
    %c0_43 = arith.constant 0 : index
    %c0_44 = arith.constant 0 : index
    %149 = vector.load %arg5[%c0_43, %c0_44] : memref<128x512xbf16, #tpu.memory_space<vmem>>, vector<128x512xbf16>
    %cst_45 = arith.constant dense<0.000000e+00> : vector<1x512xf32>
    %150 = tpu.matmul %148, %149, %cst_45 {dimension_numbers = #tpu.dot_dimension_numbers<[1], [0], [0], [1], [0, 0, 1, 1], [], []>} : vector<1x128xbf16>, vector<128x512xbf16>, vector<1x512xf32> -> vector<1x512xf32>
    %151 = arith.addf %147, %150 : vector<1x512xf32>
    %152 = vector.extract_strided_slice %151 {offsets = [0, 0], sizes = [1, 128], strides = [1, 1]} : vector<1x512xf32> to vector<1x128xf32>
    %153 = arith.negf %152 : vector<1x128xf32>
    %154 = math.exp %153 : vector<1x128xf32>
    %cst_46 = arith.constant 1.000000e+00 : f32
    %155 = vector.broadcast %cst_46 : f32 to vector<1x128xf32>
    %156 = arith.addf %155, %154 : vector<1x128xf32>
    %157 = arith.divf %155, %156 : vector<1x128xf32>
    %158 = vector.extract_strided_slice %151 {offsets = [0, 128], sizes = [1, 128], strides = [1, 1]} : vector<1x512xf32> to vector<1x128xf32>
    %159 = arith.negf %158 : vector<1x128xf32>
    %160 = math.exp %159 : vector<1x128xf32>
    %cst_47 = arith.constant 1.000000e+00 : f32
    %161 = vector.broadcast %cst_47 : f32 to vector<1x128xf32>
    %162 = arith.addf %161, %160 : vector<1x128xf32>
    %163 = arith.divf %161, %162 : vector<1x128xf32>
    %164 = vector.extract_strided_slice %151 {offsets = [0, 256], sizes = [1, 128], strides = [1, 1]} : vector<1x512xf32> to vector<1x128xf32>
    %165 = math.tanh %164 : vector<1x128xf32>
    %166 = vector.extract_strided_slice %151 {offsets = [0, 384], sizes = [1, 128], strides = [1, 1]} : vector<1x512xf32> to vector<1x128xf32>
    %167 = arith.negf %166 : vector<1x128xf32>
    %168 = math.exp %167 : vector<1x128xf32>
    %cst_48 = arith.constant 1.000000e+00 : f32
    %169 = vector.broadcast %cst_48 : f32 to vector<1x128xf32>
    %170 = arith.addf %169, %168 : vector<1x128xf32>
    %171 = arith.divf %169, %170 : vector<1x128xf32>
    %172 = arith.mulf %163, %145 : vector<1x128xf32>
    %173 = arith.mulf %157, %165 : vector<1x128xf32>
    %174 = arith.addf %172, %173 : vector<1x128xf32>
    %175 = math.tanh %174 : vector<1x128xf32>
    %176 = arith.mulf %171, %175 : vector<1x128xf32>
    %c4_i32 = arith.constant 4 : i32
    %177 = arith.addi %1, %c4_i32 : i32
    %178 = arith.cmpi slt, %177, %0 : i32
    %179 = arith.select %178, %176, %144 : vector<1x128xf32>
    %180 = arith.select %178, %174, %145 : vector<1x128xf32>
    %c4_49 = arith.constant 4 : index
    %c0_50 = arith.constant 0 : index
    %181 = vector.load %arg13[%c4_49, %c0_50] : memref<16x128xf32, #tpu.memory_space<vmem>>, vector<1x128xf32>
    tpu.vector_store %arg13[%c4_49, %c0_50], %179 {strides = array<i32>} : memref<16x128xf32, #tpu.memory_space<vmem>>, vector<1x128xf32>,
    %c5 = arith.constant 5 : index
    %c0_51 = arith.constant 0 : index
    %182 = vector.load %arg2[%c5, %c0_51] : memref<16x512xf32, #tpu.memory_space<vmem>>, vector<1x512xf32>
    %183 = arith.truncf %179 : vector<1x128xf32> to vector<1x128xbf16>
    %c0_52 = arith.constant 0 : index
    %c0_53 = arith.constant 0 : index
    %184 = vector.load %arg5[%c0_52, %c0_53] : memref<128x512xbf16, #tpu.memory_space<vmem>>, vector<128x512xbf16>
    %cst_54 = arith.constant dense<0.000000e+00> : vector<1x512xf32>
    %185 = tpu.matmul %183, %184, %cst_54 {dimension_numbers = #tpu.dot_dimension_numbers<[1], [0], [0], [1], [0, 0, 1, 1], [], []>} : vector<1x128xbf16>, vector<128x512xbf16>, vector<1x512xf32> -> vector<1x512xf32>
    %186 = arith.addf %182, %185 : vector<1x512xf32>
    %187 = vector.extract_strided_slice %186 {offsets = [0, 0], sizes = [1, 128], strides = [1, 1]} : vector<1x512xf32> to vector<1x128xf32>
    %188 = arith.negf %187 : vector<1x128xf32>
    %189 = math.exp %188 : vector<1x128xf32>
    %cst_55 = arith.constant 1.000000e+00 : f32
    %190 = vector.broadcast %cst_55 : f32 to vector<1x128xf32>
    %191 = arith.addf %190, %189 : vector<1x128xf32>
    %192 = arith.divf %190, %191 : vector<1x128xf32>
    %193 = vector.extract_strided_slice %186 {offsets = [0, 128], sizes = [1, 128], strides = [1, 1]} : vector<1x512xf32> to vector<1x128xf32>
    %194 = arith.negf %193 : vector<1x128xf32>
    %195 = math.exp %194 : vector<1x128xf32>
    %cst_56 = arith.constant 1.000000e+00 : f32
    %196 = vector.broadcast %cst_56 : f32 to vector<1x128xf32>
    %197 = arith.addf %196, %195 : vector<1x128xf32>
    %198 = arith.divf %196, %197 : vector<1x128xf32>
    %199 = vector.extract_strided_slice %186 {offsets = [0, 256], sizes = [1, 128], strides = [1, 1]} : vector<1x512xf32> to vector<1x128xf32>
    %200 = math.tanh %199 : vector<1x128xf32>
    %201 = vector.extract_strided_slice %186 {offsets = [0, 384], sizes = [1, 128], strides = [1, 1]} : vector<1x512xf32> to vector<1x128xf32>
    %202 = arith.negf %201 : vector<1x128xf32>
    %203 = math.exp %202 : vector<1x128xf32>
    %cst_57 = arith.constant 1.000000e+00 : f32
    %204 = vector.broadcast %cst_57 : f32 to vector<1x128xf32>
    %205 = arith.addf %204, %203 : vector<1x128xf32>
    %206 = arith.divf %204, %205 : vector<1x128xf32>
    %207 = arith.mulf %198, %180 : vector<1x128xf32>
    %208 = arith.mulf %192, %200 : vector<1x128xf32>
    %209 = arith.addf %207, %208 : vector<1x128xf32>
    %210 = math.tanh %209 : vector<1x128xf32>
    %211 = arith.mulf %206, %210 : vector<1x128xf32>
    %c5_i32 = arith.constant 5 : i32
    %212 = arith.addi %1, %c5_i32 : i32
    %213 = arith.cmpi slt, %212, %0 : i32
    %214 = arith.select %213, %211, %179 : vector<1x128xf32>
    %215 = arith.select %213, %209, %180 : vector<1x128xf32>
    %c5_58 = arith.constant 5 : index
    %c0_59 = arith.constant 0 : index
    %216 = vector.load %arg13[%c5_58, %c0_59] : memref<16x128xf32, #tpu.memory_space<vmem>>, vector<1x128xf32>
    tpu.vector_store %arg13[%c5_58, %c0_59], %214 {strides = array<i32>} : memref<16x128xf32, #tpu.memory_space<vmem>>, vector<1x128xf32>,
    %c6 = arith.constant 6 : index
    %c0_60 = arith.constant 0 : index
    %217 = vector.load %arg2[%c6, %c0_60] : memref<16x512xf32, #tpu.memory_space<vmem>>, vector<1x512xf32>
    %218 = arith.truncf %214 : vector<1x128xf32> to vector<1x128xbf16>
    %c0_61 = arith.constant 0 : index
    %c0_62 = arith.constant 0 : index
    %219 = vector.load %arg5[%c0_61, %c0_62] : memref<128x512xbf16, #tpu.memory_space<vmem>>, vector<128x512xbf16>
    %cst_63 = arith.constant dense<0.000000e+00> : vector<1x512xf32>
    %220 = tpu.matmul %218, %219, %cst_63 {dimension_numbers = #tpu.dot_dimension_numbers<[1], [0], [0], [1], [0, 0, 1, 1], [], []>} : vector<1x128xbf16>, vector<128x512xbf16>, vector<1x512xf32> -> vector<1x512xf32>
    %221 = arith.addf %217, %220 : vector<1x512xf32>
    %222 = vector.extract_strided_slice %221 {offsets = [0, 0], sizes = [1, 128], strides = [1, 1]} : vector<1x512xf32> to vector<1x128xf32>
    %223 = arith.negf %222 : vector<1x128xf32>
    %224 = math.exp %223 : vector<1x128xf32>
    %cst_64 = arith.constant 1.000000e+00 : f32
    %225 = vector.broadcast %cst_64 : f32 to vector<1x128xf32>
    %226 = arith.addf %225, %224 : vector<1x128xf32>
    %227 = arith.divf %225, %226 : vector<1x128xf32>
    %228 = vector.extract_strided_slice %221 {offsets = [0, 128], sizes = [1, 128], strides = [1, 1]} : vector<1x512xf32> to vector<1x128xf32>
    %229 = arith.negf %228 : vector<1x128xf32>
    %230 = math.exp %229 : vector<1x128xf32>
    %cst_65 = arith.constant 1.000000e+00 : f32
    %231 = vector.broadcast %cst_65 : f32 to vector<1x128xf32>
    %232 = arith.addf %231, %230 : vector<1x128xf32>
    %233 = arith.divf %231, %232 : vector<1x128xf32>
    %234 = vector.extract_strided_slice %221 {offsets = [0, 256], sizes = [1, 128], strides = [1, 1]} : vector<1x512xf32> to vector<1x128xf32>
    %235 = math.tanh %234 : vector<1x128xf32>
    %236 = vector.extract_strided_slice %221 {offsets = [0, 384], sizes = [1, 128], strides = [1, 1]} : vector<1x512xf32> to vector<1x128xf32>
    %237 = arith.negf %236 : vector<1x128xf32>
    %238 = math.exp %237 : vector<1x128xf32>
    %cst_66 = arith.constant 1.000000e+00 : f32
    %239 = vector.broadcast %cst_66 : f32 to vector<1x128xf32>
    %240 = arith.addf %239, %238 : vector<1x128xf32>
    %241 = arith.divf %239, %240 : vector<1x128xf32>
    %242 = arith.mulf %233, %215 : vector<1x128xf32>
    %243 = arith.mulf %227, %235 : vector<1x128xf32>
    %244 = arith.addf %242, %243 : vector<1x128xf32>
    %245 = math.tanh %244 : vector<1x128xf32>
    %246 = arith.mulf %241, %245 : vector<1x128xf32>
    %c6_i32 = arith.constant 6 : i32
    %247 = arith.addi %1, %c6_i32 : i32
    %248 = arith.cmpi slt, %247, %0 : i32
    %249 = arith.select %248, %246, %214 : vector<1x128xf32>
    %250 = arith.select %248, %244, %215 : vector<1x128xf32>
    %c6_67 = arith.constant 6 : index
    %c0_68 = arith.constant 0 : index
    %251 = vector.load %arg13[%c6_67, %c0_68] : memref<16x128xf32, #tpu.memory_space<vmem>>, vector<1x128xf32>
    tpu.vector_store %arg13[%c6_67, %c0_68], %249 {strides = array<i32>} : memref<16x128xf32, #tpu.memory_space<vmem>>, vector<1x128xf32>,
    %c7 = arith.constant 7 : index
    %c0_69 = arith.constant 0 : index
    %252 = vector.load %arg2[%c7, %c0_69] : memref<16x512xf32, #tpu.memory_space<vmem>>, vector<1x512xf32>
    %253 = arith.truncf %249 : vector<1x128xf32> to vector<1x128xbf16>
    %c0_70 = arith.constant 0 : index
    %c0_71 = arith.constant 0 : index
    %254 = vector.load %arg5[%c0_70, %c0_71] : memref<128x512xbf16, #tpu.memory_space<vmem>>, vector<128x512xbf16>
    %cst_72 = arith.constant dense<0.000000e+00> : vector<1x512xf32>
    %255 = tpu.matmul %253, %254, %cst_72 {dimension_numbers = #tpu.dot_dimension_numbers<[1], [0], [0], [1], [0, 0, 1, 1], [], []>} : vector<1x128xbf16>, vector<128x512xbf16>, vector<1x512xf32> -> vector<1x512xf32>
    %256 = arith.addf %252, %255 : vector<1x512xf32>
    %257 = vector.extract_strided_slice %256 {offsets = [0, 0], sizes = [1, 128], strides = [1, 1]} : vector<1x512xf32> to vector<1x128xf32>
    %258 = arith.negf %257 : vector<1x128xf32>
    %259 = math.exp %258 : vector<1x128xf32>
    %cst_73 = arith.constant 1.000000e+00 : f32
    %260 = vector.broadcast %cst_73 : f32 to vector<1x128xf32>
    %261 = arith.addf %260, %259 : vector<1x128xf32>
    %262 = arith.divf %260, %261 : vector<1x128xf32>
    %263 = vector.extract_strided_slice %256 {offsets = [0, 128], sizes = [1, 128], strides = [1, 1]} : vector<1x512xf32> to vector<1x128xf32>
    %264 = arith.negf %263 : vector<1x128xf32>
    %265 = math.exp %264 : vector<1x128xf32>
    %cst_74 = arith.constant 1.000000e+00 : f32
    %266 = vector.broadcast %cst_74 : f32 to vector<1x128xf32>
    %267 = arith.addf %266, %265 : vector<1x128xf32>
    %268 = arith.divf %266, %267 : vector<1x128xf32>
    %269 = vector.extract_strided_slice %256 {offsets = [0, 256], sizes = [1, 128], strides = [1, 1]} : vector<1x512xf32> to vector<1x128xf32>
    %270 = math.tanh %269 : vector<1x128xf32>
    %271 = vector.extract_strided_slice %256 {offsets = [0, 384], sizes = [1, 128], strides = [1, 1]} : vector<1x512xf32> to vector<1x128xf32>
    %272 = arith.negf %271 : vector<1x128xf32>
    %273 = math.exp %272 : vector<1x128xf32>
    %cst_75 = arith.constant 1.000000e+00 : f32
    %274 = vector.broadcast %cst_75 : f32 to vector<1x128xf32>
    %275 = arith.addf %274, %273 : vector<1x128xf32>
    %276 = arith.divf %274, %275 : vector<1x128xf32>
    %277 = arith.mulf %268, %250 : vector<1x128xf32>
    %278 = arith.mulf %262, %270 : vector<1x128xf32>
    %279 = arith.addf %277, %278 : vector<1x128xf32>
    %280 = math.tanh %279 : vector<1x128xf32>
    %281 = arith.mulf %276, %280 : vector<1x128xf32>
    %c7_i32 = arith.constant 7 : i32
    %282 = arith.addi %1, %c7_i32 : i32
    %283 = arith.cmpi slt, %282, %0 : i32
    %284 = arith.select %283, %281, %249 : vector<1x128xf32>
    %285 = arith.select %283, %279, %250 : vector<1x128xf32>
    %c7_76 = arith.constant 7 : index
    %c0_77 = arith.constant 0 : index
    %286 = vector.load %arg13[%c7_76, %c0_77] : memref<16x128xf32, #tpu.memory_space<vmem>>, vector<1x128xf32>
    tpu.vector_store %arg13[%c7_76, %c0_77], %284 {strides = array<i32>} : memref<16x128xf32, #tpu.memory_space<vmem>>, vector<1x128xf32>,
    %c8 = arith.constant 8 : index
    %c0_78 = arith.constant 0 : index
    %287 = vector.load %arg2[%c8, %c0_78] : memref<16x512xf32, #tpu.memory_space<vmem>>, vector<1x512xf32>
    %288 = arith.truncf %284 : vector<1x128xf32> to vector<1x128xbf16>
    %c0_79 = arith.constant 0 : index
    %c0_80 = arith.constant 0 : index
    %289 = vector.load %arg5[%c0_79, %c0_80] : memref<128x512xbf16, #tpu.memory_space<vmem>>, vector<128x512xbf16>
    %cst_81 = arith.constant dense<0.000000e+00> : vector<1x512xf32>
    %290 = tpu.matmul %288, %289, %cst_81 {dimension_numbers = #tpu.dot_dimension_numbers<[1], [0], [0], [1], [0, 0, 1, 1], [], []>} : vector<1x128xbf16>, vector<128x512xbf16>, vector<1x512xf32> -> vector<1x512xf32>
    %291 = arith.addf %287, %290 : vector<1x512xf32>
    %292 = vector.extract_strided_slice %291 {offsets = [0, 0], sizes = [1, 128], strides = [1, 1]} : vector<1x512xf32> to vector<1x128xf32>
    %293 = arith.negf %292 : vector<1x128xf32>
    %294 = math.exp %293 : vector<1x128xf32>
    %cst_82 = arith.constant 1.000000e+00 : f32
    %295 = vector.broadcast %cst_82 : f32 to vector<1x128xf32>
    %296 = arith.addf %295, %294 : vector<1x128xf32>
    %297 = arith.divf %295, %296 : vector<1x128xf32>
    %298 = vector.extract_strided_slice %291 {offsets = [0, 128], sizes = [1, 128], strides = [1, 1]} : vector<1x512xf32> to vector<1x128xf32>
    %299 = arith.negf %298 : vector<1x128xf32>
    %300 = math.exp %299 : vector<1x128xf32>
    %cst_83 = arith.constant 1.000000e+00 : f32
    %301 = vector.broadcast %cst_83 : f32 to vector<1x128xf32>
    %302 = arith.addf %301, %300 : vector<1x128xf32>
    %303 = arith.divf %301, %302 : vector<1x128xf32>
    %304 = vector.extract_strided_slice %291 {offsets = [0, 256], sizes = [1, 128], strides = [1, 1]} : vector<1x512xf32> to vector<1x128xf32>
    %305 = math.tanh %304 : vector<1x128xf32>
    %306 = vector.extract_strided_slice %291 {offsets = [0, 384], sizes = [1, 128], strides = [1, 1]} : vector<1x512xf32> to vector<1x128xf32>
    %307 = arith.negf %306 : vector<1x128xf32>
    %308 = math.exp %307 : vector<1x128xf32>
    %cst_84 = arith.constant 1.000000e+00 : f32
    %309 = vector.broadcast %cst_84 : f32 to vector<1x128xf32>
    %310 = arith.addf %309, %308 : vector<1x128xf32>
    %311 = arith.divf %309, %310 : vector<1x128xf32>
    %312 = arith.mulf %303, %285 : vector<1x128xf32>
    %313 = arith.mulf %297, %305 : vector<1x128xf32>
    %314 = arith.addf %312, %313 : vector<1x128xf32>
    %315 = math.tanh %314 : vector<1x128xf32>
    %316 = arith.mulf %311, %315 : vector<1x128xf32>
    %c8_i32 = arith.constant 8 : i32
    %317 = arith.addi %1, %c8_i32 : i32
    %318 = arith.cmpi slt, %317, %0 : i32
    %319 = arith.select %318, %316, %284 : vector<1x128xf32>
    %320 = arith.select %318, %314, %285 : vector<1x128xf32>
    %c8_85 = arith.constant 8 : index
    %c0_86 = arith.constant 0 : index
    %321 = vector.load %arg13[%c8_85, %c0_86] : memref<16x128xf32, #tpu.memory_space<vmem>>, vector<1x128xf32>
    tpu.vector_store %arg13[%c8_85, %c0_86], %319 {strides = array<i32>} : memref<16x128xf32, #tpu.memory_space<vmem>>, vector<1x128xf32>,
    %c9 = arith.constant 9 : index
    %c0_87 = arith.constant 0 : index
    %322 = vector.load %arg2[%c9, %c0_87] : memref<16x512xf32, #tpu.memory_space<vmem>>, vector<1x512xf32>
    %323 = arith.truncf %319 : vector<1x128xf32> to vector<1x128xbf16>
    %c0_88 = arith.constant 0 : index
    %c0_89 = arith.constant 0 : index
    %324 = vector.load %arg5[%c0_88, %c0_89] : memref<128x512xbf16, #tpu.memory_space<vmem>>, vector<128x512xbf16>
    %cst_90 = arith.constant dense<0.000000e+00> : vector<1x512xf32>
    %325 = tpu.matmul %323, %324, %cst_90 {dimension_numbers = #tpu.dot_dimension_numbers<[1], [0], [0], [1], [0, 0, 1, 1], [], []>} : vector<1x128xbf16>, vector<128x512xbf16>, vector<1x512xf32> -> vector<1x512xf32>
    %326 = arith.addf %322, %325 : vector<1x512xf32>
    %327 = vector.extract_strided_slice %326 {offsets = [0, 0], sizes = [1, 128], strides = [1, 1]} : vector<1x512xf32> to vector<1x128xf32>
    %328 = arith.negf %327 : vector<1x128xf32>
    %329 = math.exp %328 : vector<1x128xf32>
    %cst_91 = arith.constant 1.000000e+00 : f32
    %330 = vector.broadcast %cst_91 : f32 to vector<1x128xf32>
    %331 = arith.addf %330, %329 : vector<1x128xf32>
    %332 = arith.divf %330, %331 : vector<1x128xf32>
    %333 = vector.extract_strided_slice %326 {offsets = [0, 128], sizes = [1, 128], strides = [1, 1]} : vector<1x512xf32> to vector<1x128xf32>
    %334 = arith.negf %333 : vector<1x128xf32>
    %335 = math.exp %334 : vector<1x128xf32>
    %cst_92 = arith.constant 1.000000e+00 : f32
    %336 = vector.broadcast %cst_92 : f32 to vector<1x128xf32>
    %337 = arith.addf %336, %335 : vector<1x128xf32>
    %338 = arith.divf %336, %337 : vector<1x128xf32>
    %339 = vector.extract_strided_slice %326 {offsets = [0, 256], sizes = [1, 128], strides = [1, 1]} : vector<1x512xf32> to vector<1x128xf32>
    %340 = math.tanh %339 : vector<1x128xf32>
    %341 = vector.extract_strided_slice %326 {offsets = [0, 384], sizes = [1, 128], strides = [1, 1]} : vector<1x512xf32> to vector<1x128xf32>
    %342 = arith.negf %341 : vector<1x128xf32>
    %343 = math.exp %342 : vector<1x128xf32>
    %cst_93 = arith.constant 1.000000e+00 : f32
    %344 = vector.broadcast %cst_93 : f32 to vector<1x128xf32>
    %345 = arith.addf %344, %343 : vector<1x128xf32>
    %346 = arith.divf %344, %345 : vector<1x128xf32>
    %347 = arith.mulf %338, %320 : vector<1x128xf32>
    %348 = arith.mulf %332, %340 : vector<1x128xf32>
    %349 = arith.addf %347, %348 : vector<1x128xf32>
    %350 = math.tanh %349 : vector<1x128xf32>
    %351 = arith.mulf %346, %350 : vector<1x128xf32>
    %c9_i32 = arith.constant 9 : i32
    %352 = arith.addi %1, %c9_i32 : i32
    %353 = arith.cmpi slt, %352, %0 : i32
    %354 = arith.select %353, %351, %319 : vector<1x128xf32>
    %355 = arith.select %353, %349, %320 : vector<1x128xf32>
    %c9_94 = arith.constant 9 : index
    %c0_95 = arith.constant 0 : index
    %356 = vector.load %arg13[%c9_94, %c0_95] : memref<16x128xf32, #tpu.memory_space<vmem>>, vector<1x128xf32>
    tpu.vector_store %arg13[%c9_94, %c0_95], %354 {strides = array<i32>} : memref<16x128xf32, #tpu.memory_space<vmem>>, vector<1x128xf32>,
    %c10 = arith.constant 10 : index
    %c0_96 = arith.constant 0 : index
    %357 = vector.load %arg2[%c10, %c0_96] : memref<16x512xf32, #tpu.memory_space<vmem>>, vector<1x512xf32>
    %358 = arith.truncf %354 : vector<1x128xf32> to vector<1x128xbf16>
    %c0_97 = arith.constant 0 : index
    %c0_98 = arith.constant 0 : index
    %359 = vector.load %arg5[%c0_97, %c0_98] : memref<128x512xbf16, #tpu.memory_space<vmem>>, vector<128x512xbf16>
    %cst_99 = arith.constant dense<0.000000e+00> : vector<1x512xf32>
    %360 = tpu.matmul %358, %359, %cst_99 {dimension_numbers = #tpu.dot_dimension_numbers<[1], [0], [0], [1], [0, 0, 1, 1], [], []>} : vector<1x128xbf16>, vector<128x512xbf16>, vector<1x512xf32> -> vector<1x512xf32>
    %361 = arith.addf %357, %360 : vector<1x512xf32>
    %362 = vector.extract_strided_slice %361 {offsets = [0, 0], sizes = [1, 128], strides = [1, 1]} : vector<1x512xf32> to vector<1x128xf32>
    %363 = arith.negf %362 : vector<1x128xf32>
    %364 = math.exp %363 : vector<1x128xf32>
    %cst_100 = arith.constant 1.000000e+00 : f32
    %365 = vector.broadcast %cst_100 : f32 to vector<1x128xf32>
    %366 = arith.addf %365, %364 : vector<1x128xf32>
    %367 = arith.divf %365, %366 : vector<1x128xf32>
    %368 = vector.extract_strided_slice %361 {offsets = [0, 128], sizes = [1, 128], strides = [1, 1]} : vector<1x512xf32> to vector<1x128xf32>
    %369 = arith.negf %368 : vector<1x128xf32>
    %370 = math.exp %369 : vector<1x128xf32>
    %cst_101 = arith.constant 1.000000e+00 : f32
    %371 = vector.broadcast %cst_101 : f32 to vector<1x128xf32>
    %372 = arith.addf %371, %370 : vector<1x128xf32>
    %373 = arith.divf %371, %372 : vector<1x128xf32>
    %374 = vector.extract_strided_slice %361 {offsets = [0, 256], sizes = [1, 128], strides = [1, 1]} : vector<1x512xf32> to vector<1x128xf32>
    %375 = math.tanh %374 : vector<1x128xf32>
    %376 = vector.extract_strided_slice %361 {offsets = [0, 384], sizes = [1, 128], strides = [1, 1]} : vector<1x512xf32> to vector<1x128xf32>
    %377 = arith.negf %376 : vector<1x128xf32>
    %378 = math.exp %377 : vector<1x128xf32>
    %cst_102 = arith.constant 1.000000e+00 : f32
    %379 = vector.broadcast %cst_102 : f32 to vector<1x128xf32>
    %380 = arith.addf %379, %378 : vector<1x128xf32>
    %381 = arith.divf %379, %380 : vector<1x128xf32>
    %382 = arith.mulf %373, %355 : vector<1x128xf32>
    %383 = arith.mulf %367, %375 : vector<1x128xf32>
    %384 = arith.addf %382, %383 : vector<1x128xf32>
    %385 = math.tanh %384 : vector<1x128xf32>
    %386 = arith.mulf %381, %385 : vector<1x128xf32>
    %c10_i32 = arith.constant 10 : i32
    %387 = arith.addi %1, %c10_i32 : i32
    %388 = arith.cmpi slt, %387, %0 : i32
    %389 = arith.select %388, %386, %354 : vector<1x128xf32>
    %390 = arith.select %388, %384, %355 : vector<1x128xf32>
    %c10_103 = arith.constant 10 : index
    %c0_104 = arith.constant 0 : index
    %391 = vector.load %arg13[%c10_103, %c0_104] : memref<16x128xf32, #tpu.memory_space<vmem>>, vector<1x128xf32>
    tpu.vector_store %arg13[%c10_103, %c0_104], %389 {strides = array<i32>} : memref<16x128xf32, #tpu.memory_space<vmem>>, vector<1x128xf32>,
    %c11 = arith.constant 11 : index
    %c0_105 = arith.constant 0 : index
    %392 = vector.load %arg2[%c11, %c0_105] : memref<16x512xf32, #tpu.memory_space<vmem>>, vector<1x512xf32>
    %393 = arith.truncf %389 : vector<1x128xf32> to vector<1x128xbf16>
    %c0_106 = arith.constant 0 : index
    %c0_107 = arith.constant 0 : index
    %394 = vector.load %arg5[%c0_106, %c0_107] : memref<128x512xbf16, #tpu.memory_space<vmem>>, vector<128x512xbf16>
    %cst_108 = arith.constant dense<0.000000e+00> : vector<1x512xf32>
    %395 = tpu.matmul %393, %394, %cst_108 {dimension_numbers = #tpu.dot_dimension_numbers<[1], [0], [0], [1], [0, 0, 1, 1], [], []>} : vector<1x128xbf16>, vector<128x512xbf16>, vector<1x512xf32> -> vector<1x512xf32>
    %396 = arith.addf %392, %395 : vector<1x512xf32>
    %397 = vector.extract_strided_slice %396 {offsets = [0, 0], sizes = [1, 128], strides = [1, 1]} : vector<1x512xf32> to vector<1x128xf32>
    %398 = arith.negf %397 : vector<1x128xf32>
    %399 = math.exp %398 : vector<1x128xf32>
    %cst_109 = arith.constant 1.000000e+00 : f32
    %400 = vector.broadcast %cst_109 : f32 to vector<1x128xf32>
    %401 = arith.addf %400, %399 : vector<1x128xf32>
    %402 = arith.divf %400, %401 : vector<1x128xf32>
    %403 = vector.extract_strided_slice %396 {offsets = [0, 128], sizes = [1, 128], strides = [1, 1]} : vector<1x512xf32> to vector<1x128xf32>
    %404 = arith.negf %403 : vector<1x128xf32>
    %405 = math.exp %404 : vector<1x128xf32>
    %cst_110 = arith.constant 1.000000e+00 : f32
    %406 = vector.broadcast %cst_110 : f32 to vector<1x128xf32>
    %407 = arith.addf %406, %405 : vector<1x128xf32>
    %408 = arith.divf %406, %407 : vector<1x128xf32>
    %409 = vector.extract_strided_slice %396 {offsets = [0, 256], sizes = [1, 128], strides = [1, 1]} : vector<1x512xf32> to vector<1x128xf32>
    %410 = math.tanh %409 : vector<1x128xf32>
    %411 = vector.extract_strided_slice %396 {offsets = [0, 384], sizes = [1, 128], strides = [1, 1]} : vector<1x512xf32> to vector<1x128xf32>
    %412 = arith.negf %411 : vector<1x128xf32>
    %413 = math.exp %412 : vector<1x128xf32>
    %cst_111 = arith.constant 1.000000e+00 : f32
    %414 = vector.broadcast %cst_111 : f32 to vector<1x128xf32>
    %415 = arith.addf %414, %413 : vector<1x128xf32>
    %416 = arith.divf %414, %415 : vector<1x128xf32>
    %417 = arith.mulf %408, %390 : vector<1x128xf32>
    %418 = arith.mulf %402, %410 : vector<1x128xf32>
    %419 = arith.addf %417, %418 : vector<1x128xf32>
    %420 = math.tanh %419 : vector<1x128xf32>
    %421 = arith.mulf %416, %420 : vector<1x128xf32>
    %c11_i32 = arith.constant 11 : i32
    %422 = arith.addi %1, %c11_i32 : i32
    %423 = arith.cmpi slt, %422, %0 : i32
    %424 = arith.select %423, %421, %389 : vector<1x128xf32>
    %425 = arith.select %423, %419, %390 : vector<1x128xf32>
    %c11_112 = arith.constant 11 : index
    %c0_113 = arith.constant 0 : index
    %426 = vector.load %arg13[%c11_112, %c0_113] : memref<16x128xf32, #tpu.memory_space<vmem>>, vector<1x128xf32>
    tpu.vector_store %arg13[%c11_112, %c0_113], %424 {strides = array<i32>} : memref<16x128xf32, #tpu.memory_space<vmem>>, vector<1x128xf32>,
    %c12 = arith.constant 12 : index
    %c0_114 = arith.constant 0 : index
    %427 = vector.load %arg2[%c12, %c0_114] : memref<16x512xf32, #tpu.memory_space<vmem>>, vector<1x512xf32>
    %428 = arith.truncf %424 : vector<1x128xf32> to vector<1x128xbf16>
    %c0_115 = arith.constant 0 : index
    %c0_116 = arith.constant 0 : index
    %429 = vector.load %arg5[%c0_115, %c0_116] : memref<128x512xbf16, #tpu.memory_space<vmem>>, vector<128x512xbf16>
    %cst_117 = arith.constant dense<0.000000e+00> : vector<1x512xf32>
    %430 = tpu.matmul %428, %429, %cst_117 {dimension_numbers = #tpu.dot_dimension_numbers<[1], [0], [0], [1], [0, 0, 1, 1], [], []>} : vector<1x128xbf16>, vector<128x512xbf16>, vector<1x512xf32> -> vector<1x512xf32>
    %431 = arith.addf %427, %430 : vector<1x512xf32>
    %432 = vector.extract_strided_slice %431 {offsets = [0, 0], sizes = [1, 128], strides = [1, 1]} : vector<1x512xf32> to vector<1x128xf32>
    %433 = arith.negf %432 : vector<1x128xf32>
    %434 = math.exp %433 : vector<1x128xf32>
    %cst_118 = arith.constant 1.000000e+00 : f32
    %435 = vector.broadcast %cst_118 : f32 to vector<1x128xf32>
    %436 = arith.addf %435, %434 : vector<1x128xf32>
    %437 = arith.divf %435, %436 : vector<1x128xf32>
    %438 = vector.extract_strided_slice %431 {offsets = [0, 128], sizes = [1, 128], strides = [1, 1]} : vector<1x512xf32> to vector<1x128xf32>
    %439 = arith.negf %438 : vector<1x128xf32>
    %440 = math.exp %439 : vector<1x128xf32>
    %cst_119 = arith.constant 1.000000e+00 : f32
    %441 = vector.broadcast %cst_119 : f32 to vector<1x128xf32>
    %442 = arith.addf %441, %440 : vector<1x128xf32>
    %443 = arith.divf %441, %442 : vector<1x128xf32>
    %444 = vector.extract_strided_slice %431 {offsets = [0, 256], sizes = [1, 128], strides = [1, 1]} : vector<1x512xf32> to vector<1x128xf32>
    %445 = math.tanh %444 : vector<1x128xf32>
    %446 = vector.extract_strided_slice %431 {offsets = [0, 384], sizes = [1, 128], strides = [1, 1]} : vector<1x512xf32> to vector<1x128xf32>
    %447 = arith.negf %446 : vector<1x128xf32>
    %448 = math.exp %447 : vector<1x128xf32>
    %cst_120 = arith.constant 1.000000e+00 : f32
    %449 = vector.broadcast %cst_120 : f32 to vector<1x128xf32>
    %450 = arith.addf %449, %448 : vector<1x128xf32>
    %451 = arith.divf %449, %450 : vector<1x128xf32>
    %452 = arith.mulf %443, %425 : vector<1x128xf32>
    %453 = arith.mulf %437, %445 : vector<1x128xf32>
    %454 = arith.addf %452, %453 : vector<1x128xf32>
    %455 = math.tanh %454 : vector<1x128xf32>
    %456 = arith.mulf %451, %455 : vector<1x128xf32>
    %c12_i32 = arith.constant 12 : i32
    %457 = arith.addi %1, %c12_i32 : i32
    %458 = arith.cmpi slt, %457, %0 : i32
    %459 = arith.select %458, %456, %424 : vector<1x128xf32>
    %460 = arith.select %458, %454, %425 : vector<1x128xf32>
    %c12_121 = arith.constant 12 : index
    %c0_122 = arith.constant 0 : index
    %461 = vector.load %arg13[%c12_121, %c0_122] : memref<16x128xf32, #tpu.memory_space<vmem>>, vector<1x128xf32>
    tpu.vector_store %arg13[%c12_121, %c0_122], %459 {strides = array<i32>} : memref<16x128xf32, #tpu.memory_space<vmem>>, vector<1x128xf32>,
    %c13 = arith.constant 13 : index
    %c0_123 = arith.constant 0 : index
    %462 = vector.load %arg2[%c13, %c0_123] : memref<16x512xf32, #tpu.memory_space<vmem>>, vector<1x512xf32>
    %463 = arith.truncf %459 : vector<1x128xf32> to vector<1x128xbf16>
    %c0_124 = arith.constant 0 : index
    %c0_125 = arith.constant 0 : index
    %464 = vector.load %arg5[%c0_124, %c0_125] : memref<128x512xbf16, #tpu.memory_space<vmem>>, vector<128x512xbf16>
    %cst_126 = arith.constant dense<0.000000e+00> : vector<1x512xf32>
    %465 = tpu.matmul %463, %464, %cst_126 {dimension_numbers = #tpu.dot_dimension_numbers<[1], [0], [0], [1], [0, 0, 1, 1], [], []>} : vector<1x128xbf16>, vector<128x512xbf16>, vector<1x512xf32> -> vector<1x512xf32>
    %466 = arith.addf %462, %465 : vector<1x512xf32>
    %467 = vector.extract_strided_slice %466 {offsets = [0, 0], sizes = [1, 128], strides = [1, 1]} : vector<1x512xf32> to vector<1x128xf32>
    %468 = arith.negf %467 : vector<1x128xf32>
    %469 = math.exp %468 : vector<1x128xf32>
    %cst_127 = arith.constant 1.000000e+00 : f32
    %470 = vector.broadcast %cst_127 : f32 to vector<1x128xf32>
    %471 = arith.addf %470, %469 : vector<1x128xf32>
    %472 = arith.divf %470, %471 : vector<1x128xf32>
    %473 = vector.extract_strided_slice %466 {offsets = [0, 128], sizes = [1, 128], strides = [1, 1]} : vector<1x512xf32> to vector<1x128xf32>
    %474 = arith.negf %473 : vector<1x128xf32>
    %475 = math.exp %474 : vector<1x128xf32>
    %cst_128 = arith.constant 1.000000e+00 : f32
    %476 = vector.broadcast %cst_128 : f32 to vector<1x128xf32>
    %477 = arith.addf %476, %475 : vector<1x128xf32>
    %478 = arith.divf %476, %477 : vector<1x128xf32>
    %479 = vector.extract_strided_slice %466 {offsets = [0, 256], sizes = [1, 128], strides = [1, 1]} : vector<1x512xf32> to vector<1x128xf32>
    %480 = math.tanh %479 : vector<1x128xf32>
    %481 = vector.extract_strided_slice %466 {offsets = [0, 384], sizes = [1, 128], strides = [1, 1]} : vector<1x512xf32> to vector<1x128xf32>
    %482 = arith.negf %481 : vector<1x128xf32>
    %483 = math.exp %482 : vector<1x128xf32>
    %cst_129 = arith.constant 1.000000e+00 : f32
    %484 = vector.broadcast %cst_129 : f32 to vector<1x128xf32>
    %485 = arith.addf %484, %483 : vector<1x128xf32>
    %486 = arith.divf %484, %485 : vector<1x128xf32>
    %487 = arith.mulf %478, %460 : vector<1x128xf32>
    %488 = arith.mulf %472, %480 : vector<1x128xf32>
    %489 = arith.addf %487, %488 : vector<1x128xf32>
    %490 = math.tanh %489 : vector<1x128xf32>
    %491 = arith.mulf %486, %490 : vector<1x128xf32>
    %c13_i32 = arith.constant 13 : i32
    %492 = arith.addi %1, %c13_i32 : i32
    %493 = arith.cmpi slt, %492, %0 : i32
    %494 = arith.select %493, %491, %459 : vector<1x128xf32>
    %495 = arith.select %493, %489, %460 : vector<1x128xf32>
    %c13_130 = arith.constant 13 : index
    %c0_131 = arith.constant 0 : index
    %496 = vector.load %arg13[%c13_130, %c0_131] : memref<16x128xf32, #tpu.memory_space<vmem>>, vector<1x128xf32>
    tpu.vector_store %arg13[%c13_130, %c0_131], %494 {strides = array<i32>} : memref<16x128xf32, #tpu.memory_space<vmem>>, vector<1x128xf32>,
    %c14 = arith.constant 14 : index
    %c0_132 = arith.constant 0 : index
    %497 = vector.load %arg2[%c14, %c0_132] : memref<16x512xf32, #tpu.memory_space<vmem>>, vector<1x512xf32>
    %498 = arith.truncf %494 : vector<1x128xf32> to vector<1x128xbf16>
    %c0_133 = arith.constant 0 : index
    %c0_134 = arith.constant 0 : index
    %499 = vector.load %arg5[%c0_133, %c0_134] : memref<128x512xbf16, #tpu.memory_space<vmem>>, vector<128x512xbf16>
    %cst_135 = arith.constant dense<0.000000e+00> : vector<1x512xf32>
    %500 = tpu.matmul %498, %499, %cst_135 {dimension_numbers = #tpu.dot_dimension_numbers<[1], [0], [0], [1], [0, 0, 1, 1], [], []>} : vector<1x128xbf16>, vector<128x512xbf16>, vector<1x512xf32> -> vector<1x512xf32>
    %501 = arith.addf %497, %500 : vector<1x512xf32>
    %502 = vector.extract_strided_slice %501 {offsets = [0, 0], sizes = [1, 128], strides = [1, 1]} : vector<1x512xf32> to vector<1x128xf32>
    %503 = arith.negf %502 : vector<1x128xf32>
    %504 = math.exp %503 : vector<1x128xf32>
    %cst_136 = arith.constant 1.000000e+00 : f32
    %505 = vector.broadcast %cst_136 : f32 to vector<1x128xf32>
    %506 = arith.addf %505, %504 : vector<1x128xf32>
    %507 = arith.divf %505, %506 : vector<1x128xf32>
    %508 = vector.extract_strided_slice %501 {offsets = [0, 128], sizes = [1, 128], strides = [1, 1]} : vector<1x512xf32> to vector<1x128xf32>
    %509 = arith.negf %508 : vector<1x128xf32>
    %510 = math.exp %509 : vector<1x128xf32>
    %cst_137 = arith.constant 1.000000e+00 : f32
    %511 = vector.broadcast %cst_137 : f32 to vector<1x128xf32>
    %512 = arith.addf %511, %510 : vector<1x128xf32>
    %513 = arith.divf %511, %512 : vector<1x128xf32>
    %514 = vector.extract_strided_slice %501 {offsets = [0, 256], sizes = [1, 128], strides = [1, 1]} : vector<1x512xf32> to vector<1x128xf32>
    %515 = math.tanh %514 : vector<1x128xf32>
    %516 = vector.extract_strided_slice %501 {offsets = [0, 384], sizes = [1, 128], strides = [1, 1]} : vector<1x512xf32> to vector<1x128xf32>
    %517 = arith.negf %516 : vector<1x128xf32>
    %518 = math.exp %517 : vector<1x128xf32>
    %cst_138 = arith.constant 1.000000e+00 : f32
    %519 = vector.broadcast %cst_138 : f32 to vector<1x128xf32>
    %520 = arith.addf %519, %518 : vector<1x128xf32>
    %521 = arith.divf %519, %520 : vector<1x128xf32>
    %522 = arith.mulf %513, %495 : vector<1x128xf32>
    %523 = arith.mulf %507, %515 : vector<1x128xf32>
    %524 = arith.addf %522, %523 : vector<1x128xf32>
    %525 = math.tanh %524 : vector<1x128xf32>
    %526 = arith.mulf %521, %525 : vector<1x128xf32>
    %c14_i32 = arith.constant 14 : i32
    %527 = arith.addi %1, %c14_i32 : i32
    %528 = arith.cmpi slt, %527, %0 : i32
    %529 = arith.select %528, %526, %494 : vector<1x128xf32>
    %530 = arith.select %528, %524, %495 : vector<1x128xf32>
    %c14_139 = arith.constant 14 : index
    %c0_140 = arith.constant 0 : index
    %531 = vector.load %arg13[%c14_139, %c0_140] : memref<16x128xf32, #tpu.memory_space<vmem>>, vector<1x128xf32>
    tpu.vector_store %arg13[%c14_139, %c0_140], %529 {strides = array<i32>} : memref<16x128xf32, #tpu.memory_space<vmem>>, vector<1x128xf32>,
    %c15 = arith.constant 15 : index
    %c0_141 = arith.constant 0 : index
    %532 = vector.load %arg2[%c15, %c0_141] : memref<16x512xf32, #tpu.memory_space<vmem>>, vector<1x512xf32>
    %533 = arith.truncf %529 : vector<1x128xf32> to vector<1x128xbf16>
    %c0_142 = arith.constant 0 : index
    %c0_143 = arith.constant 0 : index
    %534 = vector.load %arg5[%c0_142, %c0_143] : memref<128x512xbf16, #tpu.memory_space<vmem>>, vector<128x512xbf16>
    %cst_144 = arith.constant dense<0.000000e+00> : vector<1x512xf32>
    %535 = tpu.matmul %533, %534, %cst_144 {dimension_numbers = #tpu.dot_dimension_numbers<[1], [0], [0], [1], [0, 0, 1, 1], [], []>} : vector<1x128xbf16>, vector<128x512xbf16>, vector<1x512xf32> -> vector<1x512xf32>
    %536 = arith.addf %532, %535 : vector<1x512xf32>
    %537 = vector.extract_strided_slice %536 {offsets = [0, 0], sizes = [1, 128], strides = [1, 1]} : vector<1x512xf32> to vector<1x128xf32>
    %538 = arith.negf %537 : vector<1x128xf32>
    %539 = math.exp %538 : vector<1x128xf32>
    %cst_145 = arith.constant 1.000000e+00 : f32
    %540 = vector.broadcast %cst_145 : f32 to vector<1x128xf32>
    %541 = arith.addf %540, %539 : vector<1x128xf32>
    %542 = arith.divf %540, %541 : vector<1x128xf32>
    %543 = vector.extract_strided_slice %536 {offsets = [0, 128], sizes = [1, 128], strides = [1, 1]} : vector<1x512xf32> to vector<1x128xf32>
    %544 = arith.negf %543 : vector<1x128xf32>
    %545 = math.exp %544 : vector<1x128xf32>
    %cst_146 = arith.constant 1.000000e+00 : f32
    %546 = vector.broadcast %cst_146 : f32 to vector<1x128xf32>
    %547 = arith.addf %546, %545 : vector<1x128xf32>
    %548 = arith.divf %546, %547 : vector<1x128xf32>
    %549 = vector.extract_strided_slice %536 {offsets = [0, 256], sizes = [1, 128], strides = [1, 1]} : vector<1x512xf32> to vector<1x128xf32>
    %550 = math.tanh %549 : vector<1x128xf32>
    %551 = vector.extract_strided_slice %536 {offsets = [0, 384], sizes = [1, 128], strides = [1, 1]} : vector<1x512xf32> to vector<1x128xf32>
    %552 = arith.negf %551 : vector<1x128xf32>
    %553 = math.exp %552 : vector<1x128xf32>
    %cst_147 = arith.constant 1.000000e+00 : f32
    %554 = vector.broadcast %cst_147 : f32 to vector<1x128xf32>
    %555 = arith.addf %554, %553 : vector<1x128xf32>
    %556 = arith.divf %554, %555 : vector<1x128xf32>
    %557 = arith.mulf %548, %530 : vector<1x128xf32>
    %558 = arith.mulf %542, %550 : vector<1x128xf32>
    %559 = arith.addf %557, %558 : vector<1x128xf32>
    %560 = math.tanh %559 : vector<1x128xf32>
    %561 = arith.mulf %556, %560 : vector<1x128xf32>
    %c15_i32 = arith.constant 15 : i32
    %562 = arith.addi %1, %c15_i32 : i32
    %563 = arith.cmpi slt, %562, %0 : i32
    %564 = arith.select %563, %561, %529 : vector<1x128xf32>
    %565 = arith.select %563, %559, %530 : vector<1x128xf32>
    %c15_148 = arith.constant 15 : index
    %c0_149 = arith.constant 0 : index
    %566 = vector.load %arg13[%c15_148, %c0_149] : memref<16x128xf32, #tpu.memory_space<vmem>>, vector<1x128xf32>
    tpu.vector_store %arg13[%c15_148, %c0_149], %564 {strides = array<i32>} : memref<16x128xf32, #tpu.memory_space<vmem>>, vector<1x128xf32>,
    %c0_150 = arith.constant 0 : index
    %c0_151 = arith.constant 0 : index
    %567 = vector.load %arg11[%c0_150, %c0_151] : memref<1x128xf32, #tpu.memory_space<vmem>>, vector<1x128xf32>
    tpu.vector_store %arg11[%c0_150, %c0_151], %564 {strides = array<i32>} : memref<1x128xf32, #tpu.memory_space<vmem>>, vector<1x128xf32>,
    %c0_152 = arith.constant 0 : index
    %c0_153 = arith.constant 0 : index
    %568 = vector.load %arg12[%c0_152, %c0_153] : memref<1x128xf32, #tpu.memory_space<vmem>>, vector<1x128xf32>
    tpu.vector_store %arg12[%c0_152, %c0_153], %565 {strides = array<i32>} : memref<1x128xf32, #tpu.memory_space<vmem>>, vector<1x128xf32>,
    %c0_154 = arith.constant 0 : index
    %c0_155 = arith.constant 0 : index
    %569 = vector.load %arg9[%c0_154, %c0_155] : memref<1x128xf32, #tpu.memory_space<vmem>>, vector<1x128xf32>
    tpu.vector_store %arg9[%c0_154, %c0_155], %564 {strides = array<i32>} : memref<1x128xf32, #tpu.memory_space<vmem>>, vector<1x128xf32>,
    %c0_156 = arith.constant 0 : index
    %c0_157 = arith.constant 0 : index
    %570 = vector.load %arg10[%c0_156, %c0_157] : memref<1x128xf32, #tpu.memory_space<vmem>>, vector<1x128xf32>
    tpu.vector_store %arg10[%c0_156, %c0_157], %565 {strides = array<i32>} : memref<1x128xf32, #tpu.memory_space<vmem>>, vector<1x128xf32>,
    %c0_158 = arith.constant 0 : index
    %c0_159 = arith.constant 0 : index
    %571 = vector.load %arg13[%c0_158, %c0_159] : memref<16x128xf32, #tpu.memory_space<vmem>>, vector<16x128xf32>
    %572 = arith.truncf %571 : vector<16x128xf32> to vector<16x128xbf16>
    %c0_160 = arith.constant 0 : index
    %c0_161 = arith.constant 0 : index
    %573 = vector.load %arg6[%c0_160, %c0_161] : memref<128x128xbf16, #tpu.memory_space<vmem>>, vector<128x128xbf16>
    %cst_162 = arith.constant dense<0.000000e+00> : vector<16x128xf32>
    %574 = tpu.matmul %572, %573, %cst_162 {dimension_numbers = #tpu.dot_dimension_numbers<[1], [0], [0], [1], [0, 0, 1, 1], [], []>} : vector<16x128xbf16>, vector<128x128xbf16>, vector<16x128xf32> -> vector<16x128xf32>
    %c0_163 = arith.constant 0 : index
    %c0_164 = arith.constant 0 : index
    %575 = vector.load %arg7[%c0_163, %c0_164] : memref<1x128xf32, #tpu.memory_space<vmem>>, vector<1x128xf32>
    %576 = vector.broadcast %575 : vector<1x128xf32> to vector<16x128xf32>
    %577 = arith.addf %574, %576 : vector<16x128xf32>
    %cst_165 = arith.constant dense<0xFF800000> : vector<16xf32>
    %578 = vector.multi_reduction <maximumf>, %577, %cst_165 [1] : vector<16x128xf32> to vector<16xf32>
    %579 = vector.shape_cast %578 : vector<16xf32> to vector<16x1xf32>
    %580 = vector.broadcast %579 : vector<16x1xf32> to vector<16x128xf32>
    %581 = arith.subf %577, %580 : vector<16x128xf32>
    %582 = math.exp %581 : vector<16x128xf32>
    %cst_166 = arith.constant dense<0.000000e+00> : vector<16xf32>
    %583 = vector.multi_reduction <add>, %582, %cst_166 [1] : vector<16x128xf32> to vector<16xf32>
    %584 = vector.shape_cast %583 : vector<16xf32> to vector<16x1xf32>
    %585 = math.log %584 : vector<16x1xf32>
    %586 = arith.addf %579, %585 : vector<16x1xf32>
    %587 = vector.broadcast %586 : vector<16x1xf32> to vector<16x128xf32>
    %588 = arith.subf %577, %587 : vector<16x128xf32>
    %c0_167 = arith.constant 0 : index
    %c0_168 = arith.constant 0 : index
    %589 = vector.load %arg8[%c0_167, %c0_168] : memref<16x128xf32, #tpu.memory_space<vmem>>, vector<16x128xf32>
    tpu.vector_store %arg8[%c0_167, %c0_168], %588 {strides = array<i32>} : memref<16x128xf32, #tpu.memory_space<vmem>>, vector<16x128xf32>,
    return
  }
  func.func @transform_0(%arg0: i32, %arg1: memref<1xi32, #tpu.memory_space<smem>>) -> (i32, i32) {
    %c0_i32 = arith.constant 0 : i32
    %c0_i32_0 = arith.constant 0 : i32
    return %arg0, %c0_i32 : i32, i32
  }
  func.func @transform_1(%arg0: i32, %arg1: memref<1xi32, #tpu.memory_space<smem>>) -> (i32, i32) {
    %c0_i32 = arith.constant 0 : i32
    %c0_i32_0 = arith.constant 0 : i32
    %c0_i32_1 = arith.constant 0 : i32
    return %c0_i32, %c0_i32_0 : i32, i32
  }
  func.func @transform_2(%arg0: i32, %arg1: memref<1xi32, #tpu.memory_space<smem>>) -> (i32, i32) {
    %c0_i32 = arith.constant 0 : i32
    %c0_i32_0 = arith.constant 0 : i32
    %c0_i32_1 = arith.constant 0 : i32
    return %c0_i32, %c0_i32_0 : i32, i32
  }
  func.func @transform_3(%arg0: i32, %arg1: memref<1xi32, #tpu.memory_space<smem>>) -> (i32, i32) {
    %c0_i32 = arith.constant 0 : i32
    %c0_i32_0 = arith.constant 0 : i32
    %c0_i32_1 = arith.constant 0 : i32
    return %c0_i32, %c0_i32_0 : i32, i32
  }
  func.func @transform_4(%arg0: i32, %arg1: memref<1xi32, #tpu.memory_space<smem>>) -> (i32, i32) {
    %c0_i32 = arith.constant 0 : i32
    %c0_i32_0 = arith.constant 0 : i32
    %c0_i32_1 = arith.constant 0 : i32
    return %c0_i32, %c0_i32_0 : i32, i32
  }
  func.func @transform_5(%arg0: i32, %arg1: memref<1xi32, #tpu.memory_space<smem>>) -> (i32, i32) {
    %c0_i32 = arith.constant 0 : i32
    %c0_i32_0 = arith.constant 0 : i32
    %c0_i32_1 = arith.constant 0 : i32
    return %c0_i32, %c0_i32_0 : i32, i32
  }
  func.func @transform_6(%arg0: i32, %arg1: memref<1xi32, #tpu.memory_space<smem>>) -> (i32, i32) {
    %c0_i32 = arith.constant 0 : i32
    %c0_i32_0 = arith.constant 0 : i32
    return %arg0, %c0_i32 : i32, i32
  }
  func.func @transform_7(%arg0: i32, %arg1: memref<1xi32, #tpu.memory_space<smem>>) -> (i32, i32) {
    %c0_i32 = arith.constant 0 : i32
    %c0_i32_0 = arith.constant 0 : i32
    %c0_i32_1 = arith.constant 0 : i32
    return %c0_i32, %c0_i32_0 : i32, i32
  }
  func.func @transform_8(%arg0: i32, %arg1: memref<1xi32, #tpu.memory_space<smem>>) -> (i32, i32) {
    %c0_i32 = arith.constant 0 : i32
    %c0_i32_0 = arith.constant 0 : i32
    %c0_i32_1 = arith.constant 0 : i32
    return %c0_i32, %c0_i32_0 : i32, i32
  }
}

</mosaic_0001>

<bundles_post_ra>
// kernel: _lstm_pallas.1
= control target key start
LH: loop header
LB: loop body
LE: loop exit
PB: predicated region body
PF: predicated region fallthrough
CT: control target
= control target key end

     0   :  { %16 = vsyncpa [#allocation8], 0  ;;  %s8254_s0 = inlined_call_operand.<no memory space> [shape: s32[1], index: 0, kind: input, shape index: {}]   ;;  %s8255_s1 = inlined_call_operand.hbm [shape: f32[16,512], index: 1, kind: input, shape index: {}]   ;;  %s8256_s2 = inlined_call_operand.vmem [shape: f32[1,128], index: 2, kind: input, shape index: {}]   ;;  %s8257_s3 = inlined_call_operand.vmem [shape: f32[1,128], index: 3, kind: input, shape index: {}]   ;;  %s8258_s4 = inlined_call_operand.hbm [shape: bf16[128,512], index: 4, kind: input, shape index: {}]   ;;  %s8259_s5 = inlined_call_operand.hbm [shape: bf16[128,128], index: 5, kind: input, shape index: {}]   ;;  %s8260_s6 = inlined_call_operand.vmem [shape: f32[1,128], index: 6, kind: input, shape index: {}]   ;;  %s8261_s7 = inlined_call_operand.hbm [shape: f32[16,128], index: 7, kind: output, shape index: {0}]   ;;  %s8262_s8 = inlined_call_operand.hbm [shape: f32[1,128], index: 8, kind: output, shape index: {1}]   ;;  %s8263_s9 = inlined_call_operand.hbm [shape: f32[1,128], index: 9, kind: output, shape index: {2}]  }
   0x1   :  { %17 = vsyncpa [#allocation11], 0 }
   0x2   :  { %18 = vsyncpa [#allocation9], 0 }
   0x3   :  { %19 = vsyncpa [#allocation15], 0  ;;  %s7042_s30 = smov [#allocation10]   ;;  %s6902_s13 = scalar_lea.hbm %s8258_s4, 4096 }
   0x4   :  { %s41_s10 = sshll.u32 %s7042_s30, 4  ;;  %p6903_p0 = scmp.ne.s32.totalorder %s8258_s4, %s6902_s13  ;;  %s42_s10 = int_to_ptr.vmem [resolvable:$true] %s41_s10 }
   0x5   :  { %p6906_p1 = scmp.lt.u32.totalorder %s6902_s13, %s8258_s4 }
   0x7   :  { %p6908_p2 = pnand %p6906_p1, %p6903_p0 }
   0x9   :  { %6911 = shalt.err (!%p6908_p2)
}
   0xa   :  { %s6912_s18 = scalar_lea.vmem %s42_s10, 4096  ;;  %p6917_p4 = scmp.lt.s32.totalorder %s42_s10, %s42_s10 }
   0xb   :  { %p6913_p3 = scmp.ne.s32.totalorder %s42_s10, %s6912_s18  ;;  %p6918_p5 = scmp.lt.s32.totalorder %s6912_s18, %s6912_s18 }
   0xd   :  { %p6919_p6 = por %p6918_p5, %p6917_p4 }
   0xf   :  { %p6920_p7 = pnand %p6919_p6, %p6913_p3 }
  0x11   :  { %6923 = shalt.err (!%p6920_p7)
}
  0x12   :  { %s7043_s19 = smov 256   ;;  %s7044_s20 = smov 16  }
  0x13   :  { %47 = dma.hbm_to_vmem [thread:$0]  %s8258_s4, 4096, %s42_s10, [#allocation11], %s7043_s19, %s7043_s19, %s7044_s20  }
  0x14   :  { %s7045_s23 = smov [#allocation7]   ;;  %s6924_s27 = scalar_lea.hbm %s8255_s1, 1024 }
  0x15   :  { %s25_s24 = sshll.u32 %s7045_s23, 4  ;;  %p6925_p8 = scmp.ne.s32.totalorder %s8255_s1, %s6924_s27  ;;  %s26_s24 = int_to_ptr.vmem [resolvable:$true] %s25_s24 }
  0x16   :  { %p6928_p9 = scmp.lt.u32.totalorder %s6924_s27, %s8255_s1 }
  0x18   :  { %p6930_p10 = pnand %p6928_p9, %p6925_p8 }
  0x1a   :  { %6933 = shalt.err (!%p6930_p10)
}
  0x1b   :  { %s6934_s12 = scalar_lea.vmem %s26_s24, 1024  ;;  %p6939_p12 = scmp.lt.s32.totalorder %s26_s24, %s26_s24 }
  0x1c   :  { %p6935_p11 = scmp.ne.s32.totalorder %s26_s24, %s6934_s12  ;;  %p6940_p13 = scmp.lt.s32.totalorder %s6934_s12, %s6934_s12 }
  0x1e   :  { %p6941_p0 = por %p6940_p13, %p6939_p12 }
  0x20   :  { %p6942_p1 = pnand %p6941_p0, %p6935_p11 }
  0x22   :  { %6945 = shalt.err (!%p6942_p1)
}
  0x23   :  { %s7046_s4 = smov 512   ;;  %s7047_s10 = smov 32  }
  0x24   :  { %31 = dma.hbm_to_vmem [thread:$0]  %s8255_s1, 1024, %s26_s24, [#allocation8], %s7046_s4, %s7046_s4, %s7047_s10  }
  0x25   :  { %s7048_s15 = smov [#allocation12]   ;;  %s6946_s19 = scalar_lea.hbm %s8259_s5, 1024 }
  0x26   :  { %s53_s16 = sshll.u32 %s7048_s15, 4  ;;  %p6947_p2 = scmp.ne.s32.totalorder %s8259_s5, %s6946_s19  ;;  %s54_s16 = int_to_ptr.vmem [resolvable:$true] %s53_s16 }
  0x27   :  { %p6950_p3 = scmp.lt.u32.totalorder %s6946_s19, %s8259_s5 }
  0x29   :  { %p6952_p4 = pnand %p6950_p3, %p6947_p2 }
  0x2b   :  { %6955 = shalt.err (!%p6952_p4)
}
  0x2c   :  { %s6956_s25 = scalar_lea.vmem %s54_s16, 1024  ;;  %p6961_p6 = scmp.lt.s32.totalorder %s54_s16, %s54_s16 }
  0x2d   :  { %p6957_p5 = scmp.ne.s32.totalorder %s54_s16, %s6956_s25  ;;  %p6962_p7 = scmp.lt.s32.totalorder %s6956_s25, %s6956_s25 }
  0x2f   :  { %p6963_p8 = por %p6962_p7, %p6961_p6 }
  0x31   :  { %p6964_p9 = pnand %p6963_p8, %p6957_p5 }
  0x33   :  { %6967 = shalt.err (!%p6964_p9)
}
  0x34   :  { %s7049_s1 = smov 64   ;;  %s7050_s24 = smov 4  }
  0x35   :  { %59 = dma.hbm_to_vmem [thread:$0]  %s8259_s5, 1024, %s54_s16, [#allocation11], %s7049_s1, %s7049_s1, %s7050_s24  }
  0x36   :  { %7034 = dma.done.wait [#allocation8], 1024  }
  0x37   :  { %7035 = vsyncadd [#allocation8], 4294966272 }
  0x38   :  { %7036 = dma.done.wait [#allocation11], 5120  }
  0x39   :  { %7037 = vsyncadd [#allocation11], 4294962176  ;;  %v7051_v0 = vmov 0   ;;  %v7148_v1 = vld [vmem:[#allocation10 + $0x4] ss:$16 sps:$4 sm:$0xff]   ;;  %v369_v39 = vlaneseq  ;;  %p5841_p10 = scmp.gt.s32.totalorder %s8254_s0, 0 }
  0x3a   :  { %310 = vmatprep.mubr.bf16.mxu0 %v7051_v0  ;;  %351 = vmatprep.mubr.bf16.mxu1 %v7051_v0  ;;  %v7150_v2 = vld [vmem:[#allocation10 + $0xc] ss:$16 sps:$4 sm:$0xff]   ;;  %v7153_v3 = vld [vmem:[#allocation10] ss:$16 sps:$4 sm:$0xff]   ;;  %v7155_v4 = vld [vmem:[#allocation10 + $0x8] ss:$16 sps:$4 sm:$0xff]  }
  0x3b   :  { %278 = vmatprep.subr.bf16.mxu0 %v7148_v1  ;;  %319 = vmatprep.subr.bf16.mxu1 %v7150_v2  ;;  %v7158_v5 = vld [vmem:[#allocation10 + $0x24] ss:$16 sps:$4 sm:$0xff]   ;;  %v7162_v6 = vld [vmem:[#allocation10 + $0x2c] ss:$16 sps:$4 sm:$0xff]   ;;  %v7164_v7 = vld [vmem:[#allocation10 + $0x20] ss:$16 sps:$4 sm:$0xff]  }
  0x3c   :  { %279 = vmatpush1.bf16.msra.mxu0 %v7153_v3  ;;  %320 = vmatpush1.bf16.msra.mxu1 %v7155_v4  ;;  %v7167_v8 = vld [vmem:[#allocation10 + $0x28] ss:$16 sps:$4 sm:$0xff]   ;;  %v7170_v9 = vld [vmem:[#allocation10 + $0x44] ss:$16 sps:$4 sm:$0xff]   ;;  %v7172_v10 = vld [vmem:[#allocation10 + $0x4c] ss:$16 sps:$4 sm:$0xff]  }
  0x3d   :  { %280 = vmatprep.subr.bf16.mxu0 %v7158_v5  ;;  %321 = vmatprep.subr.bf16.mxu1 %v7162_v6  ;;  %v7174_v11 = vld [vmem:[#allocation10 + $0x40] ss:$16 sps:$4 sm:$0xff]   ;;  %v7176_v12 = vld [vmem:[#allocation10 + $0x48] ss:$16 sps:$4 sm:$0xff]   ;;  %v7180_v13 = vld [vmem:[#allocation10 + $0x64] ss:$16 sps:$4 sm:$0xff]  }
  0x3e   :  { %v7184_v14 = vld [vmem:[#allocation10 + $0x6c] ss:$16 sps:$4 sm:$0xff]   ;;  %v7186_v15 = vld [vmem:[#allocation10 + $0x60] ss:$16 sps:$4 sm:$0xff]   ;;  %v7190_v16 = vld [vmem:[#allocation10 + $0x68] ss:$16 sps:$4 sm:$0xff]  }
  0x3f   :  { %v7192_v17 = vld [vmem:[#allocation10 + $0x84] ss:$16 sps:$4 sm:$0xff]   ;;  %v7196_v18 = vld [vmem:[#allocation10 + $0x8c] ss:$16 sps:$4 sm:$0xff]   ;;  %v7198_v19 = vld [vmem:[#allocation10 + $0x80] ss:$16 sps:$4 sm:$0xff]  }
  0x40   :  { %281 = vmatpush1.bf16.msra.mxu0 %v7164_v7  ;;  %322 = vmatpush1.bf16.msra.mxu1 %v7167_v8  ;;  %v7200_v20 = vld [vmem:[#allocation10 + $0x88] ss:$16 sps:$4 sm:$0xff]   ;;  %v7204_v21 = vld [vmem:[#allocation10 + $0xa4] ss:$16 sps:$4 sm:$0xff]   ;;  %v7208_v22 = vld [vmem:[#allocation10 + $0xac] ss:$16 sps:$4 sm:$0xff]  }
  0x41   :  { %282 = vmatprep.subr.bf16.mxu0 %v7170_v9  ;;  %323 = vmatprep.subr.bf16.mxu1 %v7172_v10  ;;  %v7210_v23 = vld [vmem:[#allocation10 + $0xa0] ss:$16 sps:$4 sm:$0xff]   ;;  %v7214_v24 = vld [vmem:[#allocation10 + $0xa8] ss:$16 sps:$4 sm:$0xff]   ;;  %v7216_v25 = vld [vmem:[#allocation10 + $0xc4] ss:$16 sps:$4 sm:$0xff]  }
  0x42   :  { %v7220_v26 = vld [vmem:[#allocation10 + $0xcc] ss:$16 sps:$4 sm:$0xff]   ;;  %v7225_v28 = vld [vmem:[#allocation10 + $0xc0] ss:$16 sps:$4 sm:$0xff]   ;;  %v7227_v29 = vld [vmem:[#allocation10 + $0xc8] ss:$16 sps:$4 sm:$0xff]  }
  0x43   :  { %v78_v27 = vld [vmem:[%s8256_s2] sm:$0x1]  ;;  %v7229_v30 = vld [vmem:[#allocation10 + $0xe4] ss:$16 sps:$4 sm:$0xff]   ;;  %v7237_v32 = vld [vmem:[#allocation10 + $0xe0] ss:$16 sps:$4 sm:$0xff]  }
  0x44   :  { %283 = vmatpush1.bf16.msra.mxu0 %v7174_v11  ;;  %324 = vmatpush1.bf16.msra.mxu1 %v7176_v12  ;;  %79 = vst [vmem:[#allocation2] sm:$0x1] %v78_v27  ;;  %v7231_v31 = vld [vmem:[#allocation10 + $0xec] ss:$16 sps:$4 sm:$0xff]   ;;  %v7239_v33 = vld [vmem:[#allocation10 + $0xe8] ss:$16 sps:$4 sm:$0xff]  }
  0x45   :  { %284 = vmatprep.subr.bf16.mxu0 %v7180_v13  ;;  %325 = vmatprep.subr.bf16.mxu1 %v7184_v14  ;;  %v80_v36 = vld [vmem:[%s8257_s3] sm:$0x1]  ;;  %v7052_v37 = vmov 1966171168   ;;  %v370_v41 = vshrl.u32 %v369_v39, 7  ;;  %p5877_p11 = scmp.gt.s32.totalorder %s8254_s0, 1 }
  0x46   :  { %81 = vst [vmem:[#allocation3] sm:$0x1] %v80_v36  ;;  %v367_v38 = vunpack.c.l.s4 %v7052_v37  ;;  %v84_v56 = vld [vmem:[#allocation7] ss:$8 sm:$0xf]  ;;  %p5913_p12 = scmp.gt.s32.totalorder %s8254_s0, 2 }
  0x47   :  { %s422_s11 = scalar_select %p5841_p10, 1, 0  ;;  %vm7054_vm15 = vmmov 0  }
  0x48   :  { %285 = vmatpush1.bf16.msra.mxu0 %v7186_v15  ;;  %326 = vmatpush1.bf16.msra.mxu1 %v7190_v16  ;;  %v368_v40 = vunpack.c.0.s8 %v367_v38  ;;  %s768_s10 = scalar_select %p5877_p11, 1, 0 }
  0x49   :  { %286 = vmatprep.subr.bf16.mxu0 %v7192_v17  ;;  %327 = vmatprep.subr.bf16.mxu1 %v7196_v18  ;;  %s1114_s15 = scalar_select %p5913_p12, 1, 0 }
  0x4a   :  { %v7290_v44 = vsub.s32 %v368_v40, %v370_v41  ;;  %p5949_p13 = scmp.gt.s32.totalorder %s8254_s0, 3  ;;  %p5985_p0 = scmp.gt.s32.totalorder %s8254_s0, 4 }
  0x4b   :  { %v7245_v34 = vld [vmem:[#allocation2] sm:$0x1]  ;;  %p6021_p1 = scmp.gt.s32.totalorder %s8254_s0, 5  ;;  %p6057_p2 = scmp.gt.s32.totalorder %s8254_s0, 6 }
  0x4c   :  { %287 = vmatpush1.bf16.msra.mxu0 %v7198_v19  ;;  %328 = vmatpush1.bf16.msra.mxu1 %v7200_v20  ;;  %v85_v35 = vpack.c.bf16 %v7245_v34, %v7245_v34  ;;  %s1460_s18 = scalar_select %p5949_p13, 1, 0 }
  0x4d   :  { %288 = vmatprep.subr.bf16.mxu0 %v7204_v21  ;;  %329 = vmatprep.subr.bf16.mxu1 %v7208_v22  ;;  %v83_v41 = vld [vmem:[#allocation3] sm:$0x1]  ;;  %s1806_s21 = scalar_select %p5985_p0, 1, 0 }
  0x4e   :  { %s2152_s25 = scalar_select %p6021_p1, 1, 0 }
  0x4f   :  { %s2498_s26 = scalar_select %p6057_p2, 1, 0 }
  0x50   :  { %289 = vmatpush1.bf16.msra.mxu0 %v7210_v23  ;;  %330 = vmatpush1.bf16.msra.mxu1 %v7214_v24  ;;  %p6093_p3 = scmp.gt.s32.totalorder %s8254_s0, 7  ;;  %p6129_p4 = scmp.gt.s32.totalorder %s8254_s0, 8 }
  0x51   :  { %290 = vmatprep.subr.bf16.mxu0 %v7216_v25  ;;  %331 = vmatprep.subr.bf16.mxu1 %v7220_v26  ;;  %p6165_p5 = scmp.gt.s32.totalorder %s8254_s0, 9  ;;  %p6201_p6 = scmp.gt.s32.totalorder %s8254_s0, 10 }
  0x52   :  { %s2844_s28 = scalar_select %p6093_p3, 1, 0 }
  0x53   :  { %s3190_s3 = scalar_select %p6129_p4, 1, 0 }
  0x54   :  { %291 = vmatpush1.bf16.msra.mxu0 %v7225_v28  ;;  %332 = vmatpush1.bf16.msra.mxu1 %v7227_v29  ;;  %s3536_s12 = scalar_select %p6165_p5, 1, 0 }
  0x55   :  { %292 = vmatprep.subr.bf16.mxu0 %v7229_v30  ;;  %333 = vmatprep.subr.bf16.mxu1 %v7231_v31  ;;  %s3882_s13 = scalar_select %p6201_p6, 1, 0 }
  0x56   :  { %p6237_p7 = scmp.gt.s32.totalorder %s8254_s0, 11  ;;  %p6273_p8 = scmp.gt.s32.totalorder %s8254_s0, 12 }
  0x57   :  { %p6309_p9 = scmp.gt.s32.totalorder %s8254_s0, 13  ;;  %p6345_p10 = scmp.gt.s32.totalorder %s8254_s0, 14 }
  0x58   :  { %293 = vmatpush1.bf16.msra.mxu0 %v7237_v32  ;;  %334 = vmatpush1.bf16.msra.mxu1 %v7239_v33  ;;  %s4228_s16 = scalar_select %p6237_p7, 1, 0 }
  0x59   :  { %623 = vmatprep.subr.bf16.mxu0 %v7148_v1  ;;  %664 = vmatprep.subr.bf16.mxu1 %v7150_v2  ;;  %s4574_s19 = scalar_select %p6273_p8, 1, 0 }
  0x5a   :  { %s4920_s22 = scalar_select %p6309_p9, 1, 0 }
  0x5b   :  { %311 = vmatmul.mubr.bf16.vlgmr.msra.gmra.mrb[0].mxu0 %v85_v35  ;;  %352 = vmatmul.mubr.bf16.vlgmr.msra.gmra.mrb[0].mxu1 %v85_v35  ;;  %s5266_s1 = scalar_select %p6345_p10, 1, 0 }
  0x5c   :  { %624 = vmatpush1.bf16.msra.mxu0 %v7153_v3  ;;  %665 = vmatpush1.bf16.msra.mxu1 %v7155_v4  ;;  %p6381_p11 = scmp.gt.s32.totalorder %s8254_s0, 15 }
  0x5d   :  { %625 = vmatprep.subr.bf16.mxu0 %v7158_v5  ;;  %666 = vmatprep.subr.bf16.mxu1 %v7162_v6 }
  0x5e   :  { %655 = vmatprep.mubr.bf16.mxu0 %v7051_v0  ;;  %696 = vmatprep.mubr.bf16.mxu1 %v7051_v0  ;;  %s5612_s27 = scalar_select %p6381_p11, 1, 0 }
  0x60   :  { %626 = vmatpush1.bf16.msra.mxu0 %v7164_v7  ;;  %667 = vmatpush1.bf16.msra.mxu1 %v7167_v8 }
  0x61   :  { %627 = vmatprep.subr.bf16.mxu0 %v7170_v9  ;;  %668 = vmatprep.subr.bf16.mxu1 %v7172_v10 }
  0x64   :  { %628 = vmatpush1.bf16.msra.mxu0 %v7174_v11  ;;  %669 = vmatpush1.bf16.msra.mxu1 %v7176_v12 }
  0x65   :  { %629 = vmatprep.subr.bf16.mxu0 %v7180_v13  ;;  %670 = vmatprep.subr.bf16.mxu1 %v7184_v14 }
  0x68   :  { %630 = vmatpush1.bf16.msra.mxu0 %v7186_v15  ;;  %671 = vmatpush1.bf16.msra.mxu1 %v7190_v16 }
  0x69   :  { %631 = vmatprep.subr.bf16.mxu0 %v7192_v17  ;;  %672 = vmatprep.subr.bf16.mxu1 %v7196_v18 }
  0x6c   :  { %632 = vmatpush1.bf16.msra.mxu0 %v7198_v19  ;;  %673 = vmatpush1.bf16.msra.mxu1 %v7200_v20 }
  0x6d   :  { %633 = vmatprep.subr.bf16.mxu0 %v7204_v21  ;;  %674 = vmatprep.subr.bf16.mxu1 %v7208_v22 }
  0x70   :  { %634 = vmatpush1.bf16.msra.mxu0 %v7210_v23  ;;  %675 = vmatpush1.bf16.msra.mxu1 %v7214_v24 }
  0x71   :  { %635 = vmatprep.subr.bf16.mxu0 %v7216_v25  ;;  %676 = vmatprep.subr.bf16.mxu1 %v7220_v26 }
  0x74   :  { %636 = vmatpush1.bf16.msra.mxu0 %v7225_v28  ;;  %677 = vmatpush1.bf16.msra.mxu1 %v7227_v29 }
  0x75   :  { %637 = vmatprep.subr.bf16.mxu0 %v7229_v30  ;;  %678 = vmatprep.subr.bf16.mxu1 %v7231_v31 }
  0x78   :  { %638 = vmatpush1.bf16.msra.mxu0 %v7237_v32  ;;  %679 = vmatpush1.bf16.msra.mxu1 %v7239_v33 }
  0x79   :  { %969 = vmatprep.subr.bf16.mxu0 %v7148_v1  ;;  %1010 = vmatprep.subr.bf16.mxu1 %v7150_v2 }
 0x12e   :  { %v312_v42 = vpop.f32.mrb[0].mxu0  ;;  %v353_v43 = vpop.f32.mrb[0].mxu1 }
 0x12f   :  { %v314_v45 = vpop.f32.mrb[1].mxu0  ;;  %v355_v46 = vpop.f32.mrb[1].mxu1 }
 0x130   :  { %v364_v47 = vcombine.low %v312_v42, %v314_v45  ;;  %v365_v48 = vcombine.low %v353_v43, %v355_v46  ;;  %v316_v49 = vpop.f32.mrb[2].mxu0  ;;  %v357_v50 = vpop.f32.mrb[2].mxu1  ;;  %v423_v43 = vstv %s422_s11 }
 0x131   :  { %v317_v51 = vpop.f32.mrb[3].mxu0  ;;  %v358_v52 = vpop.f32.mrb[3].mxu1  ;;  %vm424_vm0 = vcmp.eq.s32.totalorder %v423_v43, 1 }
 0x132   :  { %v372_v53 = vrot.slane %v364_v47, %v7290_v44  ;;  %v379_v54 = vrot.slane %v365_v48, %v7290_v44 }
 0x134   :  { %v380_v55 = vcombine.low %v372_v53, %v379_v54 }
 0x136   :  { %v387_v57 = vrot.slane %v380_v55, %v7290_v44 }
 0x138   :  { %v389_v58 = vadd.f32 %v387_v57, %v84_v56 }
 0x13a   :  { %v5838_v59 = vmul.f32 -1.442695, %v389_v58  ;;  %v397_v60 = vrot.slane %v389_v58, 1  ;;  %v408_v62 = vrot.slane %v389_v58, 3  ;;  %v405_v35 = vrot.slane %v389_v58, 2 }
 0x13c   :  { %6638 = vpow2.f32 %v5838_v59  ;;  %v5839_v61 = vmul.f32 -1.442695, %v397_v60  ;;  %v5840_v63 = vmul.f32 -1.442695, %v408_v62 }
 0x13e   :  { %6640 = vpow2.f32 %v5839_v61 }
 0x13f   :  { %6642 = vpow2.f32 %v5840_v63 }
 0x146   :  { %v6639_v27 = vpop.eup %6638 }
 0x147   :  { %v393_v36 = vadd.f32 1.0, %v6639_v27 }
 0x148   :  { %v6641_v37 = vpop.eup %6640 }
 0x149   :  { %6644 = vrcp.f32 %v393_v36  ;;  %v402_v38 = vadd.f32 1.0, %v6641_v37  ;;  %v6643_v39 = vpop.eup %6642 }
 0x14a   :  { %6646 = vtanh.f32 %v405_v35  ;;  %v413_v46 = vadd.f32 1.0, %v6643_v39 }
 0x14b   :  { %6648 = vrcp.f32 %v402_v38  ;;  %v429_v38 = vld [vmem:[#allocation7 + $0x1] ss:$8 sm:$0xf] }
 0x14c   :  { %6650 = vrcp.f32 %v413_v46 }
 0x153   :  { %v6645_v40 = vpop.eup %6644 }
 0x154   :  { %v6647_v42 = vpop.eup %6646 }
 0x155   :  { %v6649_v45 = vpop.eup %6648  ;;  %v417_v48 = vmul.f32 %v6647_v42, %v6645_v40 }
 0x156   :  { %v416_v47 = vmul.f32 %v6649_v45, %v83_v41  ;;  %v6651_v51 = vpop.eup %6650 }
 0x158   :  { %v418_v49 = vadd.f32 %v417_v48, %v416_v47 }
 0x15a   :  { %6652 = vtanh.f32 %v418_v49  ;;  %v7298_v50 = vsel %vm424_vm0, %v418_v49, %v83_v41 }
 0x164   :  { %v6653_v52 = vpop.eup %6652 }
 0x165   :  { %v420_v53 = vmul.f32 %v6653_v52, %v6651_v51 }
 0x167   :  { %v7301_v54 = vsel %vm424_vm0, %v420_v53, %v7245_v34 }
 0x168   :  { %427 = vst [vmem:[#allocation4] sm:$0x1] %v7301_v54  ;;  %v430_v55 = vpack.c.bf16 %v7301_v54, %v7301_v54 }
 0x16a   :  { %656 = vmatmul.mubr.bf16.vlgmr.msra.gmra.mrb[4].mxu0 %v430_v55  ;;  %697 = vmatmul.mubr.bf16.vlgmr.msra.gmra.mrb[4].mxu1 %v430_v55  ;;  %v769_v55 = vstv %s768_s10 }
 0x16b   :  { %970 = vmatpush1.bf16.msra.mxu0 %v7153_v3  ;;  %1011 = vmatpush1.bf16.msra.mxu1 %v7155_v4  ;;  %vm770_vm1 = vcmp.eq.s32.totalorder %v769_v55, 1  ;;  %v7429_v55 = vld [vmem:[#allocation10 + $0x4c] ss:$16 sps:$4 sm:$0xff]  }
 0x16c   :  { %971 = vmatprep.subr.bf16.mxu0 %v7158_v5  ;;  %1012 = vmatprep.subr.bf16.mxu1 %v7162_v6 }
 0x16d   :  { %1001 = vmatprep.mubr.bf16.mxu0 %v7051_v0  ;;  %1042 = vmatprep.mubr.bf16.mxu1 %v7051_v0 }
 0x16f   :  { %972 = vmatpush1.bf16.msra.mxu0 %v7164_v7  ;;  %1013 = vmatpush1.bf16.msra.mxu1 %v7167_v8 }
 0x170   :  { %973 = vmatprep.subr.bf16.mxu0 %v7170_v9  ;;  %1014 = vmatprep.subr.bf16.mxu1 %v7172_v10 }
 0x173   :  { %974 = vmatpush1.bf16.msra.mxu0 %v7174_v11  ;;  %1015 = vmatpush1.bf16.msra.mxu1 %v7176_v12 }
 0x174   :  { %975 = vmatprep.subr.bf16.mxu0 %v7180_v13  ;;  %1016 = vmatprep.subr.bf16.mxu1 %v7184_v14 }
 0x177   :  { %976 = vmatpush1.bf16.msra.mxu0 %v7186_v15  ;;  %1017 = vmatpush1.bf16.msra.mxu1 %v7190_v16 }
 0x178   :  { %977 = vmatprep.subr.bf16.mxu0 %v7192_v17  ;;  %1018 = vmatprep.subr.bf16.mxu1 %v7196_v18 }
 0x17b   :  { %978 = vmatpush1.bf16.msra.mxu0 %v7198_v19  ;;  %1019 = vmatpush1.bf16.msra.mxu1 %v7200_v20 }
 0x17c   :  { %979 = vmatprep.subr.bf16.mxu0 %v7204_v21  ;;  %1020 = vmatprep.subr.bf16.mxu1 %v7208_v22 }
 0x17f   :  { %980 = vmatpush1.bf16.msra.mxu0 %v7210_v23  ;;  %1021 = vmatpush1.bf16.msra.mxu1 %v7214_v24 }
 0x180   :  { %981 = vmatprep.subr.bf16.mxu0 %v7216_v25  ;;  %1022 = vmatprep.subr.bf16.mxu1 %v7220_v26 }
 0x183   :  { %982 = vmatpush1.bf16.msra.mxu0 %v7225_v28  ;;  %1023 = vmatpush1.bf16.msra.mxu1 %v7227_v29 }
 0x184   :  { %983 = vmatprep.subr.bf16.mxu0 %v7229_v30  ;;  %1024 = vmatprep.subr.bf16.mxu1 %v7231_v31 }
 0x187   :  { %984 = vmatpush1.bf16.msra.mxu0 %v7237_v32  ;;  %1025 = vmatpush1.bf16.msra.mxu1 %v7239_v33 }
 0x188   :  { %1315 = vmatprep.subr.bf16.mxu0 %v7148_v1  ;;  %1356 = vmatprep.subr.bf16.mxu1 %v7150_v2 }
 0x23d   :  { %v657_v34 = vpop.f32.mrb[4].mxu0  ;;  %v698_v56 = vpop.f32.mrb[4].mxu1 }
 0x23e   :  { %v659_v57 = vpop.f32.mrb[5].mxu0  ;;  %v700_v58 = vpop.f32.mrb[5].mxu1 }
 0x23f   :  { %v709_v59 = vcombine.low %v657_v34, %v659_v57  ;;  %v710_v60 = vcombine.low %v698_v56, %v700_v58  ;;  %v661_v61 = vpop.f32.mrb[6].mxu0  ;;  %v702_v62 = vpop.f32.mrb[6].mxu1 }
 0x240   :  { %v662_v63 = vpop.f32.mrb[7].mxu0  ;;  %v703_v27 = vpop.f32.mrb[7].mxu1 }
 0x241   :  { %v717_v35 = vrot.slane %v709_v59, %v7290_v44  ;;  %v724_v36 = vrot.slane %v710_v60, %v7290_v44 }
 0x243   :  { %v725_v37 = vcombine.low %v717_v35, %v724_v36 }
 0x245   :  { %v732_v1 = vrot.slane %v725_v37, %v7290_v44 }
 0x247   :  { %v734_v39 = vadd.f32 %v732_v1, %v429_v38 }
 0x249   :  { %v5874_v2 = vmul.f32 -1.442695, %v734_v39  ;;  %v742_v40 = vrot.slane %v734_v39, 1  ;;  %v753_v42 = vrot.slane %v734_v39, 3  ;;  %v750_v46 = vrot.slane %v734_v39, 2 }
 0x24b   :  { %6654 = vpow2.f32 %v5874_v2  ;;  %v5875_v41 = vmul.f32 -1.442695, %v742_v40  ;;  %v5876_v43 = vmul.f32 -1.442695, %v753_v42 }
 0x24d   :  { %6656 = vpow2.f32 %v5875_v41 }
 0x24e   :  { %6658 = vpow2.f32 %v5876_v43  ;;  %v7406_v43 = vld [vmem:[#allocation10 + $0x4] ss:$16 sps:$4 sm:$0xff]  }
 0x255   :  { %v6655_v45 = vpop.eup %6654 }
 0x256   :  { %v738_v47 = vadd.f32 1.0, %v6655_v45  ;;  %v7408_v45 = vld [vmem:[#allocation10 + $0xc] ss:$16 sps:$4 sm:$0xff]  }
 0x257   :  { %v6657_v48 = vpop.eup %6656 }
 0x258   :  { %6660 = vrcp.f32 %v738_v47  ;;  %v747_v49 = vadd.f32 1.0, %v6657_v48  ;;  %v6659_v51 = vpop.eup %6658  ;;  %v7412_v47 = vld [vmem:[#allocation10 + $0x8] ss:$16 sps:$4 sm:$0xff]   ;;  %v7418_v48 = vld [vmem:[#allocation10 + $0x20] ss:$16 sps:$4 sm:$0xff]  }
 0x259   :  { %6662 = vtanh.f32 %v750_v46  ;;  %v758_v56 = vadd.f32 1.0, %v6659_v51  ;;  %v7410_v46 = vld [vmem:[#allocation10] ss:$16 sps:$4 sm:$0xff]   ;;  %v7422_v51 = vld [vmem:[#allocation10 + $0x28] ss:$16 sps:$4 sm:$0xff]  }
 0x25a   :  { %6664 = vrcp.f32 %v747_v49  ;;  %v7420_v49 = vld [vmem:[#allocation10 + $0x24] ss:$16 sps:$4 sm:$0xff]  }
 0x25b   :  { %6666 = vrcp.f32 %v758_v56  ;;  %v7436_v56 = vld [vmem:[#allocation10 + $0x48] ss:$16 sps:$4 sm:$0xff]  }
 0x262   :  { %v6661_v52 = vpop.eup %6660 }
 0x263   :  { %v6663_v53 = vpop.eup %6662 }
 0x264   :  { %v6665_v34 = vpop.eup %6664  ;;  %v762_v58 = vmul.f32 %v6663_v53, %v6661_v52  ;;  %v7424_v52 = vld [vmem:[#allocation10 + $0x2c] ss:$16 sps:$4 sm:$0xff]   ;;  %v7426_v53 = vld [vmem:[#allocation10 + $0x44] ss:$16 sps:$4 sm:$0xff]  }
 0x265   :  { %v761_v57 = vmul.f32 %v6665_v34, %v7298_v50  ;;  %v6667_v61 = vpop.eup %6666  ;;  %v7434_v34 = vld [vmem:[#allocation10 + $0x40] ss:$16 sps:$4 sm:$0xff]  }
 0x267   :  { %v763_v59 = vadd.f32 %v762_v58, %v761_v57  ;;  %v7440_v57 = vld [vmem:[#allocation10 + $0x64] ss:$16 sps:$4 sm:$0xff]   ;;  %v7442_v58 = vld [vmem:[#allocation10 + $0x6c] ss:$16 sps:$4 sm:$0xff]  }
 0x269   :  { %6668 = vtanh.f32 %v763_v59  ;;  %v7348_v60 = vsel %vm770_vm1, %v763_v59, %v7298_v50  ;;  %v7446_v59 = vld [vmem:[#allocation10 + $0x60] ss:$16 sps:$4 sm:$0xff]  }
 0x273   :  { %v6669_v62 = vpop.eup %6668 }
 0x274   :  { %v765_v63 = vmul.f32 %v6669_v62, %v6667_v61  ;;  %v7452_v61 = vld [vmem:[#allocation10 + $0x84] ss:$16 sps:$4 sm:$0xff]   ;;  %v7454_v62 = vld [vmem:[#allocation10 + $0x8c] ss:$16 sps:$4 sm:$0xff]  }
 0x276   :  { %v7351_v27 = vsel %vm770_vm1, %v765_v63, %v7301_v54  ;;  %v7458_v63 = vld [vmem:[#allocation10 + $0x80] ss:$16 sps:$4 sm:$0xff]  }
 0x277   :  { %773 = vst [vmem:[#allocation4 + $0x1] sm:$0x1] %v7351_v27  ;;  %v776_v35 = vpack.c.bf16 %v7351_v27, %v7351_v27 }
 0x279   :  { %1002 = vmatmul.mubr.bf16.vlgmr.msra.gmra.mrb[8].mxu0 %v776_v35  ;;  %1043 = vmatmul.mubr.bf16.vlgmr.msra.gmra.mrb[8].mxu1 %v776_v35  ;;  %v7464_v35 = vld [vmem:[#allocation10 + $0xa4] ss:$16 sps:$4 sm:$0xff]  }
 0x27a   :  { %1316 = vmatpush1.bf16.msra.mxu0 %v7153_v3  ;;  %1357 = vmatpush1.bf16.msra.mxu1 %v7155_v4 }
 0x27b   :  { %1317 = vmatprep.subr.bf16.mxu0 %v7158_v5  ;;  %1358 = vmatprep.subr.bf16.mxu1 %v7162_v6 }
 0x27c   :  { %1347 = vmatprep.mubr.bf16.mxu0 %v7051_v0  ;;  %1388 = vmatprep.mubr.bf16.mxu1 %v7051_v0 }
 0x27e   :  { %1318 = vmatpush1.bf16.msra.mxu0 %v7164_v7  ;;  %1359 = vmatpush1.bf16.msra.mxu1 %v7167_v8 }
 0x27f   :  { %1319 = vmatprep.subr.bf16.mxu0 %v7170_v9  ;;  %1360 = vmatprep.subr.bf16.mxu1 %v7172_v10 }
 0x282   :  { %1320 = vmatpush1.bf16.msra.mxu0 %v7174_v11  ;;  %1361 = vmatpush1.bf16.msra.mxu1 %v7176_v12 }
 0x283   :  { %1321 = vmatprep.subr.bf16.mxu0 %v7180_v13  ;;  %1362 = vmatprep.subr.bf16.mxu1 %v7184_v14 }
 0x286   :  { %1322 = vmatpush1.bf16.msra.mxu0 %v7186_v15  ;;  %1363 = vmatpush1.bf16.msra.mxu1 %v7190_v16  ;;  %v775_v16 = vld [vmem:[#allocation7 + $0x2] ss:$8 sm:$0xf] }
 0x287   :  { %1323 = vmatprep.subr.bf16.mxu0 %v7192_v17  ;;  %1364 = vmatprep.subr.bf16.mxu1 %v7196_v18 }
 0x28a   :  { %1324 = vmatpush1.bf16.msra.mxu0 %v7198_v19  ;;  %1365 = vmatpush1.bf16.msra.mxu1 %v7200_v20 }
 0x28b   :  { %1325 = vmatprep.subr.bf16.mxu0 %v7204_v21  ;;  %1366 = vmatprep.subr.bf16.mxu1 %v7208_v22 }
 0x28e   :  { %1326 = vmatpush1.bf16.msra.mxu0 %v7210_v23  ;;  %1367 = vmatpush1.bf16.msra.mxu1 %v7214_v24 }
 0x28f   :  { %1327 = vmatprep.subr.bf16.mxu0 %v7216_v25  ;;  %1368 = vmatprep.subr.bf16.mxu1 %v7220_v26 }
 0x292   :  { %1328 = vmatpush1.bf16.msra.mxu0 %v7225_v28  ;;  %1369 = vmatpush1.bf16.msra.mxu1 %v7227_v29 }
 0x293   :  { %1329 = vmatprep.subr.bf16.mxu0 %v7229_v30  ;;  %1370 = vmatprep.subr.bf16.mxu1 %v7231_v31 }
 0x296   :  { %1330 = vmatpush1.bf16.msra.mxu0 %v7237_v32  ;;  %1371 = vmatpush1.bf16.msra.mxu1 %v7239_v33  ;;  %v1115_v33 = vstv %s1114_s15 }
 0x297   :  { %vm1116_vm2 = vcmp.eq.s32.totalorder %v1115_v33, 1  ;;  %1661 = vmatprep.subr.bf16.mxu0 %v7406_v43  ;;  %1702 = vmatprep.subr.bf16.mxu1 %v7408_v45 }
 0x34c   :  { %v1003_v3 = vpop.f32.mrb[8].mxu0  ;;  %v1044_v4 = vpop.f32.mrb[8].mxu1 }
 0x34d   :  { %v1005_v5 = vpop.f32.mrb[9].mxu0  ;;  %v1046_v6 = vpop.f32.mrb[9].mxu1 }
 0x34e   :  { %v1055_v7 = vcombine.low %v1003_v3, %v1005_v5  ;;  %v1056_v8 = vcombine.low %v1044_v4, %v1046_v6  ;;  %v1007_v9 = vpop.f32.mrb[10].mxu0  ;;  %v1048_v10 = vpop.f32.mrb[10].mxu1  ;;  %v7466_v3 = vld [vmem:[#allocation10 + $0xac] ss:$16 sps:$4 sm:$0xff]   ;;  %v7470_v4 = vld [vmem:[#allocation10 + $0xa0] ss:$16 sps:$4 sm:$0xff]  }
 0x34f   :  { %v1008_v11 = vpop.f32.mrb[11].mxu0  ;;  %v1049_v12 = vpop.f32.mrb[11].mxu1  ;;  %v7472_v5 = vld [vmem:[#allocation10 + $0xa8] ss:$16 sps:$4 sm:$0xff]   ;;  %v7476_v6 = vld [vmem:[#allocation10 + $0xc4] ss:$16 sps:$4 sm:$0xff]  }
 0x350   :  { %v1063_v13 = vrot.slane %v1055_v7, %v7290_v44  ;;  %v1070_v14 = vrot.slane %v1056_v8, %v7290_v44  ;;  %v7478_v7 = vld [vmem:[#allocation10 + $0xcc] ss:$16 sps:$4 sm:$0xff]   ;;  %v7482_v8 = vld [vmem:[#allocation10 + $0xc0] ss:$16 sps:$4 sm:$0xff]   ;;  %v7484_v9 = vld [vmem:[#allocation10 + $0xc8] ss:$16 sps:$4 sm:$0xff]  }
 0x351   :  { %v7488_v10 = vld [vmem:[#allocation10 + $0xe4] ss:$16 sps:$4 sm:$0xff]   ;;  %v7490_v11 = vld [vmem:[#allocation10 + $0xec] ss:$16 sps:$4 sm:$0xff]   ;;  %v7494_v12 = vld [vmem:[#allocation10 + $0xe0] ss:$16 sps:$4 sm:$0xff]  }
 0x352   :  { %v1071_v15 = vcombine.low %v1063_v13, %v1070_v14  ;;  %v7496_v13 = vld [vmem:[#allocation10 + $0xe8] ss:$16 sps:$4 sm:$0xff]  }
 0x354   :  { %v1078_v17 = vrot.slane %v1071_v15, %v7290_v44 }
 0x356   :  { %v1080_v18 = vadd.f32 %v1078_v17, %v775_v16 }
 0x358   :  { %v5910_v19 = vmul.f32 -1.442695, %v1080_v18  ;;  %v1088_v20 = vrot.slane %v1080_v18, 1  ;;  %v1099_v22 = vrot.slane %v1080_v18, 3  ;;  %v1096_v25 = vrot.slane %v1080_v18, 2 }
 0x35a   :  { %6670 = vpow2.f32 %v5910_v19  ;;  %v5911_v21 = vmul.f32 -1.442695, %v1088_v20  ;;  %v5912_v23 = vmul.f32 -1.442695, %v1099_v22 }
 0x35c   :  { %6672 = vpow2.f32 %v5911_v21 }
 0x35d   :  { %6674 = vpow2.f32 %v5912_v23 }
 0x364   :  { %v6671_v24 = vpop.eup %6670 }
 0x365   :  { %v1084_v26 = vadd.f32 1.0, %v6671_v24 }
 0x366   :  { %v6673_v28 = vpop.eup %6672 }
 0x367   :  { %6676 = vrcp.f32 %v1084_v26  ;;  %v1093_v29 = vadd.f32 1.0, %v6673_v28  ;;  %v6675_v30 = vpop.eup %6674  ;;  %v1121_v28 = vld [vmem:[#allocation7 + $0x3] ss:$8 sm:$0xf] }
 0x368   :  { %6678 = vtanh.f32 %v1096_v25  ;;  %v1104_v54 = vadd.f32 1.0, %v6675_v30 }
 0x369   :  { %6680 = vrcp.f32 %v1093_v29 }
 0x36a   :  { %6682 = vrcp.f32 %v1104_v54 }
 0x371   :  { %v6677_v31 = vpop.eup %6676 }
 0x372   :  { %v6679_v32 = vpop.eup %6678 }
 0x373   :  { %v6681_v50 = vpop.eup %6680  ;;  %v1108_v37 = vmul.f32 %v6679_v32, %v6677_v31 }
 0x374   :  { %v1107_v36 = vmul.f32 %v6681_v50, %v7348_v60  ;;  %v6683_v39 = vpop.eup %6682 }
 0x376   :  { %v1109_v38 = vadd.f32 %v1108_v37, %v1107_v36 }
 0x378   :  { %6684 = vtanh.f32 %v1109_v38  ;;  %v7396_v1 = vsel %vm1116_vm2, %v1109_v38, %v7348_v60  ;;  %v7448_v60 = vld [vmem:[#allocation10 + $0x68] ss:$16 sps:$4 sm:$0xff]  }
 0x382   :  { %v6685_v2 = vpop.eup %6684 }
 0x383   :  { %v1111_v40 = vmul.f32 %v6685_v2, %v6683_v39 }
 0x385   :  { %v7399_v41 = vsel %vm1116_vm2, %v1111_v40, %v7351_v27  ;;  %v7460_v27 = vld [vmem:[#allocation10 + $0x88] ss:$16 sps:$4 sm:$0xff]  }
 0x386   :  { %1119 = vst [vmem:[#allocation4 + $0x2] sm:$0x1] %v7399_v41  ;;  %v1122_v42 = vpack.c.bf16 %v7399_v41, %v7399_v41 }
 0x388   :  { %1348 = vmatmul.mubr.bf16.vlgmr.msra.gmra.mrb[12].mxu0 %v1122_v42  ;;  %1389 = vmatmul.mubr.bf16.vlgmr.msra.gmra.mrb[12].mxu1 %v1122_v42 }
 0x389   :  { %1693 = vmatprep.mubr.bf16.mxu0 %v7051_v0  ;;  %1734 = vmatprep.mubr.bf16.mxu1 %v7051_v0 }
 0x38a   :  { %1662 = vmatpush1.bf16.msra.mxu0 %v7410_v46  ;;  %1703 = vmatpush1.bf16.msra.mxu1 %v7412_v47 }
 0x38b   :  { %1663 = vmatprep.subr.bf16.mxu0 %v7420_v49  ;;  %1704 = vmatprep.subr.bf16.mxu1 %v7424_v52 }
 0x38e   :  { %1664 = vmatpush1.bf16.msra.mxu0 %v7418_v48  ;;  %1705 = vmatpush1.bf16.msra.mxu1 %v7422_v51 }
 0x38f   :  { %1665 = vmatprep.subr.bf16.mxu0 %v7426_v53  ;;  %1706 = vmatprep.subr.bf16.mxu1 %v7429_v55 }
 0x392   :  { %1666 = vmatpush1.bf16.msra.mxu0 %v7434_v34  ;;  %1707 = vmatpush1.bf16.msra.mxu1 %v7436_v56 }
 0x393   :  { %1667 = vmatprep.subr.bf16.mxu0 %v7440_v57  ;;  %1708 = vmatprep.subr.bf16.mxu1 %v7442_v58 }
 0x396   :  { %1668 = vmatpush1.bf16.msra.mxu0 %v7446_v59  ;;  %1709 = vmatpush1.bf16.msra.mxu1 %v7448_v60 }
 0x397   :  { %1669 = vmatprep.subr.bf16.mxu0 %v7452_v61  ;;  %1710 = vmatprep.subr.bf16.mxu1 %v7454_v62 }
 0x39a   :  { %1670 = vmatpush1.bf16.msra.mxu0 %v7458_v63  ;;  %1711 = vmatpush1.bf16.msra.mxu1 %v7460_v27 }
 0x39b   :  { %1671 = vmatprep.subr.bf16.mxu0 %v7464_v35  ;;  %1712 = vmatprep.subr.bf16.mxu1 %v7466_v3 }
 0x39e   :  { %1672 = vmatpush1.bf16.msra.mxu0 %v7470_v4  ;;  %1713 = vmatpush1.bf16.msra.mxu1 %v7472_v5 }
 0x39f   :  { %1673 = vmatprep.subr.bf16.mxu0 %v7476_v6  ;;  %1714 = vmatprep.subr.bf16.mxu1 %v7478_v7 }
 0x3a2   :  { %1674 = vmatpush1.bf16.msra.mxu0 %v7482_v8  ;;  %1715 = vmatpush1.bf16.msra.mxu1 %v7484_v9 }
 0x3a3   :  { %1675 = vmatprep.subr.bf16.mxu0 %v7488_v10  ;;  %1716 = vmatprep.subr.bf16.mxu1 %v7490_v11 }
 0x3a6   :  { %1676 = vmatpush1.bf16.msra.mxu0 %v7494_v12  ;;  %1717 = vmatpush1.bf16.msra.mxu1 %v7496_v13 }
 0x3a7   :  { %2007 = vmatprep.subr.bf16.mxu0 %v7406_v43  ;;  %2048 = vmatprep.subr.bf16.mxu1 %v7408_v45 }
 0x45b   :  { %v1349_v14 = vpop.f32.mrb[12].mxu0  ;;  %v1390_v15 = vpop.f32.mrb[12].mxu1 }
 0x45c   :  { %v1351_v16 = vpop.f32.mrb[13].mxu0  ;;  %v1392_v17 = vpop.f32.mrb[13].mxu1 }
 0x45d   :  { %v1401_v18 = vcombine.low %v1349_v14, %v1351_v16  ;;  %v1402_v19 = vcombine.low %v1390_v15, %v1392_v17  ;;  %v1353_v20 = vpop.f32.mrb[14].mxu0  ;;  %v1394_v21 = vpop.f32.mrb[14].mxu1  ;;  %v1461_v15 = vstv %s1460_s18 }
 0x45e   :  { %v1354_v22 = vpop.f32.mrb[15].mxu0  ;;  %v1395_v23 = vpop.f32.mrb[15].mxu1  ;;  %vm1462_vm3 = vcmp.eq.s32.totalorder %v1461_v15, 1 }
 0x45f   :  { %v1409_v24 = vrot.slane %v1401_v18, %v7290_v44  ;;  %v1416_v25 = vrot.slane %v1402_v19, %v7290_v44 }
 0x461   :  { %v1417_v26 = vcombine.low %v1409_v24, %v1416_v25 }
 0x463   :  { %v1424_v29 = vrot.slane %v1417_v26, %v7290_v44 }
 0x465   :  { %v1426_v30 = vadd.f32 %v1424_v29, %v1121_v28 }
 0x467   :  { %v5946_v31 = vmul.f32 -1.442695, %v1426_v30  ;;  %v1434_v32 = vrot.slane %v1426_v30, 1  ;;  %v1445_v50 = vrot.slane %v1426_v30, 3  ;;  %v1442_v37 = vrot.slane %v1426_v30, 2 }
 0x469   :  { %6686 = vpow2.f32 %v5946_v31  ;;  %v5947_v33 = vmul.f32 -1.442695, %v1434_v32  ;;  %v5948_v54 = vmul.f32 -1.442695, %v1445_v50 }
 0x46b   :  { %6688 = vpow2.f32 %v5947_v33 }
 0x46c   :  { %6690 = vpow2.f32 %v5948_v54 }
 0x473   :  { %v6687_v36 = vpop.eup %6686 }
 0x474   :  { %v1430_v38 = vadd.f32 1.0, %v6687_v36 }
 0x475   :  { %v6689_v39 = vpop.eup %6688 }
 0x476   :  { %6692 = vrcp.f32 %v1430_v38  ;;  %v1439_v2 = vadd.f32 1.0, %v6689_v39  ;;  %v6691_v40 = vpop.eup %6690  ;;  %v1467_v39 = vld [vmem:[#allocation7 + $0x4] ss:$8 sm:$0xf] }
 0x477   :  { %6694 = vtanh.f32 %v1442_v37  ;;  %v1450_v17 = vadd.f32 1.0, %v6691_v40 }
 0x478   :  { %6696 = vrcp.f32 %v1439_v2 }
 0x479   :  { %6698 = vrcp.f32 %v1450_v17 }
 0x480   :  { %v6693_v42 = vpop.eup %6692 }
 0x481   :  { %v6695_v14 = vpop.eup %6694 }
 0x482   :  { %v6697_v16 = vpop.eup %6696  ;;  %v1454_v19 = vmul.f32 %v6695_v14, %v6693_v42 }
 0x483   :  { %v1453_v18 = vmul.f32 %v6697_v16, %v7396_v1  ;;  %v6699_v22 = vpop.eup %6698 }
 0x485   :  { %v1455_v20 = vadd.f32 %v1454_v19, %v1453_v18 }
 0x487   :  { %6700 = vtanh.f32 %v1455_v20  ;;  %v7512_v21 = vsel %vm1462_vm3, %v1455_v20, %v7396_v1 }
 0x491   :  { %v6701_v23 = vpop.eup %6700 }
 0x492   :  { %v1457_v24 = vmul.f32 %v6701_v23, %v6699_v22 }
 0x494   :  { %v7515_v25 = vsel %vm1462_vm3, %v1457_v24, %v7399_v41 }
 0x495   :  { %1465 = vst [vmem:[#allocation4 + $0x3] sm:$0x1] %v7515_v25  ;;  %v1468_v26 = vpack.c.bf16 %v7515_v25, %v7515_v25 }
 0x497   :  { %1694 = vmatmul.mubr.bf16.vlgmr.msra.gmra.mrb[16].mxu0 %v1468_v26  ;;  %1735 = vmatmul.mubr.bf16.vlgmr.msra.gmra.mrb[16].mxu1 %v1468_v26 }
 0x498   :  { %2008 = vmatpush1.bf16.msra.mxu0 %v7410_v46  ;;  %2049 = vmatpush1.bf16.msra.mxu1 %v7412_v47 }
 0x499   :  { %2009 = vmatprep.subr.bf16.mxu0 %v7420_v49  ;;  %2050 = vmatprep.subr.bf16.mxu1 %v7424_v52 }
 0x49a   :  { %2039 = vmatprep.mubr.bf16.mxu0 %v7051_v0  ;;  %2080 = vmatprep.mubr.bf16.mxu1 %v7051_v0 }
 0x49c   :  { %2010 = vmatpush1.bf16.msra.mxu0 %v7418_v48  ;;  %2051 = vmatpush1.bf16.msra.mxu1 %v7422_v51 }
 0x49d   :  { %2011 = vmatprep.subr.bf16.mxu0 %v7426_v53  ;;  %2052 = vmatprep.subr.bf16.mxu1 %v7429_v55 }
 0x4a0   :  { %2012 = vmatpush1.bf16.msra.mxu0 %v7434_v34  ;;  %2053 = vmatpush1.bf16.msra.mxu1 %v7436_v56 }
 0x4a1   :  { %2013 = vmatprep.subr.bf16.mxu0 %v7440_v57  ;;  %2054 = vmatprep.subr.bf16.mxu1 %v7442_v58 }
 0x4a4   :  { %2014 = vmatpush1.bf16.msra.mxu0 %v7446_v59  ;;  %2055 = vmatpush1.bf16.msra.mxu1 %v7448_v60 }
 0x4a5   :  { %2015 = vmatprep.subr.bf16.mxu0 %v7452_v61  ;;  %2056 = vmatprep.subr.bf16.mxu1 %v7454_v62 }
 0x4a8   :  { %2016 = vmatpush1.bf16.msra.mxu0 %v7458_v63  ;;  %2057 = vmatpush1.bf16.msra.mxu1 %v7460_v27 }
 0x4a9   :  { %2017 = vmatprep.subr.bf16.mxu0 %v7464_v35  ;;  %2058 = vmatprep.subr.bf16.mxu1 %v7466_v3 }
 0x4ac   :  { %2018 = vmatpush1.bf16.msra.mxu0 %v7470_v4  ;;  %2059 = vmatpush1.bf16.msra.mxu1 %v7472_v5 }
 0x4ad   :  { %2019 = vmatprep.subr.bf16.mxu0 %v7476_v6  ;;  %2060 = vmatprep.subr.bf16.mxu1 %v7478_v7 }
 0x4b0   :  { %2020 = vmatpush1.bf16.msra.mxu0 %v7482_v8  ;;  %2061 = vmatpush1.bf16.msra.mxu1 %v7484_v9 }
 0x4b1   :  { %2021 = vmatprep.subr.bf16.mxu0 %v7488_v10  ;;  %2062 = vmatprep.subr.bf16.mxu1 %v7490_v11 }
 0x4b4   :  { %2022 = vmatpush1.bf16.msra.mxu0 %v7494_v12  ;;  %2063 = vmatpush1.bf16.msra.mxu1 %v7496_v13 }
 0x4b5   :  { %2353 = vmatprep.subr.bf16.mxu0 %v7406_v43  ;;  %2394 = vmatprep.subr.bf16.mxu1 %v7408_v45 }
 0x56a   :  { %v1695_v1 = vpop.f32.mrb[16].mxu0  ;;  %v1736_v41 = vpop.f32.mrb[16].mxu1 }
 0x56b   :  { %v1697_v28 = vpop.f32.mrb[17].mxu0  ;;  %v1738_v29 = vpop.f32.mrb[17].mxu1 }
 0x56c   :  { %v1747_v30 = vcombine.low %v1695_v1, %v1697_v28  ;;  %v1748_v31 = vcombine.low %v1736_v41, %v1738_v29  ;;  %v1699_v32 = vpop.f32.mrb[18].mxu0  ;;  %v1740_v33 = vpop.f32.mrb[18].mxu1  ;;  %v1807_v41 = vstv %s1806_s21 }
 0x56d   :  { %v1700_v50 = vpop.f32.mrb[19].mxu0  ;;  %v1741_v54 = vpop.f32.mrb[19].mxu1  ;;  %vm1808_vm4 = vcmp.eq.s32.totalorder %v1807_v41, 1 }
 0x56e   :  { %v1755_v36 = vrot.slane %v1747_v30, %v7290_v44  ;;  %v1762_v37 = vrot.slane %v1748_v31, %v7290_v44 }
 0x570   :  { %v1763_v38 = vcombine.low %v1755_v36, %v1762_v37 }
 0x572   :  { %v1770_v2 = vrot.slane %v1763_v38, %v7290_v44 }
 0x574   :  { %v1772_v40 = vadd.f32 %v1770_v2, %v1467_v39 }
 0x576   :  { %v5982_v42 = vmul.f32 -1.442695, %v1772_v40  ;;  %v1780_v14 = vrot.slane %v1772_v40, 1  ;;  %v1791_v16 = vrot.slane %v1772_v40, 3  ;;  %v1788_v19 = vrot.slane %v1772_v40, 2 }
 0x578   :  { %6702 = vpow2.f32 %v5982_v42  ;;  %v5983_v15 = vmul.f32 -1.442695, %v1780_v14  ;;  %v5984_v17 = vmul.f32 -1.442695, %v1791_v16 }
 0x57a   :  { %6704 = vpow2.f32 %v5983_v15 }
 0x57b   :  { %6706 = vpow2.f32 %v5984_v17 }
 0x582   :  { %v6703_v18 = vpop.eup %6702 }
 0x583   :  { %v1776_v20 = vadd.f32 1.0, %v6703_v18 }
 0x584   :  { %v6705_v22 = vpop.eup %6704 }
 0x585   :  { %6708 = vrcp.f32 %v1776_v20  ;;  %v1785_v23 = vadd.f32 1.0, %v6705_v22  ;;  %v6707_v24 = vpop.eup %6706  ;;  %v1813_v22 = vld [vmem:[#allocation7 + $0x5] ss:$8 sm:$0xf] }
 0x586   :  { %6710 = vtanh.f32 %v1788_v19  ;;  %v1796_v29 = vadd.f32 1.0, %v6707_v24 }
 0x587   :  { %6712 = vrcp.f32 %v1785_v23 }
 0x588   :  { %6714 = vrcp.f32 %v1796_v29 }
 0x58f   :  { %v6709_v26 = vpop.eup %6708 }
 0x590   :  { %v6711_v1 = vpop.eup %6710 }
 0x591   :  { %v6713_v28 = vpop.eup %6712  ;;  %v1800_v31 = vmul.f32 %v6711_v1, %v6709_v26 }
 0x592   :  { %v1799_v30 = vmul.f32 %v6713_v28, %v7512_v21  ;;  %v6715_v50 = vpop.eup %6714 }
 0x594   :  { %v1801_v32 = vadd.f32 %v1800_v31, %v1799_v30 }
 0x596   :  { %6716 = vtanh.f32 %v1801_v32  ;;  %v7562_v33 = vsel %vm1808_vm4, %v1801_v32, %v7512_v21 }
 0x5a0   :  { %v6717_v54 = vpop.eup %6716 }
 0x5a1   :  { %v1803_v36 = vmul.f32 %v6717_v54, %v6715_v50 }
 0x5a3   :  { %v7565_v37 = vsel %vm1808_vm4, %v1803_v36, %v7515_v25 }
 0x5a4   :  { %1811 = vst [vmem:[#allocation4 + $0x4] sm:$0x1] %v7565_v37  ;;  %v1814_v38 = vpack.c.bf16 %v7565_v37, %v7565_v37 }
 0x5a6   :  { %2040 = vmatmul.mubr.bf16.vlgmr.msra.gmra.mrb[20].mxu0 %v1814_v38  ;;  %2081 = vmatmul.mubr.bf16.vlgmr.msra.gmra.mrb[20].mxu1 %v1814_v38  ;;  %v2153_v38 = vstv %s2152_s25 }
 0x5a7   :  { %2354 = vmatpush1.bf16.msra.mxu0 %v7410_v46  ;;  %2395 = vmatpush1.bf16.msra.mxu1 %v7412_v47  ;;  %vm2154_vm5 = vcmp.eq.s32.totalorder %v2153_v38, 1  ;;  %v7693_v38 = vld [vmem:[#allocation10 + $0x4c] ss:$16 sps:$4 sm:$0xff]  }
 0x5a8   :  { %2355 = vmatprep.subr.bf16.mxu0 %v7420_v49  ;;  %2396 = vmatprep.subr.bf16.mxu1 %v7424_v52 }
 0x5a9   :  { %2385 = vmatprep.mubr.bf16.mxu0 %v7051_v0  ;;  %2426 = vmatprep.mubr.bf16.mxu1 %v7051_v0 }
 0x5ab   :  { %2356 = vmatpush1.bf16.msra.mxu0 %v7418_v48  ;;  %2397 = vmatpush1.bf16.msra.mxu1 %v7422_v51 }
 0x5ac   :  { %2357 = vmatprep.subr.bf16.mxu0 %v7426_v53  ;;  %2398 = vmatprep.subr.bf16.mxu1 %v7429_v55 }
 0x5af   :  { %2358 = vmatpush1.bf16.msra.mxu0 %v7434_v34  ;;  %2399 = vmatpush1.bf16.msra.mxu1 %v7436_v56 }
 0x5b0   :  { %2359 = vmatprep.subr.bf16.mxu0 %v7440_v57  ;;  %2400 = vmatprep.subr.bf16.mxu1 %v7442_v58 }
 0x5b3   :  { %2360 = vmatpush1.bf16.msra.mxu0 %v7446_v59  ;;  %2401 = vmatpush1.bf16.msra.mxu1 %v7448_v60 }
 0x5b4   :  { %2361 = vmatprep.subr.bf16.mxu0 %v7452_v61  ;;  %2402 = vmatprep.subr.bf16.mxu1 %v7454_v62 }
 0x5b7   :  { %2362 = vmatpush1.bf16.msra.mxu0 %v7458_v63  ;;  %2403 = vmatpush1.bf16.msra.mxu1 %v7460_v27 }
 0x5b8   :  { %2363 = vmatprep.subr.bf16.mxu0 %v7464_v35  ;;  %2404 = vmatprep.subr.bf16.mxu1 %v7466_v3 }
 0x5bb   :  { %2364 = vmatpush1.bf16.msra.mxu0 %v7470_v4  ;;  %2405 = vmatpush1.bf16.msra.mxu1 %v7472_v5 }
 0x5bc   :  { %2365 = vmatprep.subr.bf16.mxu0 %v7476_v6  ;;  %2406 = vmatprep.subr.bf16.mxu1 %v7478_v7 }
 0x5bf   :  { %2366 = vmatpush1.bf16.msra.mxu0 %v7482_v8  ;;  %2407 = vmatpush1.bf16.msra.mxu1 %v7484_v9 }
 0x5c0   :  { %2367 = vmatprep.subr.bf16.mxu0 %v7488_v10  ;;  %2408 = vmatprep.subr.bf16.mxu1 %v7490_v11 }
 0x5c3   :  { %2368 = vmatpush1.bf16.msra.mxu0 %v7494_v12  ;;  %2409 = vmatpush1.bf16.msra.mxu1 %v7496_v13 }
 0x5c4   :  { %2699 = vmatprep.subr.bf16.mxu0 %v7406_v43  ;;  %2740 = vmatprep.subr.bf16.mxu1 %v7408_v45 }
 0x679   :  { %v2041_v21 = vpop.f32.mrb[20].mxu0  ;;  %v2082_v25 = vpop.f32.mrb[20].mxu1 }
 0x67a   :  { %v2043_v39 = vpop.f32.mrb[21].mxu0  ;;  %v2084_v2 = vpop.f32.mrb[21].mxu1 }
 0x67b   :  { %v2093_v40 = vcombine.low %v2041_v21, %v2043_v39  ;;  %v2094_v42 = vcombine.low %v2082_v25, %v2084_v2  ;;  %v2045_v14 = vpop.f32.mrb[22].mxu0  ;;  %v2086_v15 = vpop.f32.mrb[22].mxu1 }
 0x67c   :  { %v2046_v16 = vpop.f32.mrb[23].mxu0  ;;  %v2087_v17 = vpop.f32.mrb[23].mxu1 }
 0x67d   :  { %v2101_v18 = vrot.slane %v2093_v40, %v7290_v44  ;;  %v2108_v19 = vrot.slane %v2094_v42, %v7290_v44 }
 0x67f   :  { %v2109_v20 = vcombine.low %v2101_v18, %v2108_v19 }
 0x681   :  { %v2116_v43 = vrot.slane %v2109_v20, %v7290_v44 }
 0x683   :  { %v2118_v23 = vadd.f32 %v2116_v43, %v1813_v22 }
 0x685   :  { %v6018_v45 = vmul.f32 -1.442695, %v2118_v23  ;;  %v2126_v24 = vrot.slane %v2118_v23, 1  ;;  %v2137_v1 = vrot.slane %v2118_v23, 3  ;;  %v2134_v29 = vrot.slane %v2118_v23, 2 }
 0x687   :  { %6718 = vpow2.f32 %v6018_v45  ;;  %v6019_v26 = vmul.f32 -1.442695, %v2126_v24  ;;  %v6020_v41 = vmul.f32 -1.442695, %v2137_v1 }
 0x689   :  { %6720 = vpow2.f32 %v6019_v26 }
 0x68a   :  { %6722 = vpow2.f32 %v6020_v41  ;;  %v7670_v41 = vld [vmem:[#allocation10 + $0x4] ss:$16 sps:$4 sm:$0xff]  }
 0x691   :  { %v6719_v28 = vpop.eup %6718 }
 0x692   :  { %v2122_v30 = vadd.f32 1.0, %v6719_v28  ;;  %v7672_v28 = vld [vmem:[#allocation10 + $0xc] ss:$16 sps:$4 sm:$0xff]  }
 0x693   :  { %v6721_v31 = vpop.eup %6720 }
 0x694   :  { %6724 = vrcp.f32 %v2122_v30  ;;  %v2131_v32 = vadd.f32 1.0, %v6721_v31  ;;  %v6723_v50 = vpop.eup %6722  ;;  %v7676_v30 = vld [vmem:[#allocation10 + $0x8] ss:$16 sps:$4 sm:$0xff]   ;;  %v7682_v31 = vld [vmem:[#allocation10 + $0x20] ss:$16 sps:$4 sm:$0xff]  }
 0x695   :  { %6726 = vtanh.f32 %v2134_v29  ;;  %v2142_v25 = vadd.f32 1.0, %v6723_v50  ;;  %v7674_v29 = vld [vmem:[#allocation10] ss:$16 sps:$4 sm:$0xff]   ;;  %v7686_v50 = vld [vmem:[#allocation10 + $0x28] ss:$16 sps:$4 sm:$0xff]  }
 0x696   :  { %6728 = vrcp.f32 %v2131_v32  ;;  %v7684_v32 = vld [vmem:[#allocation10 + $0x24] ss:$16 sps:$4 sm:$0xff]  }
 0x697   :  { %6730 = vrcp.f32 %v2142_v25  ;;  %v7700_v25 = vld [vmem:[#allocation10 + $0x48] ss:$16 sps:$4 sm:$0xff]  }
 0x69e   :  { %v6725_v54 = vpop.eup %6724 }
 0x69f   :  { %v6727_v36 = vpop.eup %6726 }
 0x6a0   :  { %v6729_v21 = vpop.eup %6728  ;;  %v2146_v2 = vmul.f32 %v6727_v36, %v6725_v54  ;;  %v7688_v54 = vld [vmem:[#allocation10 + $0x2c] ss:$16 sps:$4 sm:$0xff]   ;;  %v7690_v36 = vld [vmem:[#allocation10 + $0x44] ss:$16 sps:$4 sm:$0xff]  }
 0x6a1   :  { %v2145_v39 = vmul.f32 %v6729_v21, %v7562_v33  ;;  %v6731_v14 = vpop.eup %6730  ;;  %v7698_v21 = vld [vmem:[#allocation10 + $0x40] ss:$16 sps:$4 sm:$0xff]  }
 0x6a3   :  { %v2147_v40 = vadd.f32 %v2146_v2, %v2145_v39  ;;  %v7704_v39 = vld [vmem:[#allocation10 + $0x64] ss:$16 sps:$4 sm:$0xff]   ;;  %v7706_v2 = vld [vmem:[#allocation10 + $0x6c] ss:$16 sps:$4 sm:$0xff]  }
 0x6a5   :  { %6732 = vtanh.f32 %v2147_v40  ;;  %v7612_v42 = vsel %vm2154_vm5, %v2147_v40, %v7562_v33  ;;  %v7710_v40 = vld [vmem:[#allocation10 + $0x60] ss:$16 sps:$4 sm:$0xff]  }
 0x6af   :  { %v6733_v15 = vpop.eup %6732 }
 0x6b0   :  { %v2149_v16 = vmul.f32 %v6733_v15, %v6731_v14  ;;  %v7716_v14 = vld [vmem:[#allocation10 + $0x84] ss:$16 sps:$4 sm:$0xff]   ;;  %v7718_v15 = vld [vmem:[#allocation10 + $0x8c] ss:$16 sps:$4 sm:$0xff]  }
 0x6b2   :  { %v7615_v17 = vsel %vm2154_vm5, %v2149_v16, %v7565_v37  ;;  %v7722_v16 = vld [vmem:[#allocation10 + $0x80] ss:$16 sps:$4 sm:$0xff]  }
 0x6b3   :  { %2157 = vst [vmem:[#allocation4 + $0x5] sm:$0x1] %v7615_v17  ;;  %v2160_v18 = vpack.c.bf16 %v7615_v17, %v7615_v17 }
 0x6b5   :  { %2386 = vmatmul.mubr.bf16.vlgmr.msra.gmra.mrb[24].mxu0 %v2160_v18  ;;  %2427 = vmatmul.mubr.bf16.vlgmr.msra.gmra.mrb[24].mxu1 %v2160_v18  ;;  %v7728_v18 = vld [vmem:[#allocation10 + $0xa4] ss:$16 sps:$4 sm:$0xff]  }
 0x6b6   :  { %2700 = vmatpush1.bf16.msra.mxu0 %v7410_v46  ;;  %2741 = vmatpush1.bf16.msra.mxu1 %v7412_v47 }
 0x6b7   :  { %2701 = vmatprep.subr.bf16.mxu0 %v7420_v49  ;;  %2742 = vmatprep.subr.bf16.mxu1 %v7424_v52 }
 0x6b8   :  { %2731 = vmatprep.mubr.bf16.mxu0 %v7051_v0  ;;  %2772 = vmatprep.mubr.bf16.mxu1 %v7051_v0 }
 0x6ba   :  { %2702 = vmatpush1.bf16.msra.mxu0 %v7418_v48  ;;  %2743 = vmatpush1.bf16.msra.mxu1 %v7422_v51 }
 0x6bb   :  { %2703 = vmatprep.subr.bf16.mxu0 %v7426_v53  ;;  %2744 = vmatprep.subr.bf16.mxu1 %v7429_v55 }
 0x6be   :  { %2704 = vmatpush1.bf16.msra.mxu0 %v7434_v34  ;;  %2745 = vmatpush1.bf16.msra.mxu1 %v7436_v56 }
 0x6bf   :  { %2705 = vmatprep.subr.bf16.mxu0 %v7440_v57  ;;  %2746 = vmatprep.subr.bf16.mxu1 %v7442_v58 }
 0x6c2   :  { %2706 = vmatpush1.bf16.msra.mxu0 %v7446_v59  ;;  %2747 = vmatpush1.bf16.msra.mxu1 %v7448_v60  ;;  %v2159_v60 = vld [vmem:[#allocation7 + $0x6] ss:$8 sm:$0xf] }
 0x6c3   :  { %2707 = vmatprep.subr.bf16.mxu0 %v7452_v61  ;;  %2748 = vmatprep.subr.bf16.mxu1 %v7454_v62 }
 0x6c6   :  { %2708 = vmatpush1.bf16.msra.mxu0 %v7458_v63  ;;  %2749 = vmatpush1.bf16.msra.mxu1 %v7460_v27 }
 0x6c7   :  { %2709 = vmatprep.subr.bf16.mxu0 %v7464_v35  ;;  %2750 = vmatprep.subr.bf16.mxu1 %v7466_v3 }
 0x6ca   :  { %2710 = vmatpush1.bf16.msra.mxu0 %v7470_v4  ;;  %2751 = vmatpush1.bf16.msra.mxu1 %v7472_v5 }
 0x6cb   :  { %2711 = vmatprep.subr.bf16.mxu0 %v7476_v6  ;;  %2752 = vmatprep.subr.bf16.mxu1 %v7478_v7 }
 0x6ce   :  { %2712 = vmatpush1.bf16.msra.mxu0 %v7482_v8  ;;  %2753 = vmatpush1.bf16.msra.mxu1 %v7484_v9 }
 0x6cf   :  { %2713 = vmatprep.subr.bf16.mxu0 %v7488_v10  ;;  %2754 = vmatprep.subr.bf16.mxu1 %v7490_v11 }
 0x6d2   :  { %2714 = vmatpush1.bf16.msra.mxu0 %v7494_v12  ;;  %2755 = vmatpush1.bf16.msra.mxu1 %v7496_v13  ;;  %v2499_v13 = vstv %s2498_s26 }
 0x6d3   :  { %vm2500_vm6 = vcmp.eq.s32.totalorder %v2499_v13, 1  ;;  %3045 = vmatprep.subr.bf16.mxu0 %v7670_v41  ;;  %3086 = vmatprep.subr.bf16.mxu1 %v7672_v28 }
 0x788   :  { %v2387_v46 = vpop.f32.mrb[24].mxu0  ;;  %v2428_v47 = vpop.f32.mrb[24].mxu1 }
 0x789   :  { %v2389_v48 = vpop.f32.mrb[25].mxu0  ;;  %v2430_v49 = vpop.f32.mrb[25].mxu1 }
 0x78a   :  { %v2439_v51 = vcombine.low %v2387_v46, %v2389_v48  ;;  %v2440_v52 = vcombine.low %v2428_v47, %v2430_v49  ;;  %v2391_v53 = vpop.f32.mrb[26].mxu0  ;;  %v2432_v55 = vpop.f32.mrb[26].mxu1  ;;  %v7730_v46 = vld [vmem:[#allocation10 + $0xac] ss:$16 sps:$4 sm:$0xff]   ;;  %v7734_v47 = vld [vmem:[#allocation10 + $0xa0] ss:$16 sps:$4 sm:$0xff]  }
 0x78b   :  { %v2392_v34 = vpop.f32.mrb[27].mxu0  ;;  %v2433_v56 = vpop.f32.mrb[27].mxu1  ;;  %v7736_v48 = vld [vmem:[#allocation10 + $0xa8] ss:$16 sps:$4 sm:$0xff]   ;;  %v7740_v49 = vld [vmem:[#allocation10 + $0xc4] ss:$16 sps:$4 sm:$0xff]  }
 0x78c   :  { %v2447_v57 = vrot.slane %v2439_v51, %v7290_v44  ;;  %v2454_v58 = vrot.slane %v2440_v52, %v7290_v44  ;;  %v7742_v51 = vld [vmem:[#allocation10 + $0xcc] ss:$16 sps:$4 sm:$0xff]   ;;  %v7746_v52 = vld [vmem:[#allocation10 + $0xc0] ss:$16 sps:$4 sm:$0xff]   ;;  %v7748_v53 = vld [vmem:[#allocation10 + $0xc8] ss:$16 sps:$4 sm:$0xff]  }
 0x78d   :  { %v7752_v55 = vld [vmem:[#allocation10 + $0xe4] ss:$16 sps:$4 sm:$0xff]   ;;  %v7754_v34 = vld [vmem:[#allocation10 + $0xec] ss:$16 sps:$4 sm:$0xff]   ;;  %v7758_v56 = vld [vmem:[#allocation10 + $0xe0] ss:$16 sps:$4 sm:$0xff]  }
 0x78e   :  { %v2455_v59 = vcombine.low %v2447_v57, %v2454_v58  ;;  %v7760_v57 = vld [vmem:[#allocation10 + $0xe8] ss:$16 sps:$4 sm:$0xff]  }
 0x790   :  { %v2462_v61 = vrot.slane %v2455_v59, %v7290_v44 }
 0x792   :  { %v2464_v62 = vadd.f32 %v2462_v61, %v2159_v60 }
 0x794   :  { %v6054_v63 = vmul.f32 -1.442695, %v2464_v62  ;;  %v2472_v27 = vrot.slane %v2464_v62, 1  ;;  %v2483_v3 = vrot.slane %v2464_v62, 3  ;;  %v2480_v6 = vrot.slane %v2464_v62, 2 }
 0x796   :  { %6734 = vpow2.f32 %v6054_v63  ;;  %v6055_v35 = vmul.f32 -1.442695, %v2472_v27  ;;  %v6056_v4 = vmul.f32 -1.442695, %v2483_v3 }
 0x798   :  { %6736 = vpow2.f32 %v6055_v35 }
 0x799   :  { %6738 = vpow2.f32 %v6056_v4 }
 0x7a0   :  { %v6735_v5 = vpop.eup %6734 }
 0x7a1   :  { %v2468_v7 = vadd.f32 1.0, %v6735_v5 }
 0x7a2   :  { %v6737_v8 = vpop.eup %6736 }
 0x7a3   :  { %6740 = vrcp.f32 %v2468_v7  ;;  %v2477_v9 = vadd.f32 1.0, %v6737_v8  ;;  %v6739_v10 = vpop.eup %6738  ;;  %v2505_v8 = vld [vmem:[#allocation7 + $0x7] ss:$8 sm:$0xf] }
 0x7a4   :  { %6742 = vtanh.f32 %v2480_v6  ;;  %v2488_v37 = vadd.f32 1.0, %v6739_v10 }
 0x7a5   :  { %6744 = vrcp.f32 %v2477_v9 }
 0x7a6   :  { %6746 = vrcp.f32 %v2488_v37 }
 0x7ad   :  { %v6741_v11 = vpop.eup %6740 }
 0x7ae   :  { %v6743_v12 = vpop.eup %6742 }
 0x7af   :  { %v6745_v33 = vpop.eup %6744  ;;  %v2492_v20 = vmul.f32 %v6743_v12, %v6741_v11 }
 0x7b0   :  { %v2491_v19 = vmul.f32 %v6745_v33, %v7612_v42  ;;  %v6747_v23 = vpop.eup %6746 }
 0x7b2   :  { %v2493_v22 = vadd.f32 %v2492_v20, %v2491_v19 }
 0x7b4   :  { %6748 = vtanh.f32 %v2493_v22  ;;  %v7660_v43 = vsel %vm2500_vm6, %v2493_v22, %v7612_v42  ;;  %v7712_v42 = vld [vmem:[#allocation10 + $0x68] ss:$16 sps:$4 sm:$0xff]  }
 0x7be   :  { %v6749_v45 = vpop.eup %6748 }
 0x7bf   :  { %v2495_v24 = vmul.f32 %v6749_v45, %v6747_v23 }
 0x7c1   :  { %v7663_v26 = vsel %vm2500_vm6, %v2495_v24, %v7615_v17  ;;  %v7724_v17 = vld [vmem:[#allocation10 + $0x88] ss:$16 sps:$4 sm:$0xff]  }
 0x7c2   :  { %2503 = vst [vmem:[#allocation4 + $0x6] sm:$0x1] %v7663_v26  ;;  %v2506_v1 = vpack.c.bf16 %v7663_v26, %v7663_v26 }
 0x7c4   :  { %2732 = vmatmul.mubr.bf16.vlgmr.msra.gmra.mrb[28].mxu0 %v2506_v1  ;;  %2773 = vmatmul.mubr.bf16.vlgmr.msra.gmra.mrb[28].mxu1 %v2506_v1 }
 0x7c5   :  { %3077 = vmatprep.mubr.bf16.mxu0 %v7051_v0  ;;  %3118 = vmatprep.mubr.bf16.mxu1 %v7051_v0 }
 0x7c6   :  { %3046 = vmatpush1.bf16.msra.mxu0 %v7674_v29  ;;  %3087 = vmatpush1.bf16.msra.mxu1 %v7676_v30 }
 0x7c7   :  { %3047 = vmatprep.subr.bf16.mxu0 %v7684_v32  ;;  %3088 = vmatprep.subr.bf16.mxu1 %v7688_v54 }
 0x7ca   :  { %3048 = vmatpush1.bf16.msra.mxu0 %v7682_v31  ;;  %3089 = vmatpush1.bf16.msra.mxu1 %v7686_v50 }
 0x7cb   :  { %3049 = vmatprep.subr.bf16.mxu0 %v7690_v36  ;;  %3090 = vmatprep.subr.bf16.mxu1 %v7693_v38 }
 0x7ce   :  { %3050 = vmatpush1.bf16.msra.mxu0 %v7698_v21  ;;  %3091 = vmatpush1.bf16.msra.mxu1 %v7700_v25 }
 0x7cf   :  { %3051 = vmatprep.subr.bf16.mxu0 %v7704_v39  ;;  %3092 = vmatprep.subr.bf16.mxu1 %v7706_v2 }
 0x7d2   :  { %3052 = vmatpush1.bf16.msra.mxu0 %v7710_v40  ;;  %3093 = vmatpush1.bf16.msra.mxu1 %v7712_v42 }
 0x7d3   :  { %3053 = vmatprep.subr.bf16.mxu0 %v7716_v14  ;;  %3094 = vmatprep.subr.bf16.mxu1 %v7718_v15 }
 0x7d6   :  { %3054 = vmatpush1.bf16.msra.mxu0 %v7722_v16  ;;  %3095 = vmatpush1.bf16.msra.mxu1 %v7724_v17 }
 0x7d7   :  { %3055 = vmatprep.subr.bf16.mxu0 %v7728_v18  ;;  %3096 = vmatprep.subr.bf16.mxu1 %v7730_v46 }
 0x7da   :  { %3056 = vmatpush1.bf16.msra.mxu0 %v7734_v47  ;;  %3097 = vmatpush1.bf16.msra.mxu1 %v7736_v48 }
 0x7db   :  { %3057 = vmatprep.subr.bf16.mxu0 %v7740_v49  ;;  %3098 = vmatprep.subr.bf16.mxu1 %v7742_v51 }
 0x7de   :  { %3058 = vmatpush1.bf16.msra.mxu0 %v7746_v52  ;;  %3099 = vmatpush1.bf16.msra.mxu1 %v7748_v53 }
 0x7df   :  { %3059 = vmatprep.subr.bf16.mxu0 %v7752_v55  ;;  %3100 = vmatprep.subr.bf16.mxu1 %v7754_v34 }
 0x7e2   :  { %3060 = vmatpush1.bf16.msra.mxu0 %v7758_v56  ;;  %3101 = vmatpush1.bf16.msra.mxu1 %v7760_v57 }
 0x7e3   :  { %3391 = vmatprep.subr.bf16.mxu0 %v7670_v41  ;;  %3432 = vmatprep.subr.bf16.mxu1 %v7672_v28 }
 0x897   :  { %v2733_v58 = vpop.f32.mrb[28].mxu0  ;;  %v2774_v59 = vpop.f32.mrb[28].mxu1 }
 0x898   :  { %v2735_v60 = vpop.f32.mrb[29].mxu0  ;;  %v2776_v61 = vpop.f32.mrb[29].mxu1 }
 0x899   :  { %v2785_v62 = vcombine.low %v2733_v58, %v2735_v60  ;;  %v2786_v63 = vcombine.low %v2774_v59, %v2776_v61  ;;  %v2737_v27 = vpop.f32.mrb[30].mxu0  ;;  %v2778_v35 = vpop.f32.mrb[30].mxu1  ;;  %v2845_v59 = vstv %s2844_s28 }
 0x89a   :  { %v2738_v3 = vpop.f32.mrb[31].mxu0  ;;  %v2779_v4 = vpop.f32.mrb[31].mxu1  ;;  %vm2846_vm7 = vcmp.eq.s32.totalorder %v2845_v59, 1 }
 0x89b   :  { %v2793_v5 = vrot.slane %v2785_v62, %v7290_v44  ;;  %v2800_v6 = vrot.slane %v2786_v63, %v7290_v44 }
 0x89d   :  { %v2801_v7 = vcombine.low %v2793_v5, %v2800_v6 }
 0x89f   :  { %v2808_v9 = vrot.slane %v2801_v7, %v7290_v44 }
 0x8a1   :  { %v2810_v10 = vadd.f32 %v2808_v9, %v2505_v8 }
 0x8a3   :  { %v6090_v11 = vmul.f32 -1.442695, %v2810_v10  ;;  %v2818_v12 = vrot.slane %v2810_v10, 1  ;;  %v2829_v33 = vrot.slane %v2810_v10, 3  ;;  %v2826_v20 = vrot.slane %v2810_v10, 2 }
 0x8a5   :  { %6750 = vpow2.f32 %v6090_v11  ;;  %v6091_v13 = vmul.f32 -1.442695, %v2818_v12  ;;  %v6092_v37 = vmul.f32 -1.442695, %v2829_v33 }
 0x8a7   :  { %6752 = vpow2.f32 %v6091_v13 }
 0x8a8   :  { %6754 = vpow2.f32 %v6092_v37 }
 0x8af   :  { %v6751_v19 = vpop.eup %6750 }
 0x8b0   :  { %v2814_v22 = vadd.f32 1.0, %v6751_v19 }
 0x8b1   :  { %v6753_v23 = vpop.eup %6752 }
 0x8b2   :  { %6756 = vrcp.f32 %v2814_v22  ;;  %v2823_v45 = vadd.f32 1.0, %v6753_v23  ;;  %v6755_v24 = vpop.eup %6754  ;;  %v2851_v23 = vld [vmem:[#allocation7 + $0x20] ss:$8 sm:$0xf] }
 0x8b3   :  { %6758 = vtanh.f32 %v2826_v20  ;;  %v2834_v61 = vadd.f32 1.0, %v6755_v24 }
 0x8b4   :  { %6760 = vrcp.f32 %v2823_v45 }
 0x8b5   :  { %6762 = vrcp.f32 %v2834_v61 }
 0x8bc   :  { %v6757_v1 = vpop.eup %6756 }
 0x8bd   :  { %v6759_v58 = vpop.eup %6758 }
 0x8be   :  { %v6761_v60 = vpop.eup %6760  ;;  %v2838_v63 = vmul.f32 %v6759_v58, %v6757_v1 }
 0x8bf   :  { %v2837_v62 = vmul.f32 %v6761_v60, %v7660_v43  ;;  %v6763_v3 = vpop.eup %6762 }
 0x8c1   :  { %v2839_v27 = vadd.f32 %v2838_v63, %v2837_v62 }
 0x8c3   :  { %6764 = vtanh.f32 %v2839_v27  ;;  %v7776_v35 = vsel %vm2846_vm7, %v2839_v27, %v7660_v43 }
 0x8cd   :  { %v6765_v4 = vpop.eup %6764 }
 0x8ce   :  { %v2841_v5 = vmul.f32 %v6765_v4, %v6763_v3 }
 0x8d0   :  { %v7779_v6 = vsel %vm2846_vm7, %v2841_v5, %v7663_v26 }
 0x8d1   :  { %2849 = vst [vmem:[#allocation4 + $0x7] sm:$0x1] %v7779_v6  ;;  %v2852_v7 = vpack.c.bf16 %v7779_v6, %v7779_v6 }
 0x8d3   :  { %3078 = vmatmul.mubr.bf16.vlgmr.msra.gmra.mrb[32].mxu0 %v2852_v7  ;;  %3119 = vmatmul.mubr.bf16.vlgmr.msra.gmra.mrb[32].mxu1 %v2852_v7 }
 0x8d4   :  { %3392 = vmatpush1.bf16.msra.mxu0 %v7674_v29  ;;  %3433 = vmatpush1.bf16.msra.mxu1 %v7676_v30 }
 0x8d5   :  { %3393 = vmatprep.subr.bf16.mxu0 %v7684_v32  ;;  %3434 = vmatprep.subr.bf16.mxu1 %v7688_v54 }
 0x8d6   :  { %3423 = vmatprep.mubr.bf16.mxu0 %v7051_v0  ;;  %3464 = vmatprep.mubr.bf16.mxu1 %v7051_v0 }
 0x8d8   :  { %3394 = vmatpush1.bf16.msra.mxu0 %v7682_v31  ;;  %3435 = vmatpush1.bf16.msra.mxu1 %v7686_v50 }
 0x8d9   :  { %3395 = vmatprep.subr.bf16.mxu0 %v7690_v36  ;;  %3436 = vmatprep.subr.bf16.mxu1 %v7693_v38 }
 0x8dc   :  { %3396 = vmatpush1.bf16.msra.mxu0 %v7698_v21  ;;  %3437 = vmatpush1.bf16.msra.mxu1 %v7700_v25 }
 0x8dd   :  { %3397 = vmatprep.subr.bf16.mxu0 %v7704_v39  ;;  %3438 = vmatprep.subr.bf16.mxu1 %v7706_v2 }
 0x8e0   :  { %3398 = vmatpush1.bf16.msra.mxu0 %v7710_v40  ;;  %3439 = vmatpush1.bf16.msra.mxu1 %v7712_v42 }
 0x8e1   :  { %3399 = vmatprep.subr.bf16.mxu0 %v7716_v14  ;;  %3440 = vmatprep.subr.bf16.mxu1 %v7718_v15 }
 0x8e4   :  { %3400 = vmatpush1.bf16.msra.mxu0 %v7722_v16  ;;  %3441 = vmatpush1.bf16.msra.mxu1 %v7724_v17 }
 0x8e5   :  { %3401 = vmatprep.subr.bf16.mxu0 %v7728_v18  ;;  %3442 = vmatprep.subr.bf16.mxu1 %v7730_v46 }
 0x8e8   :  { %3402 = vmatpush1.bf16.msra.mxu0 %v7734_v47  ;;  %3443 = vmatpush1.bf16.msra.mxu1 %v7736_v48 }
 0x8e9   :  { %3403 = vmatprep.subr.bf16.mxu0 %v7740_v49  ;;  %3444 = vmatprep.subr.bf16.mxu1 %v7742_v51 }
 0x8ec   :  { %3404 = vmatpush1.bf16.msra.mxu0 %v7746_v52  ;;  %3445 = vmatpush1.bf16.msra.mxu1 %v7748_v53 }
 0x8ed   :  { %3405 = vmatprep.subr.bf16.mxu0 %v7752_v55  ;;  %3446 = vmatprep.subr.bf16.mxu1 %v7754_v34 }
 0x8f0   :  { %3406 = vmatpush1.bf16.msra.mxu0 %v7758_v56  ;;  %3447 = vmatpush1.bf16.msra.mxu1 %v7760_v57 }
 0x8f1   :  { %3737 = vmatprep.subr.bf16.mxu0 %v7670_v41  ;;  %3778 = vmatprep.subr.bf16.mxu1 %v7672_v28 }
 0x9a6   :  { %v3079_v43 = vpop.f32.mrb[32].mxu0  ;;  %v3120_v26 = vpop.f32.mrb[32].mxu1 }
 0x9a7   :  { %v3081_v8 = vpop.f32.mrb[33].mxu0  ;;  %v3122_v9 = vpop.f32.mrb[33].mxu1 }
 0x9a8   :  { %v3131_v10 = vcombine.low %v3079_v43, %v3081_v8  ;;  %v3132_v11 = vcombine.low %v3120_v26, %v3122_v9  ;;  %v3083_v12 = vpop.f32.mrb[34].mxu0  ;;  %v3124_v13 = vpop.f32.mrb[34].mxu1  ;;  %v3191_v26 = vstv %s3190_s3 }
 0x9a9   :  { %v3084_v33 = vpop.f32.mrb[35].mxu0  ;;  %v3125_v37 = vpop.f32.mrb[35].mxu1  ;;  %vm3192_vm8 = vcmp.eq.s32.totalorder %v3191_v26, 1 }
 0x9aa   :  { %v3139_v19 = vrot.slane %v3131_v10, %v7290_v44  ;;  %v3146_v20 = vrot.slane %v3132_v11, %v7290_v44 }
 0x9ac   :  { %v3147_v22 = vcombine.low %v3139_v19, %v3146_v20 }
 0x9ae   :  { %v3154_v45 = vrot.slane %v3147_v22, %v7290_v44 }
 0x9b0   :  { %v3156_v24 = vadd.f32 %v3154_v45, %v2851_v23 }
 0x9b2   :  { %v6126_v1 = vmul.f32 -1.442695, %v3156_v24  ;;  %v3164_v58 = vrot.slane %v3156_v24, 1  ;;  %v3175_v60 = vrot.slane %v3156_v24, 3  ;;  %v3172_v63 = vrot.slane %v3156_v24, 2 }
 0x9b4   :  { %6766 = vpow2.f32 %v6126_v1  ;;  %v6127_v59 = vmul.f32 -1.442695, %v3164_v58  ;;  %v6128_v61 = vmul.f32 -1.442695, %v3175_v60 }
 0x9b6   :  { %6768 = vpow2.f32 %v6127_v59 }
 0x9b7   :  { %6770 = vpow2.f32 %v6128_v61 }
 0x9be   :  { %v6767_v62 = vpop.eup %6766 }
 0x9bf   :  { %v3160_v27 = vadd.f32 1.0, %v6767_v62 }
 0x9c0   :  { %v6769_v3 = vpop.eup %6768 }
 0x9c1   :  { %6772 = vrcp.f32 %v3160_v27  ;;  %v3169_v4 = vadd.f32 1.0, %v6769_v3  ;;  %v6771_v5 = vpop.eup %6770  ;;  %v3197_v3 = vld [vmem:[#allocation7 + $0x21] ss:$8 sm:$0xf] }
 0x9c2   :  { %6774 = vtanh.f32 %v3172_v63  ;;  %v3180_v9 = vadd.f32 1.0, %v6771_v5 }
 0x9c3   :  { %6776 = vrcp.f32 %v3169_v4 }
 0x9c4   :  { %6778 = vrcp.f32 %v3180_v9 }
 0x9cb   :  { %v6773_v7 = vpop.eup %6772 }
 0x9cc   :  { %v6775_v43 = vpop.eup %6774 }
 0x9cd   :  { %v6777_v8 = vpop.eup %6776  ;;  %v3184_v11 = vmul.f32 %v6775_v43, %v6773_v7 }
 0x9ce   :  { %v3183_v10 = vmul.f32 %v6777_v8, %v7776_v35  ;;  %v6779_v33 = vpop.eup %6778 }
 0x9d0   :  { %v3185_v12 = vadd.f32 %v3184_v11, %v3183_v10 }
 0x9d2   :  { %6780 = vtanh.f32 %v3185_v12  ;;  %v7826_v13 = vsel %vm3192_vm8, %v3185_v12, %v7776_v35 }
 0x9dc   :  { %v6781_v37 = vpop.eup %6780 }
 0x9dd   :  { %v3187_v19 = vmul.f32 %v6781_v37, %v6779_v33 }
 0x9df   :  { %v7829_v20 = vsel %vm3192_vm8, %v3187_v19, %v7779_v6 }
 0x9e0   :  { %3195 = vst [vmem:[#allocation4 + $0x8] sm:$0x1] %v7829_v20  ;;  %v3198_v22 = vpack.c.bf16 %v7829_v20, %v7829_v20 }
 0x9e2   :  { %3424 = vmatmul.mubr.bf16.vlgmr.msra.gmra.mrb[36].mxu0 %v3198_v22  ;;  %3465 = vmatmul.mubr.bf16.vlgmr.msra.gmra.mrb[36].mxu1 %v3198_v22  ;;  %v3537_v22 = vstv %s3536_s12 }
 0x9e3   :  { %3738 = vmatpush1.bf16.msra.mxu0 %v7674_v29  ;;  %3779 = vmatpush1.bf16.msra.mxu1 %v7676_v30  ;;  %vm3538_vm9 = vcmp.eq.s32.totalorder %v3537_v22, 1  ;;  %v7957_v22 = vld [vmem:[#allocation10 + $0x4c] ss:$16 sps:$4 sm:$0xff]  }
 0x9e4   :  { %3739 = vmatprep.subr.bf16.mxu0 %v7684_v32  ;;  %3780 = vmatprep.subr.bf16.mxu1 %v7688_v54 }
 0x9e5   :  { %3769 = vmatprep.mubr.bf16.mxu0 %v7051_v0  ;;  %3810 = vmatprep.mubr.bf16.mxu1 %v7051_v0 }
 0x9e7   :  { %3740 = vmatpush1.bf16.msra.mxu0 %v7682_v31  ;;  %3781 = vmatpush1.bf16.msra.mxu1 %v7686_v50 }
 0x9e8   :  { %3741 = vmatprep.subr.bf16.mxu0 %v7690_v36  ;;  %3782 = vmatprep.subr.bf16.mxu1 %v7693_v38 }
 0x9eb   :  { %3742 = vmatpush1.bf16.msra.mxu0 %v7698_v21  ;;  %3783 = vmatpush1.bf16.msra.mxu1 %v7700_v25 }
 0x9ec   :  { %3743 = vmatprep.subr.bf16.mxu0 %v7704_v39  ;;  %3784 = vmatprep.subr.bf16.mxu1 %v7706_v2 }
 0x9ef   :  { %3744 = vmatpush1.bf16.msra.mxu0 %v7710_v40  ;;  %3785 = vmatpush1.bf16.msra.mxu1 %v7712_v42 }
 0x9f0   :  { %3745 = vmatprep.subr.bf16.mxu0 %v7716_v14  ;;  %3786 = vmatprep.subr.bf16.mxu1 %v7718_v15 }
 0x9f3   :  { %3746 = vmatpush1.bf16.msra.mxu0 %v7722_v16  ;;  %3787 = vmatpush1.bf16.msra.mxu1 %v7724_v17 }
 0x9f4   :  { %3747 = vmatprep.subr.bf16.mxu0 %v7728_v18  ;;  %3788 = vmatprep.subr.bf16.mxu1 %v7730_v46 }
 0x9f7   :  { %3748 = vmatpush1.bf16.msra.mxu0 %v7734_v47  ;;  %3789 = vmatpush1.bf16.msra.mxu1 %v7736_v48 }
 0x9f8   :  { %3749 = vmatprep.subr.bf16.mxu0 %v7740_v49  ;;  %3790 = vmatprep.subr.bf16.mxu1 %v7742_v51 }
 0x9fb   :  { %3750 = vmatpush1.bf16.msra.mxu0 %v7746_v52  ;;  %3791 = vmatpush1.bf16.msra.mxu1 %v7748_v53 }
 0x9fc   :  { %3751 = vmatprep.subr.bf16.mxu0 %v7752_v55  ;;  %3792 = vmatprep.subr.bf16.mxu1 %v7754_v34 }
 0x9ff   :  { %3752 = vmatpush1.bf16.msra.mxu0 %v7758_v56  ;;  %3793 = vmatpush1.bf16.msra.mxu1 %v7760_v57 }
 0xa00   :  { %4083 = vmatprep.subr.bf16.mxu0 %v7670_v41  ;;  %4124 = vmatprep.subr.bf16.mxu1 %v7672_v28 }
 0xab5   :  { %v3425_v35 = vpop.f32.mrb[36].mxu0  ;;  %v3466_v6 = vpop.f32.mrb[36].mxu1 }
 0xab6   :  { %v3427_v23 = vpop.f32.mrb[37].mxu0  ;;  %v3468_v45 = vpop.f32.mrb[37].mxu1 }
 0xab7   :  { %v3477_v24 = vcombine.low %v3425_v35, %v3427_v23  ;;  %v3478_v1 = vcombine.low %v3466_v6, %v3468_v45  ;;  %v3429_v58 = vpop.f32.mrb[38].mxu0  ;;  %v3470_v59 = vpop.f32.mrb[38].mxu1 }
 0xab8   :  { %v3430_v60 = vpop.f32.mrb[39].mxu0  ;;  %v3471_v61 = vpop.f32.mrb[39].mxu1 }
 0xab9   :  { %v3485_v62 = vrot.slane %v3477_v24, %v7290_v44  ;;  %v3492_v63 = vrot.slane %v3478_v1, %v7290_v44 }
 0xabb   :  { %v3493_v27 = vcombine.low %v3485_v62, %v3492_v63 }
 0xabd   :  { %v3500_v41 = vrot.slane %v3493_v27, %v7290_v44 }
 0xabf   :  { %v3502_v4 = vadd.f32 %v3500_v41, %v3197_v3 }
 0xac1   :  { %v6162_v28 = vmul.f32 -1.442695, %v3502_v4  ;;  %v3510_v5 = vrot.slane %v3502_v4, 1  ;;  %v3521_v43 = vrot.slane %v3502_v4, 3  ;;  %v3518_v9 = vrot.slane %v3502_v4, 2 }
 0xac3   :  { %6782 = vpow2.f32 %v6162_v28  ;;  %v6163_v7 = vmul.f32 -1.442695, %v3510_v5  ;;  %v6164_v26 = vmul.f32 -1.442695, %v3521_v43 }
 0xac5   :  { %6784 = vpow2.f32 %v6163_v7 }
 0xac6   :  { %6786 = vpow2.f32 %v6164_v26  ;;  %v7934_v26 = vld [vmem:[#allocation10 + $0x4] ss:$16 sps:$4 sm:$0xff]  }
 0xacd   :  { %v6783_v8 = vpop.eup %6782 }
 0xace   :  { %v3506_v10 = vadd.f32 1.0, %v6783_v8  ;;  %v7936_v8 = vld [vmem:[#allocation10 + $0xc] ss:$16 sps:$4 sm:$0xff]  }
 0xacf   :  { %v6785_v11 = vpop.eup %6784 }
 0xad0   :  { %6788 = vrcp.f32 %v3506_v10  ;;  %v3515_v12 = vadd.f32 1.0, %v6785_v11  ;;  %v6787_v33 = vpop.eup %6786  ;;  %v7940_v10 = vld [vmem:[#allocation10 + $0x8] ss:$16 sps:$4 sm:$0xff]   ;;  %v7946_v11 = vld [vmem:[#allocation10 + $0x20] ss:$16 sps:$4 sm:$0xff]  }
 0xad1   :  { %6790 = vtanh.f32 %v3518_v9  ;;  %v3526_v6 = vadd.f32 1.0, %v6787_v33  ;;  %v7938_v9 = vld [vmem:[#allocation10] ss:$16 sps:$4 sm:$0xff]   ;;  %v7950_v33 = vld [vmem:[#allocation10 + $0x28] ss:$16 sps:$4 sm:$0xff]  }
 0xad2   :  { %6792 = vrcp.f32 %v3515_v12  ;;  %v7948_v12 = vld [vmem:[#allocation10 + $0x24] ss:$16 sps:$4 sm:$0xff]  }
 0xad3   :  { %6794 = vrcp.f32 %v3526_v6  ;;  %v7964_v6 = vld [vmem:[#allocation10 + $0x48] ss:$16 sps:$4 sm:$0xff]  }
 0xada   :  { %v6789_v37 = vpop.eup %6788 }
 0xadb   :  { %v6791_v19 = vpop.eup %6790 }
 0xadc   :  { %v6793_v35 = vpop.eup %6792  ;;  %v3530_v45 = vmul.f32 %v6791_v19, %v6789_v37  ;;  %v7952_v37 = vld [vmem:[#allocation10 + $0x2c] ss:$16 sps:$4 sm:$0xff]   ;;  %v7954_v19 = vld [vmem:[#allocation10 + $0x44] ss:$16 sps:$4 sm:$0xff]  }
 0xadd   :  { %v3529_v23 = vmul.f32 %v6793_v35, %v7826_v13  ;;  %v6795_v58 = vpop.eup %6794  ;;  %v7962_v35 = vld [vmem:[#allocation10 + $0x40] ss:$16 sps:$4 sm:$0xff]  }
 0xadf   :  { %v3531_v24 = vadd.f32 %v3530_v45, %v3529_v23  ;;  %v7968_v23 = vld [vmem:[#allocation10 + $0x64] ss:$16 sps:$4 sm:$0xff]   ;;  %v7970_v45 = vld [vmem:[#allocation10 + $0x6c] ss:$16 sps:$4 sm:$0xff]  }
 0xae1   :  { %6796 = vtanh.f32 %v3531_v24  ;;  %v7876_v1 = vsel %vm3538_vm9, %v3531_v24, %v7826_v13  ;;  %v7974_v24 = vld [vmem:[#allocation10 + $0x60] ss:$16 sps:$4 sm:$0xff]  }
 0xaeb   :  { %v6797_v59 = vpop.eup %6796 }
 0xaec   :  { %v3533_v60 = vmul.f32 %v6797_v59, %v6795_v58  ;;  %v7980_v58 = vld [vmem:[#allocation10 + $0x84] ss:$16 sps:$4 sm:$0xff]   ;;  %v7982_v59 = vld [vmem:[#allocation10 + $0x8c] ss:$16 sps:$4 sm:$0xff]  }
 0xaee   :  { %v7879_v61 = vsel %vm3538_vm9, %v3533_v60, %v7829_v20  ;;  %v7986_v60 = vld [vmem:[#allocation10 + $0x80] ss:$16 sps:$4 sm:$0xff]  }
 0xaef   :  { %3541 = vst [vmem:[#allocation4 + $0x9] sm:$0x1] %v7879_v61  ;;  %v3544_v62 = vpack.c.bf16 %v7879_v61, %v7879_v61 }
 0xaf1   :  { %3770 = vmatmul.mubr.bf16.vlgmr.msra.gmra.mrb[40].mxu0 %v3544_v62  ;;  %3811 = vmatmul.mubr.bf16.vlgmr.msra.gmra.mrb[40].mxu1 %v3544_v62  ;;  %v7992_v62 = vld [vmem:[#allocation10 + $0xa4] ss:$16 sps:$4 sm:$0xff]  }
 0xaf2   :  { %4084 = vmatpush1.bf16.msra.mxu0 %v7674_v29  ;;  %4125 = vmatpush1.bf16.msra.mxu1 %v7676_v30 }
 0xaf3   :  { %4085 = vmatprep.subr.bf16.mxu0 %v7684_v32  ;;  %4126 = vmatprep.subr.bf16.mxu1 %v7688_v54 }
 0xaf4   :  { %4115 = vmatprep.mubr.bf16.mxu0 %v7051_v0  ;;  %4156 = vmatprep.mubr.bf16.mxu1 %v7051_v0 }
 0xaf6   :  { %4086 = vmatpush1.bf16.msra.mxu0 %v7682_v31  ;;  %4127 = vmatpush1.bf16.msra.mxu1 %v7686_v50 }
 0xaf7   :  { %4087 = vmatprep.subr.bf16.mxu0 %v7690_v36  ;;  %4128 = vmatprep.subr.bf16.mxu1 %v7693_v38 }
 0xafa   :  { %4088 = vmatpush1.bf16.msra.mxu0 %v7698_v21  ;;  %4129 = vmatpush1.bf16.msra.mxu1 %v7700_v25 }
 0xafb   :  { %4089 = vmatprep.subr.bf16.mxu0 %v7704_v39  ;;  %4130 = vmatprep.subr.bf16.mxu1 %v7706_v2 }
 0xafe   :  { %4090 = vmatpush1.bf16.msra.mxu0 %v7710_v40  ;;  %4131 = vmatpush1.bf16.msra.mxu1 %v7712_v42  ;;  %v3543_v42 = vld [vmem:[#allocation7 + $0x22] ss:$8 sm:$0xf] }
 0xaff   :  { %4091 = vmatprep.subr.bf16.mxu0 %v7716_v14  ;;  %4132 = vmatprep.subr.bf16.mxu1 %v7718_v15 }
 0xb02   :  { %4092 = vmatpush1.bf16.msra.mxu0 %v7722_v16  ;;  %4133 = vmatpush1.bf16.msra.mxu1 %v7724_v17 }
 0xb03   :  { %4093 = vmatprep.subr.bf16.mxu0 %v7728_v18  ;;  %4134 = vmatprep.subr.bf16.mxu1 %v7730_v46 }
 0xb06   :  { %4094 = vmatpush1.bf16.msra.mxu0 %v7734_v47  ;;  %4135 = vmatpush1.bf16.msra.mxu1 %v7736_v48 }
 0xb07   :  { %4095 = vmatprep.subr.bf16.mxu0 %v7740_v49  ;;  %4136 = vmatprep.subr.bf16.mxu1 %v7742_v51 }
 0xb0a   :  { %4096 = vmatpush1.bf16.msra.mxu0 %v7746_v52  ;;  %4137 = vmatpush1.bf16.msra.mxu1 %v7748_v53 }
 0xb0b   :  { %4097 = vmatprep.subr.bf16.mxu0 %v7752_v55  ;;  %4138 = vmatprep.subr.bf16.mxu1 %v7754_v34 }
 0xb0e   :  { %4098 = vmatpush1.bf16.msra.mxu0 %v7758_v56  ;;  %4139 = vmatpush1.bf16.msra.mxu1 %v7760_v57  ;;  %v3883_v57 = vstv %s3882_s13 }
 0xb0f   :  { %vm3884_vm10 = vcmp.eq.s32.totalorder %v3883_v57, 1  ;;  %4429 = vmatprep.subr.bf16.mxu0 %v7934_v26  ;;  %4470 = vmatprep.subr.bf16.mxu1 %v7936_v8 }
 0xbc4   :  { %v3771_v29 = vpop.f32.mrb[40].mxu0  ;;  %v3812_v30 = vpop.f32.mrb[40].mxu1 }
 0xbc5   :  { %v3773_v31 = vpop.f32.mrb[41].mxu0  ;;  %v3814_v32 = vpop.f32.mrb[41].mxu1 }
 0xbc6   :  { %v3823_v50 = vcombine.low %v3771_v29, %v3773_v31  ;;  %v3824_v54 = vcombine.low %v3812_v30, %v3814_v32  ;;  %v3775_v36 = vpop.f32.mrb[42].mxu0  ;;  %v3816_v38 = vpop.f32.mrb[42].mxu1  ;;  %v7994_v29 = vld [vmem:[#allocation10 + $0xac] ss:$16 sps:$4 sm:$0xff]   ;;  %v7998_v30 = vld [vmem:[#allocation10 + $0xa0] ss:$16 sps:$4 sm:$0xff]  }
 0xbc7   :  { %v3776_v21 = vpop.f32.mrb[43].mxu0  ;;  %v3817_v25 = vpop.f32.mrb[43].mxu1  ;;  %v8000_v31 = vld [vmem:[#allocation10 + $0xa8] ss:$16 sps:$4 sm:$0xff]   ;;  %v8004_v32 = vld [vmem:[#allocation10 + $0xc4] ss:$16 sps:$4 sm:$0xff]  }
 0xbc8   :  { %v3831_v39 = vrot.slane %v3823_v50, %v7290_v44  ;;  %v3838_v2 = vrot.slane %v3824_v54, %v7290_v44  ;;  %v8006_v50 = vld [vmem:[#allocation10 + $0xcc] ss:$16 sps:$4 sm:$0xff]   ;;  %v8010_v54 = vld [vmem:[#allocation10 + $0xc0] ss:$16 sps:$4 sm:$0xff]   ;;  %v8012_v36 = vld [vmem:[#allocation10 + $0xc8] ss:$16 sps:$4 sm:$0xff]  }
 0xbc9   :  { %v8016_v38 = vld [vmem:[#allocation10 + $0xe4] ss:$16 sps:$4 sm:$0xff]   ;;  %v8018_v21 = vld [vmem:[#allocation10 + $0xec] ss:$16 sps:$4 sm:$0xff]   ;;  %v8022_v25 = vld [vmem:[#allocation10 + $0xe0] ss:$16 sps:$4 sm:$0xff]  }
 0xbca   :  { %v3839_v40 = vcombine.low %v3831_v39, %v3838_v2  ;;  %v8024_v39 = vld [vmem:[#allocation10 + $0xe8] ss:$16 sps:$4 sm:$0xff]  }
 0xbcc   :  { %v3846_v14 = vrot.slane %v3839_v40, %v7290_v44 }
 0xbce   :  { %v3848_v15 = vadd.f32 %v3846_v14, %v3543_v42 }
 0xbd0   :  { %v6198_v16 = vmul.f32 -1.442695, %v3848_v15  ;;  %v3856_v17 = vrot.slane %v3848_v15, 1  ;;  %v3867_v46 = vrot.slane %v3848_v15, 3  ;;  %v3864_v49 = vrot.slane %v3848_v15, 2 }
 0xbd2   :  { %6798 = vpow2.f32 %v6198_v16  ;;  %v6199_v18 = vmul.f32 -1.442695, %v3856_v17  ;;  %v6200_v47 = vmul.f32 -1.442695, %v3867_v46 }
 0xbd4   :  { %6800 = vpow2.f32 %v6199_v18 }
 0xbd5   :  { %6802 = vpow2.f32 %v6200_v47 }
 0xbdc   :  { %v6799_v48 = vpop.eup %6798 }
 0xbdd   :  { %v3852_v51 = vadd.f32 1.0, %v6799_v48 }
 0xbde   :  { %v6801_v52 = vpop.eup %6800 }
 0xbdf   :  { %6804 = vrcp.f32 %v3852_v51  ;;  %v3861_v53 = vadd.f32 1.0, %v6801_v52  ;;  %v6803_v55 = vpop.eup %6802  ;;  %v3889_v52 = vld [vmem:[#allocation7 + $0x23] ss:$8 sm:$0xf] }
 0xbe0   :  { %6806 = vtanh.f32 %v3864_v49  ;;  %v3872_v20 = vadd.f32 1.0, %v6803_v55 }
 0xbe1   :  { %6808 = vrcp.f32 %v3861_v53 }
 0xbe2   :  { %6810 = vrcp.f32 %v3872_v20 }
 0xbe9   :  { %v6805_v34 = vpop.eup %6804 }
 0xbea   :  { %v6807_v56 = vpop.eup %6806 }
 0xbeb   :  { %v6809_v13 = vpop.eup %6808  ;;  %v3876_v27 = vmul.f32 %v6807_v56, %v6805_v34 }
 0xbec   :  { %v3875_v63 = vmul.f32 %v6809_v13, %v7876_v1  ;;  %v6811_v4 = vpop.eup %6810 }
 0xbee   :  { %v3877_v3 = vadd.f32 %v3876_v27, %v3875_v63 }
 0xbf0   :  { %6812 = vtanh.f32 %v3877_v3  ;;  %v7924_v41 = vsel %vm3884_vm10, %v3877_v3, %v7876_v1  ;;  %v7976_v1 = vld [vmem:[#allocation10 + $0x68] ss:$16 sps:$4 sm:$0xff]  }
 0xbfa   :  { %v6813_v28 = vpop.eup %6812 }
 0xbfb   :  { %v3879_v5 = vmul.f32 %v6813_v28, %v6811_v4 }
 0xbfd   :  { %v7927_v7 = vsel %vm3884_vm10, %v3879_v5, %v7879_v61  ;;  %v7988_v61 = vld [vmem:[#allocation10 + $0x88] ss:$16 sps:$4 sm:$0xff]  }
 0xbfe   :  { %3887 = vst [vmem:[#allocation4 + $0xa] sm:$0x1] %v7927_v7  ;;  %v3890_v43 = vpack.c.bf16 %v7927_v7, %v7927_v7 }
 0xc00   :  { %4116 = vmatmul.mubr.bf16.vlgmr.msra.gmra.mrb[44].mxu0 %v3890_v43  ;;  %4157 = vmatmul.mubr.bf16.vlgmr.msra.gmra.mrb[44].mxu1 %v3890_v43 }
 0xc01   :  { %4461 = vmatprep.mubr.bf16.mxu0 %v7051_v0  ;;  %4502 = vmatprep.mubr.bf16.mxu1 %v7051_v0 }
 0xc02   :  { %4430 = vmatpush1.bf16.msra.mxu0 %v7938_v9  ;;  %4471 = vmatpush1.bf16.msra.mxu1 %v7940_v10 }
 0xc03   :  { %4431 = vmatprep.subr.bf16.mxu0 %v7948_v12  ;;  %4472 = vmatprep.subr.bf16.mxu1 %v7952_v37 }
 0xc06   :  { %4432 = vmatpush1.bf16.msra.mxu0 %v7946_v11  ;;  %4473 = vmatpush1.bf16.msra.mxu1 %v7950_v33 }
 0xc07   :  { %4433 = vmatprep.subr.bf16.mxu0 %v7954_v19  ;;  %4474 = vmatprep.subr.bf16.mxu1 %v7957_v22 }
 0xc0a   :  { %4434 = vmatpush1.bf16.msra.mxu0 %v7962_v35  ;;  %4475 = vmatpush1.bf16.msra.mxu1 %v7964_v6 }
 0xc0b   :  { %4435 = vmatprep.subr.bf16.mxu0 %v7968_v23  ;;  %4476 = vmatprep.subr.bf16.mxu1 %v7970_v45 }
 0xc0e   :  { %4436 = vmatpush1.bf16.msra.mxu0 %v7974_v24  ;;  %4477 = vmatpush1.bf16.msra.mxu1 %v7976_v1 }
 0xc0f   :  { %4437 = vmatprep.subr.bf16.mxu0 %v7980_v58  ;;  %4478 = vmatprep.subr.bf16.mxu1 %v7982_v59 }
 0xc12   :  { %4438 = vmatpush1.bf16.msra.mxu0 %v7986_v60  ;;  %4479 = vmatpush1.bf16.msra.mxu1 %v7988_v61 }
 0xc13   :  { %4439 = vmatprep.subr.bf16.mxu0 %v7992_v62  ;;  %4480 = vmatprep.subr.bf16.mxu1 %v7994_v29 }
 0xc16   :  { %4440 = vmatpush1.bf16.msra.mxu0 %v7998_v30  ;;  %4481 = vmatpush1.bf16.msra.mxu1 %v8000_v31 }
 0xc17   :  { %4441 = vmatprep.subr.bf16.mxu0 %v8004_v32  ;;  %4482 = vmatprep.subr.bf16.mxu1 %v8006_v50 }
 0xc1a   :  { %4442 = vmatpush1.bf16.msra.mxu0 %v8010_v54  ;;  %4483 = vmatpush1.bf16.msra.mxu1 %v8012_v36 }
 0xc1b   :  { %4443 = vmatprep.subr.bf16.mxu0 %v8016_v38  ;;  %4484 = vmatprep.subr.bf16.mxu1 %v8018_v21 }
 0xc1e   :  { %4444 = vmatpush1.bf16.msra.mxu0 %v8022_v25  ;;  %4485 = vmatpush1.bf16.msra.mxu1 %v8024_v39 }
 0xc1f   :  { %4775 = vmatprep.subr.bf16.mxu0 %v7934_v26  ;;  %4816 = vmatprep.subr.bf16.mxu1 %v7936_v8 }
 0xcd3   :  { %v4117_v2 = vpop.f32.mrb[44].mxu0  ;;  %v4158_v40 = vpop.f32.mrb[44].mxu1 }
 0xcd4   :  { %v4119_v42 = vpop.f32.mrb[45].mxu0  ;;  %v4160_v14 = vpop.f32.mrb[45].mxu1 }
 0xcd5   :  { %v4169_v15 = vcombine.low %v4117_v2, %v4119_v42  ;;  %v4170_v16 = vcombine.low %v4158_v40, %v4160_v14  ;;  %v4121_v17 = vpop.f32.mrb[46].mxu0  ;;  %v4162_v18 = vpop.f32.mrb[46].mxu1  ;;  %v4229_v40 = vstv %s4228_s16 }
 0xcd6   :  { %v4122_v46 = vpop.f32.mrb[47].mxu0  ;;  %v4163_v47 = vpop.f32.mrb[47].mxu1  ;;  %vm4230_vm11 = vcmp.eq.s32.totalorder %v4229_v40, 1 }
 0xcd7   :  { %v4177_v48 = vrot.slane %v4169_v15, %v7290_v44  ;;  %v4184_v49 = vrot.slane %v4170_v16, %v7290_v44 }
 0xcd9   :  { %v4185_v51 = vcombine.low %v4177_v48, %v4184_v49 }
 0xcdb   :  { %v4192_v53 = vrot.slane %v4185_v51, %v7290_v44 }
 0xcdd   :  { %v4194_v55 = vadd.f32 %v4192_v53, %v3889_v52 }
 0xcdf   :  { %v6234_v34 = vmul.f32 -1.442695, %v4194_v55  ;;  %v4202_v56 = vrot.slane %v4194_v55, 1  ;;  %v4213_v13 = vrot.slane %v4194_v55, 3  ;;  %v4210_v27 = vrot.slane %v4194_v55, 2 }
 0xce1   :  { %6814 = vpow2.f32 %v6234_v34  ;;  %v6235_v57 = vmul.f32 -1.442695, %v4202_v56  ;;  %v6236_v20 = vmul.f32 -1.442695, %v4213_v13 }
 0xce3   :  { %6816 = vpow2.f32 %v6235_v57 }
 0xce4   :  { %6818 = vpow2.f32 %v6236_v20 }
 0xceb   :  { %v6815_v63 = vpop.eup %6814 }
 0xcec   :  { %v4198_v3 = vadd.f32 1.0, %v6815_v63 }
 0xced   :  { %v6817_v4 = vpop.eup %6816 }
 0xcee   :  { %6820 = vrcp.f32 %v4198_v3  ;;  %v4207_v28 = vadd.f32 1.0, %v6817_v4  ;;  %v6819_v5 = vpop.eup %6818  ;;  %v4235_v4 = vld [vmem:[#allocation7 + $0x24] ss:$8 sm:$0xf] }
 0xcef   :  { %6822 = vtanh.f32 %v4210_v27  ;;  %v4218_v14 = vadd.f32 1.0, %v6819_v5 }
 0xcf0   :  { %6824 = vrcp.f32 %v4207_v28 }
 0xcf1   :  { %6826 = vrcp.f32 %v4218_v14 }
 0xcf8   :  { %v6821_v43 = vpop.eup %6820 }
 0xcf9   :  { %v6823_v2 = vpop.eup %6822 }
 0xcfa   :  { %v6825_v42 = vpop.eup %6824  ;;  %v4222_v16 = vmul.f32 %v6823_v2, %v6821_v43 }
 0xcfb   :  { %v4221_v15 = vmul.f32 %v6825_v42, %v7924_v41  ;;  %v6827_v46 = vpop.eup %6826 }
 0xcfd   :  { %v4223_v17 = vadd.f32 %v4222_v16, %v4221_v15 }
 0xcff   :  { %6828 = vtanh.f32 %v4223_v17  ;;  %v8040_v18 = vsel %vm4230_vm11, %v4223_v17, %v7924_v41 }
 0xd09   :  { %v6829_v47 = vpop.eup %6828 }
 0xd0a   :  { %v4225_v48 = vmul.f32 %v6829_v47, %v6827_v46 }
 0xd0c   :  { %v8043_v49 = vsel %vm4230_vm11, %v4225_v48, %v7927_v7 }
 0xd0d   :  { %4233 = vst [vmem:[#allocation4 + $0xb] sm:$0x1] %v8043_v49  ;;  %v4236_v51 = vpack.c.bf16 %v8043_v49, %v8043_v49 }
 0xd0f   :  { %4462 = vmatmul.mubr.bf16.vlgmr.msra.gmra.mrb[48].mxu0 %v4236_v51  ;;  %4503 = vmatmul.mubr.bf16.vlgmr.msra.gmra.mrb[48].mxu1 %v4236_v51 }
 0xd10   :  { %4776 = vmatpush1.bf16.msra.mxu0 %v7938_v9  ;;  %4817 = vmatpush1.bf16.msra.mxu1 %v7940_v10 }
 0xd11   :  { %4777 = vmatprep.subr.bf16.mxu0 %v7948_v12  ;;  %4818 = vmatprep.subr.bf16.mxu1 %v7952_v37 }
 0xd12   :  { %4807 = vmatprep.mubr.bf16.mxu0 %v7051_v0  ;;  %4848 = vmatprep.mubr.bf16.mxu1 %v7051_v0 }
 0xd14   :  { %4778 = vmatpush1.bf16.msra.mxu0 %v7946_v11  ;;  %4819 = vmatpush1.bf16.msra.mxu1 %v7950_v33 }
 0xd15   :  { %4779 = vmatprep.subr.bf16.mxu0 %v7954_v19  ;;  %4820 = vmatprep.subr.bf16.mxu1 %v7957_v22 }
 0xd18   :  { %4780 = vmatpush1.bf16.msra.mxu0 %v7962_v35  ;;  %4821 = vmatpush1.bf16.msra.mxu1 %v7964_v6 }
 0xd19   :  { %4781 = vmatprep.subr.bf16.mxu0 %v7968_v23  ;;  %4822 = vmatprep.subr.bf16.mxu1 %v7970_v45 }
 0xd1c   :  { %4782 = vmatpush1.bf16.msra.mxu0 %v7974_v24  ;;  %4823 = vmatpush1.bf16.msra.mxu1 %v7976_v1 }
 0xd1d   :  { %4783 = vmatprep.subr.bf16.mxu0 %v7980_v58  ;;  %4824 = vmatprep.subr.bf16.mxu1 %v7982_v59 }
 0xd20   :  { %4784 = vmatpush1.bf16.msra.mxu0 %v7986_v60  ;;  %4825 = vmatpush1.bf16.msra.mxu1 %v7988_v61 }
 0xd21   :  { %4785 = vmatprep.subr.bf16.mxu0 %v7992_v62  ;;  %4826 = vmatprep.subr.bf16.mxu1 %v7994_v29 }
 0xd24   :  { %4786 = vmatpush1.bf16.msra.mxu0 %v7998_v30  ;;  %4827 = vmatpush1.bf16.msra.mxu1 %v8000_v31 }
 0xd25   :  { %4787 = vmatprep.subr.bf16.mxu0 %v8004_v32  ;;  %4828 = vmatprep.subr.bf16.mxu1 %v8006_v50 }
 0xd28   :  { %4788 = vmatpush1.bf16.msra.mxu0 %v8010_v54  ;;  %4829 = vmatpush1.bf16.msra.mxu1 %v8012_v36 }
 0xd29   :  { %4789 = vmatprep.subr.bf16.mxu0 %v8016_v38  ;;  %4830 = vmatprep.subr.bf16.mxu1 %v8018_v21 }
 0xd2c   :  { %4790 = vmatpush1.bf16.msra.mxu0 %v8022_v25  ;;  %4831 = vmatpush1.bf16.msra.mxu1 %v8024_v39 }
 0xd2d   :  { %5121 = vmatprep.subr.bf16.mxu0 %v7934_v26  ;;  %5162 = vmatprep.subr.bf16.mxu1 %v7936_v8 }
 0xde2   :  { %v4463_v41 = vpop.f32.mrb[48].mxu0  ;;  %v4504_v7 = vpop.f32.mrb[48].mxu1 }
 0xde3   :  { %v4465_v52 = vpop.f32.mrb[49].mxu0  ;;  %v4506_v53 = vpop.f32.mrb[49].mxu1 }
 0xde4   :  { %v4515_v55 = vcombine.low %v4463_v41, %v4465_v52  ;;  %v4516_v34 = vcombine.low %v4504_v7, %v4506_v53  ;;  %v4467_v56 = vpop.f32.mrb[50].mxu0  ;;  %v4508_v57 = vpop.f32.mrb[50].mxu1  ;;  %v4575_v7 = vstv %s4574_s19 }
 0xde5   :  { %v4468_v13 = vpop.f32.mrb[51].mxu0  ;;  %v4509_v20 = vpop.f32.mrb[51].mxu1  ;;  %vm4576_vm12 = vcmp.eq.s32.totalorder %v4575_v7, 1 }
 0xde6   :  { %v4523_v63 = vrot.slane %v4515_v55, %v7290_v44  ;;  %v4530_v27 = vrot.slane %v4516_v34, %v7290_v44 }
 0xde8   :  { %v4531_v3 = vcombine.low %v4523_v63, %v4530_v27 }
 0xdea   :  { %v4538_v28 = vrot.slane %v4531_v3, %v7290_v44 }
 0xdec   :  { %v4540_v5 = vadd.f32 %v4538_v28, %v4235_v4 }
 0xdee   :  { %v6270_v43 = vmul.f32 -1.442695, %v4540_v5  ;;  %v4548_v2 = vrot.slane %v4540_v5, 1  ;;  %v4559_v42 = vrot.slane %v4540_v5, 3  ;;  %v4556_v16 = vrot.slane %v4540_v5, 2 }
 0xdf0   :  { %6830 = vpow2.f32 %v6270_v43  ;;  %v6271_v40 = vmul.f32 -1.442695, %v4548_v2  ;;  %v6272_v14 = vmul.f32 -1.442695, %v4559_v42 }
 0xdf2   :  { %6832 = vpow2.f32 %v6271_v40 }
 0xdf3   :  { %6834 = vpow2.f32 %v6272_v14 }
 0xdfa   :  { %v6831_v15 = vpop.eup %6830 }
 0xdfb   :  { %v4544_v17 = vadd.f32 1.0, %v6831_v15 }
 0xdfc   :  { %v6833_v46 = vpop.eup %6832 }
 0xdfd   :  { %6836 = vrcp.f32 %v4544_v17  ;;  %v4553_v47 = vadd.f32 1.0, %v6833_v46  ;;  %v6835_v48 = vpop.eup %6834  ;;  %v4581_v46 = vld [vmem:[#allocation7 + $0x25] ss:$8 sm:$0xf] }
 0xdfe   :  { %6838 = vtanh.f32 %v4556_v16  ;;  %v4564_v53 = vadd.f32 1.0, %v6835_v48 }
 0xdff   :  { %6840 = vrcp.f32 %v4553_v47 }
 0xe00   :  { %6842 = vrcp.f32 %v4564_v53 }
 0xe07   :  { %v6837_v51 = vpop.eup %6836 }
 0xe08   :  { %v6839_v41 = vpop.eup %6838 }
 0xe09   :  { %v6841_v52 = vpop.eup %6840  ;;  %v4568_v34 = vmul.f32 %v6839_v41, %v6837_v51 }
 0xe0a   :  { %v4567_v55 = vmul.f32 %v6841_v52, %v8040_v18  ;;  %v6843_v13 = vpop.eup %6842 }
 0xe0c   :  { %v4569_v56 = vadd.f32 %v4568_v34, %v4567_v55 }
 0xe0e   :  { %6844 = vtanh.f32 %v4569_v56  ;;  %v8090_v57 = vsel %vm4576_vm12, %v4569_v56, %v8040_v18 }
 0xe18   :  { %v6845_v20 = vpop.eup %6844 }
 0xe19   :  { %v4571_v63 = vmul.f32 %v6845_v20, %v6843_v13 }
 0xe1b   :  { %v8093_v27 = vsel %vm4576_vm12, %v4571_v63, %v8043_v49 }
 0xe1c   :  { %4579 = vst [vmem:[#allocation4 + $0xc] sm:$0x1] %v8093_v27  ;;  %v4582_v3 = vpack.c.bf16 %v8093_v27, %v8093_v27 }
 0xe1e   :  { %4808 = vmatmul.mubr.bf16.vlgmr.msra.gmra.mrb[52].mxu0 %v4582_v3  ;;  %4849 = vmatmul.mubr.bf16.vlgmr.msra.gmra.mrb[52].mxu1 %v4582_v3  ;;  %v4921_v3 = vstv %s4920_s22 }
 0xe1f   :  { %5122 = vmatpush1.bf16.msra.mxu0 %v7938_v9  ;;  %5163 = vmatpush1.bf16.msra.mxu1 %v7940_v10  ;;  %vm4922_vm13 = vcmp.eq.s32.totalorder %v4921_v3, 1 }
 0xe20   :  { %5123 = vmatprep.subr.bf16.mxu0 %v7948_v12  ;;  %5164 = vmatprep.subr.bf16.mxu1 %v7952_v37 }
 0xe21   :  { %5153 = vmatprep.mubr.bf16.mxu0 %v7051_v0  ;;  %5194 = vmatprep.mubr.bf16.mxu1 %v7051_v0 }
 0xe23   :  { %5124 = vmatpush1.bf16.msra.mxu0 %v7946_v11  ;;  %5165 = vmatpush1.bf16.msra.mxu1 %v7950_v33 }
 0xe24   :  { %5125 = vmatprep.subr.bf16.mxu0 %v7954_v19  ;;  %5166 = vmatprep.subr.bf16.mxu1 %v7957_v22 }
 0xe27   :  { %5126 = vmatpush1.bf16.msra.mxu0 %v7962_v35  ;;  %5167 = vmatpush1.bf16.msra.mxu1 %v7964_v6 }
 0xe28   :  { %5127 = vmatprep.subr.bf16.mxu0 %v7968_v23  ;;  %5168 = vmatprep.subr.bf16.mxu1 %v7970_v45 }
 0xe2b   :  { %5128 = vmatpush1.bf16.msra.mxu0 %v7974_v24  ;;  %5169 = vmatpush1.bf16.msra.mxu1 %v7976_v1 }
 0xe2c   :  { %5129 = vmatprep.subr.bf16.mxu0 %v7980_v58  ;;  %5170 = vmatprep.subr.bf16.mxu1 %v7982_v59 }
 0xe2f   :  { %5130 = vmatpush1.bf16.msra.mxu0 %v7986_v60  ;;  %5171 = vmatpush1.bf16.msra.mxu1 %v7988_v61 }
 0xe30   :  { %5131 = vmatprep.subr.bf16.mxu0 %v7992_v62  ;;  %5172 = vmatprep.subr.bf16.mxu1 %v7994_v29 }
 0xe33   :  { %5132 = vmatpush1.bf16.msra.mxu0 %v7998_v30  ;;  %5173 = vmatpush1.bf16.msra.mxu1 %v8000_v31 }
 0xe34   :  { %5133 = vmatprep.subr.bf16.mxu0 %v8004_v32  ;;  %5174 = vmatprep.subr.bf16.mxu1 %v8006_v50 }
 0xe37   :  { %5134 = vmatpush1.bf16.msra.mxu0 %v8010_v54  ;;  %5175 = vmatpush1.bf16.msra.mxu1 %v8012_v36 }
 0xe38   :  { %5135 = vmatprep.subr.bf16.mxu0 %v8016_v38  ;;  %5176 = vmatprep.subr.bf16.mxu1 %v8018_v21 }
 0xe3b   :  { %5136 = vmatpush1.bf16.msra.mxu0 %v8022_v25  ;;  %5177 = vmatpush1.bf16.msra.mxu1 %v8024_v39 }
 0xe3c   :  { %5467 = vmatprep.subr.bf16.mxu0 %v7934_v26  ;;  %5508 = vmatprep.subr.bf16.mxu1 %v7936_v8 }
 0xef1   :  { %v4809_v18 = vpop.f32.mrb[52].mxu0  ;;  %v4850_v49 = vpop.f32.mrb[52].mxu1 }
 0xef2   :  { %v4811_v4 = vpop.f32.mrb[53].mxu0  ;;  %v4852_v28 = vpop.f32.mrb[53].mxu1 }
 0xef3   :  { %v4861_v5 = vcombine.low %v4809_v18, %v4811_v4  ;;  %v4862_v43 = vcombine.low %v4850_v49, %v4852_v28  ;;  %v4813_v2 = vpop.f32.mrb[54].mxu0  ;;  %v4854_v40 = vpop.f32.mrb[54].mxu1 }
 0xef4   :  { %v4814_v42 = vpop.f32.mrb[55].mxu0  ;;  %v4855_v14 = vpop.f32.mrb[55].mxu1 }
 0xef5   :  { %v4869_v15 = vrot.slane %v4861_v5, %v7290_v44  ;;  %v4876_v16 = vrot.slane %v4862_v43, %v7290_v44 }
 0xef7   :  { %v4877_v17 = vcombine.low %v4869_v15, %v4876_v16 }
 0xef9   :  { %v4884_v26 = vrot.slane %v4877_v17, %v7290_v44 }
 0xefb   :  { %v4886_v47 = vadd.f32 %v4884_v26, %v4581_v46 }
 0xefd   :  { %v6306_v8 = vmul.f32 -1.442695, %v4886_v47  ;;  %v4894_v48 = vrot.slane %v4886_v47, 1  ;;  %v4905_v41 = vrot.slane %v4886_v47, 3  ;;  %v4902_v53 = vrot.slane %v4886_v47, 2 }
 0xeff   :  { %6846 = vpow2.f32 %v6306_v8  ;;  %v6307_v51 = vmul.f32 -1.442695, %v4894_v48  ;;  %v6308_v7 = vmul.f32 -1.442695, %v4905_v41  ;;  %v6630_v41 = vld [vmem:[#allocation12] sm:$0xff]  }
 0xf01   :  { %6848 = vpow2.f32 %v6307_v51 }
 0xf02   :  { %6850 = vpow2.f32 %v6308_v7  ;;  %v7053_v7 = vmov 0.0  }
 0xf09   :  { %v6847_v52 = vpop.eup %6846 }
 0xf0a   :  { %v4890_v55 = vadd.f32 1.0, %v6847_v52  ;;  %v6631_v52 = vld [vmem:[#allocation12 + $0x8] sm:$0xff]  }
 0xf0b   :  { %v6849_v34 = vpop.eup %6848 }
 0xf0c   :  { %6852 = vrcp.f32 %v4890_v55  ;;  %v4899_v56 = vadd.f32 1.0, %v6849_v34  ;;  %v6851_v13 = vpop.eup %6850  ;;  %v6633_v55 = vld [vmem:[#allocation12 + $0x18] sm:$0xff]   ;;  %v6634_v34 = vld [vmem:[#allocation12 + $0x20] sm:$0xff]  }
 0xf0d   :  { %6854 = vtanh.f32 %v4902_v53  ;;  %v4910_v49 = vadd.f32 1.0, %v6851_v13  ;;  %v6632_v53 = vld [vmem:[#allocation12 + $0x10] sm:$0xff]  }
 0xf0e   :  { %6856 = vrcp.f32 %v4899_v56  ;;  %v6635_v56 = vld [vmem:[#allocation12 + $0x28] sm:$0xff]   ;;  %v6636_v13 = vld [vmem:[#allocation12 + $0x30] sm:$0xff]  }
 0xf0f   :  { %6858 = vrcp.f32 %v4910_v49 }
 0xf16   :  { %v6853_v20 = vpop.eup %6852 }
 0xf17   :  { %v6855_v63 = vpop.eup %6854 }
 0xf18   :  { %v6857_v18 = vpop.eup %6856  ;;  %v4914_v28 = vmul.f32 %v6855_v63, %v6853_v20  ;;  %v6637_v20 = vld [vmem:[#allocation12 + $0x38] sm:$0xff]  }
 0xf19   :  { %v4913_v4 = vmul.f32 %v6857_v18, %v8090_v57  ;;  %v6859_v2 = vpop.eup %6858 }
 0xf1b   :  { %v4915_v5 = vadd.f32 %v4914_v28, %v4913_v4 }
 0xf1d   :  { %6860 = vtanh.f32 %v4915_v5  ;;  %v8140_v43 = vsel %vm4922_vm13, %v4915_v5, %v8090_v57 }
 0xf27   :  { %v6861_v40 = vpop.eup %6860 }
 0xf28   :  { %v4917_v42 = vmul.f32 %v6861_v40, %v6859_v2 }
 0xf2a   :  { %v8143_v14 = vsel %vm4922_vm13, %v4917_v42, %v8093_v27 }
 0xf2b   :  { %4925 = vst [vmem:[#allocation4 + $0xd] sm:$0x1] %v8143_v14  ;;  %v4928_v15 = vpack.c.bf16 %v8143_v14, %v8143_v14 }
 0xf2d   :  { %5154 = vmatmul.mubr.bf16.vlgmr.msra.gmra.mrb[56].mxu0 %v4928_v15  ;;  %5195 = vmatmul.mubr.bf16.vlgmr.msra.gmra.mrb[56].mxu1 %v4928_v15 }
 0xf2e   :  { %5468 = vmatpush1.bf16.msra.mxu0 %v7938_v9  ;;  %5509 = vmatpush1.bf16.msra.mxu1 %v7940_v10 }
 0xf2f   :  { %5469 = vmatprep.subr.bf16.mxu0 %v7948_v12  ;;  %5510 = vmatprep.subr.bf16.mxu1 %v7952_v37 }
 0xf30   :  { %5499 = vmatprep.mubr.bf16.mxu0 %v7051_v0  ;;  %5540 = vmatprep.mubr.bf16.mxu1 %v7051_v0 }
 0xf32   :  { %5470 = vmatpush1.bf16.msra.mxu0 %v7946_v11  ;;  %5511 = vmatpush1.bf16.msra.mxu1 %v7950_v33 }
 0xf33   :  { %5471 = vmatprep.subr.bf16.mxu0 %v7954_v19  ;;  %5512 = vmatprep.subr.bf16.mxu1 %v7957_v22 }
 0xf36   :  { %5472 = vmatpush1.bf16.msra.mxu0 %v7962_v35  ;;  %5513 = vmatpush1.bf16.msra.mxu1 %v7964_v6 }
 0xf37   :  { %5473 = vmatprep.subr.bf16.mxu0 %v7968_v23  ;;  %5514 = vmatprep.subr.bf16.mxu1 %v7970_v45 }
 0xf3a   :  { %5474 = vmatpush1.bf16.msra.mxu0 %v7974_v24  ;;  %5515 = vmatpush1.bf16.msra.mxu1 %v7976_v1  ;;  %v4927_v24 = vld [vmem:[#allocation7 + $0x26] ss:$8 sm:$0xf] }
 0xf3b   :  { %5475 = vmatprep.subr.bf16.mxu0 %v7980_v58  ;;  %5516 = vmatprep.subr.bf16.mxu1 %v7982_v59 }
 0xf3e   :  { %5476 = vmatpush1.bf16.msra.mxu0 %v7986_v60  ;;  %5517 = vmatpush1.bf16.msra.mxu1 %v7988_v61 }
 0xf3f   :  { %5477 = vmatprep.subr.bf16.mxu0 %v7992_v62  ;;  %5518 = vmatprep.subr.bf16.mxu1 %v7994_v29 }
 0xf42   :  { %5478 = vmatpush1.bf16.msra.mxu0 %v7998_v30  ;;  %5519 = vmatpush1.bf16.msra.mxu1 %v8000_v31 }
 0xf43   :  { %5479 = vmatprep.subr.bf16.mxu0 %v8004_v32  ;;  %5520 = vmatprep.subr.bf16.mxu1 %v8006_v50 }
 0xf46   :  { %5480 = vmatpush1.bf16.msra.mxu0 %v8010_v54  ;;  %5521 = vmatpush1.bf16.msra.mxu1 %v8012_v36 }
 0xf47   :  { %5481 = vmatprep.subr.bf16.mxu0 %v8016_v38  ;;  %5522 = vmatprep.subr.bf16.mxu1 %v8018_v21 }
 0xf4a   :  { %5482 = vmatpush1.bf16.msra.mxu0 %v8022_v25  ;;  %5523 = vmatpush1.bf16.msra.mxu1 %v8024_v39  ;;  %v5267_v25 = vstv %s5266_s1 }
 0xf4b   :  { %vm5268_vm14 = vcmp.eq.s32.totalorder %v5267_v25, 1  ;;  %6400 = vmatprep.subr.bf16.mxu0 %v7053_v7  ;;  %v6382_v25 = vld [vmem:[%s8260_s6] ss:$0 sm:$0xff]  ;;  %s7055_s6 = smov [#allocation14]  }
 0xf4c   :  { %s5779_s28 = sshll.u32 %s7055_s6, 4  ;;  %s5780_s28 = int_to_ptr.vmem [resolvable:$true] %s5779_s28 }
 0xf4d   :  { %s6968_s2 = scalar_lea.vmem %s5780_s28, 16  ;;  %s6972_s29 = scalar_lea.vmem %s5780_s28, 32 }
 0xf4e   :  { %p6969_p12 = scmp.ne.s32.totalorder %s5780_s28, %s6968_s2  ;;  %p6973_p13 = scmp.lt.s32.totalorder %s5780_s28, %s5780_s28 }
 0xf4f   :  { %p6974_p0 = scmp.lt.s32.totalorder %s6972_s29, %s6968_s2 }
 0xf51   :  { %p6975_p1 = por %p6974_p0, %p6973_p13 }
 0xf53   :  { %p6976_p2 = pnand %p6975_p1, %p6969_p12 }
0x1000   :  { %v5155_v0 = vpop.f32.mrb[56].mxu0  ;;  %v5196_v9 = vpop.f32.mrb[56].mxu1 }
0x1001   :  { %v5157_v10 = vpop.f32.mrb[57].mxu0  ;;  %v5198_v11 = vpop.f32.mrb[57].mxu1 }
0x1002   :  { %v5207_v12 = vcombine.low %v5155_v0, %v5157_v10  ;;  %v5208_v33 = vcombine.low %v5196_v9, %v5198_v11  ;;  %v5159_v37 = vpop.f32.mrb[58].mxu0  ;;  %v5200_v19 = vpop.f32.mrb[58].mxu1  ;;  %v5273_v0 = vld [vmem:[#allocation7 + $0x27] ss:$8 sm:$0xf] }
0x1003   :  { %v5160_v22 = vpop.f32.mrb[59].mxu0  ;;  %v5201_v35 = vpop.f32.mrb[59].mxu1 }
0x1004   :  { %v5215_v6 = vrot.slane %v5207_v12, %v7290_v44  ;;  %v5222_v23 = vrot.slane %v5208_v33, %v7290_v44 }
0x1006   :  { %v5223_v45 = vcombine.low %v5215_v6, %v5222_v23 }
0x1008   :  { %v5230_v1 = vrot.slane %v5223_v45, %v7290_v44 }
0x100a   :  { %v5232_v58 = vadd.f32 %v5230_v1, %v4927_v24 }
0x100c   :  { %v6342_v59 = vmul.f32 -1.442695, %v5232_v58  ;;  %v5240_v60 = vrot.slane %v5232_v58, 1  ;;  %v5251_v62 = vrot.slane %v5232_v58, 3  ;;  %v5248_v31 = vrot.slane %v5232_v58, 2 }
0x100d   :  { %v5613_v58 = vstv %s5612_s27 }
0x100e   :  { %6862 = vpow2.f32 %v6342_v59  ;;  %v6343_v61 = vmul.f32 -1.442695, %v5240_v60  ;;  %v6344_v29 = vmul.f32 -1.442695, %v5251_v62  ;;  %vm5614_vm0 = vcmp.eq.s32.totalorder %v5613_v58, 1 }
0x1010   :  { %6864 = vpow2.f32 %v6343_v61 }
0x1011   :  { %6866 = vpow2.f32 %v6344_v29 }
0x1018   :  { %v6863_v30 = vpop.eup %6862 }
0x1019   :  { %v5236_v32 = vadd.f32 1.0, %v6863_v30 }
0x101a   :  { %v6865_v50 = vpop.eup %6864 }
0x101b   :  { %6868 = vrcp.f32 %v5236_v32  ;;  %v5245_v54 = vadd.f32 1.0, %v6865_v50  ;;  %v6867_v36 = vpop.eup %6866 }
0x101c   :  { %6870 = vtanh.f32 %v5248_v31  ;;  %v5256_v57 = vadd.f32 1.0, %v6867_v36  ;;  %v5622_v36 = vld [vmem:[#allocation4] sm:$0xff] }
0x101d   :  { %6872 = vrcp.f32 %v5245_v54 }
0x101e   :  { %6874 = vrcp.f32 %v5256_v57 }
0x1025   :  { %v6869_v38 = vpop.eup %6868 }
0x1026   :  { %v6871_v21 = vpop.eup %6870 }
0x1027   :  { %v6873_v39 = vpop.eup %6872  ;;  %v5260_v16 = vmul.f32 %v6871_v21, %v6869_v38 }
0x1028   :  { %v5259_v27 = vmul.f32 %v6873_v39, %v8140_v43  ;;  %v6875_v26 = vpop.eup %6874 }
0x102a   :  { %v5261_v17 = vadd.f32 %v5260_v16, %v5259_v27 }
0x102c   :  { %6876 = vtanh.f32 %v5261_v17  ;;  %v8188_v46 = vsel %vm5268_vm14, %v5261_v17, %v8140_v43 }
0x1036   :  { %v6877_v47 = vpop.eup %6876 }
0x1037   :  { %v5263_v8 = vmul.f32 %v6877_v47, %v6875_v26 }
0x1039   :  { %v8191_v48 = vsel %vm5268_vm14, %v5263_v8, %v8143_v14 }
0x103a   :  { %5271 = vst [vmem:[#allocation4 + $0xe] sm:$0x1] %v8191_v48  ;;  %v5274_v51 = vpack.c.bf16 %v8191_v48, %v8191_v48 }
0x103c   :  { %5500 = vmatmul.mubr.bf16.vlgmr.msra.gmra.mrb[60].mxu0 %v5274_v51  ;;  %5541 = vmatmul.mubr.bf16.vlgmr.msra.gmra.mrb[60].mxu1 %v5274_v51 }
0x103d   :  { %6401 = vmatpush3.bf16.msra.mxu0 %v6630_v41  ;;  %6416 = vmatprep.mubr.msk.bf16.mxu0 %vm7054_vm15, %v7053_v7 }
0x103e   :  { %6402 = vmatprep.subr.bf16.mxu0 %v7053_v7 }
0x1041   :  { %6403 = vmatpush3.bf16.msra.mxu0 %v6631_v52 }
0x1042   :  { %6404 = vmatprep.subr.bf16.mxu0 %v7053_v7 }
0x1045   :  { %6405 = vmatpush3.bf16.msra.mxu0 %v6632_v53 }
0x1046   :  { %6406 = vmatprep.subr.bf16.mxu0 %v7053_v7 }
0x1049   :  { %6407 = vmatpush3.bf16.msra.mxu0 %v6633_v55 }
0x104a   :  { %6408 = vmatprep.subr.bf16.mxu0 %v7053_v7 }
0x104d   :  { %6409 = vmatpush3.bf16.msra.mxu0 %v6634_v34 }
0x104e   :  { %6410 = vmatprep.subr.bf16.mxu0 %v7053_v7 }
0x1051   :  { %6411 = vmatpush3.bf16.msra.mxu0 %v6635_v56 }
0x1052   :  { %6412 = vmatprep.subr.bf16.mxu0 %v7053_v7 }
0x1055   :  { %6413 = vmatpush3.bf16.msra.mxu0 %v6636_v13 }
0x1056   :  { %6414 = vmatprep.subr.bf16.mxu0 %v7053_v7 }
0x1059   :  { %6415 = vmatpush3.bf16.msra.mxu0 %v6637_v20 }
0x110f   :  { %v5501_v63 = vpop.f32.mrb[60].mxu0  ;;  %v5542_v3 = vpop.f32.mrb[60].mxu1 }
0x1110   :  { %v5503_v18 = vpop.f32.mrb[61].mxu0  ;;  %v5544_v49 = vpop.f32.mrb[61].mxu1 }
0x1111   :  { %v5553_v4 = vcombine.low %v5501_v63, %v5503_v18  ;;  %v5554_v28 = vcombine.low %v5542_v3, %v5544_v49  ;;  %v5505_v5 = vpop.f32.mrb[62].mxu0  ;;  %v5546_v43 = vpop.f32.mrb[62].mxu1 }
0x1112   :  { %v5506_v2 = vpop.f32.mrb[63].mxu0  ;;  %v5547_v40 = vpop.f32.mrb[63].mxu1 }
0x1113   :  { %v5561_v42 = vrot.slane %v5553_v4, %v7290_v44  ;;  %v5568_v14 = vrot.slane %v5554_v28, %v7290_v44 }
0x1115   :  { %v5569_v15 = vcombine.low %v5561_v42, %v5568_v14 }
0x1117   :  { %v5576_v9 = vrot.slane %v5569_v15, %v7290_v44 }
0x1119   :  { %v5578_v10 = vadd.f32 %v5576_v9, %v5273_v0 }
0x111b   :  { %v6378_v11 = vmul.f32 -1.442695, %v5578_v10  ;;  %v5586_v12 = vrot.slane %v5578_v10, 1  ;;  %v5597_v37 = vrot.slane %v5578_v10, 3  ;;  %v5594_v35 = vrot.slane %v5578_v10, 2 }
0x111d   :  { %6878 = vpow2.f32 %v6378_v11  ;;  %v6379_v33 = vmul.f32 -1.442695, %v5586_v12  ;;  %v6380_v19 = vmul.f32 -1.442695, %v5597_v37 }
0x111f   :  { %6880 = vpow2.f32 %v6379_v33 }
0x1120   :  { %6882 = vpow2.f32 %v6380_v19 }
0x1127   :  { %v6879_v22 = vpop.eup %6878 }
0x1128   :  { %v5582_v6 = vadd.f32 1.0, %v6879_v22 }
0x1129   :  { %v6881_v23 = vpop.eup %6880 }
0x112a   :  { %6884 = vrcp.f32 %v5582_v6  ;;  %v5591_v45 = vadd.f32 1.0, %v6881_v23  ;;  %v6883_v44 = vpop.eup %6882 }
0x112b   :  { %6886 = vtanh.f32 %v5594_v35  ;;  %v5602_v60 = vadd.f32 1.0, %v6883_v44 }
0x112c   :  { %6888 = vrcp.f32 %v5591_v45 }
0x112d   :  { %6890 = vrcp.f32 %v5602_v60 }
0x1134   :  { %v6885_v24 = vpop.eup %6884 }
0x1135   :  { %v6887_v1 = vpop.eup %6886 }
0x1136   :  { %v6889_v59 = vpop.eup %6888  ;;  %v5606_v62 = vmul.f32 %v6887_v1, %v6885_v24 }
0x1137   :  { %v5605_v61 = vmul.f32 %v6889_v59, %v8188_v46  ;;  %v6891_v31 = vpop.eup %6890 }
0x1139   :  { %v5607_v29 = vadd.f32 %v5606_v62, %v5605_v61 }
0x113b   :  { %6892 = vtanh.f32 %v5607_v29  ;;  %v5616_v30 = vsel %vm5614_vm0, %v5607_v29, %v8188_v46 }
0x113c   :  { %5619 = vst [vmem:[#allocation3] sm:$0x1] %v5616_v30  ;;  %5621 = vst [vmem:[#allocation16] sm:$0x1] %v5616_v30 }
0x1145   :  { %v6893_v32 = vpop.eup %6892 }
0x1146   :  { %v5609_v50 = vmul.f32 %v6893_v32, %v6891_v31 }
0x1148   :  { %v5615_v54 = vsel %vm5614_vm0, %v5609_v50, %v8191_v48 }
0x1149   :  { %5617 = vst [vmem:[#allocation4 + $0xf] sm:$0x1] %v5615_v54  ;;  %5618 = vst [vmem:[#allocation2] sm:$0x1] %v5615_v54 }
0x114a   :  { %5620 = vst [vmem:[#allocation14] sm:$0x1] %v5615_v54 }
0x1150   :  { %v5623_v38 = vld [vmem:[#allocation4 + $0x8] sm:$0xff] }
0x1151   :  { %v5624_v21 = vpack.c.bf16 %v5623_v38, %v5622_v36 }
0x1153   :  { %6417 = vmatmul.mubr.bf16.vlgmr.msra.gmra.mrb[64].mxu0 %v5624_v21 }
0x1226   :  { %v5730_v39 = vpop.f32.mrb[64].mxu0 }
0x1227   :  { %v8208_v57 = vadd.f32 %v6382_v25, %v5730_v39  ;;  %v6418_v27 = vpop.f32.mrb[65].mxu0 }
0x1228   :  { %v5733_v16 = vpop.f32.mrb[66].mxu0 }
0x1229   :  { %5737 = vmax.xlane.f32.xlu0 %v8208_v57  ;;  %v6419_v17 = vpop.f32.mrb[67].mxu0  ;;  %v8211_v46 = vadd.f32 %v6382_v25, %v5733_v16 }
0x122d   :  { %5739 = vmax.xlane.f32.xlu0 %v8211_v46 }
0x12b6   :  { %v5738_v26 = vpop.xlane.xlu0 %5737 }
0x12b7   :  { %v5741_v47 = vsub.f32 %v8208_v57, %v5738_v26 }
0x12b9   :  { %v5743_v8 = vmul.f32 1.442695, %v5741_v47 }
0x12ba   :  { %v5740_v48 = vpop.xlane.xlu0 %5739 }
0x12bb   :  { %v5742_v51 = vsub.f32 %v8211_v46, %v5740_v48  ;;  %6894 = vpow2.f32 %v5743_v8 }
0x12bd   :  { %v5745_v41 = vmul.f32 1.442695, %v5742_v51 }
0x12bf   :  { %6896 = vpow2.f32 %v5745_v41 }
0x12c5   :  { %v6895_v7 = vpop.eup %6894 }
0x12c6   :  { %5747 = vadd.xlane.f32.xlu1 %v6895_v7 }
0x12c9   :  { %v6897_v52 = vpop.eup %6896 }
0x12ca   :  { %5749 = vadd.xlane.f32.xlu1 %v6897_v52 }
0x12cb   :  { %6979 = shalt.err (!%p6976_p2)
}
0x12cc   :  { %s6980_s11 = scalar_lea.hbm %s8262_s8, 16 }
0x12cd   :  { %p6981_p3 = scmp.ne.s32.totalorder %s8262_s8, %s6980_s11  ;;  %p6984_p4 = scmp.lt.u32.totalorder %s6980_s11, %s8262_s8 }
0x12cf   :  { %p6986_p5 = pnand %p6984_p4, %p6981_p3 }
0x12d1   :  { %6989 = shalt.err (!%p6986_p5)
}
0x12d2   :  { %5782 = dma.vmem_to_hbm [thread:$0]  %s5780_s28, 16, %s8262_s8, [#allocation15]  }
0x12d3   :  { %s7056_s16 = smov [#allocation16]  }
0x12d4   :  { %s5789_s17 = sshll.u32 %s7056_s16, 4  ;;  %s5790_s17 = int_to_ptr.vmem [resolvable:$true] %s5789_s17 }
0x12d5   :  { %s6990_s18 = scalar_lea.vmem %s5790_s17, 16  ;;  %s6994_s19 = scalar_lea.vmem %s5790_s17, 32 }
0x12d6   :  { %p6991_p6 = scmp.ne.s32.totalorder %s5790_s17, %s6990_s18  ;;  %p6995_p7 = scmp.lt.s32.totalorder %s5790_s17, %s5790_s17 }
0x12d7   :  { %p6996_p8 = scmp.lt.s32.totalorder %s6994_s19, %s6990_s18 }
0x12d9   :  { %p6997_p9 = por %p6996_p8, %p6995_p7 }
0x12db   :  { %p6998_p10 = pnand %p6997_p9, %p6991_p6 }
0x12dd   :  { %7001 = shalt.err (!%p6998_p10)
}
0x12de   :  { %s7002_s22 = scalar_lea.hbm %s8263_s9, 16 }
0x12df   :  { %p7003_p11 = scmp.ne.s32.totalorder %s8263_s9, %s7002_s22  ;;  %p7006_p12 = scmp.lt.u32.totalorder %s7002_s22, %s8263_s9 }
0x12e1   :  { %p7008_p13 = pnand %p7006_p12, %p7003_p11 }
0x12e3   :  { %7011 = shalt.err (!%p7008_p13)
}
0x12e4   :  { %5792 = dma.vmem_to_hbm [thread:$0]  %s5790_s17, 16, %s8263_s9, [#allocation15]  }
0x12e5   :  { %s7057_s27 = smov [#allocation13]  }
0x12e6   :  { %s5766_s0 = sshll.u32 %s7057_s27, 4  ;;  %s5767_s0 = int_to_ptr.vmem [resolvable:$true] %s5766_s0 }
0x12e7   :  { %s7012_s9 = scalar_lea.vmem %s5767_s0, 256  ;;  %p7017_p1 = scmp.lt.s32.totalorder %s5767_s0, %s5767_s0 }
0x12e8   :  { %p7013_p0 = scmp.ne.s32.totalorder %s5767_s0, %s7012_s9  ;;  %p7018_p2 = scmp.lt.s32.totalorder %s7012_s9, %s7012_s9 }
0x12ea   :  { %p7019_p3 = por %p7018_p2, %p7017_p1 }
0x12ec   :  { %p7020_p4 = pnand %p7019_p3, %p7013_p0 }
0x1353   :  { %v5748_v53 = vpop.xlane.xlu1 %5747 }
0x1354   :  { %6898 = vlog2.f32 %v5748_v53 }
0x1357   :  { %v5750_v55 = vpop.xlane.xlu1 %5749 }
0x1358   :  { %6900 = vlog2.f32 %v5750_v55 }
0x135e   :  { %v6899_v34 = vpop.eup %6898 }
0x135f   :  { %v5752_v56 = vmul.f32 0.6931472, %v6899_v34 }
0x1361   :  { %v5755_v13 = vadd.f32 %v5752_v56, %v5738_v26 }
0x1362   :  { %v6901_v20 = vpop.eup %6900 }
0x1363   :  { %v5757_v63 = vsub.f32 %v8208_v57, %v5755_v13  ;;  %v5754_v3 = vmul.f32 0.6931472, %v6901_v20 }
0x1365   :  { %5759 = vst [vmem:[#allocation13] sm:$0xff] %v5757_v63  ;;  %v5756_v18 = vadd.f32 %v5754_v3, %v5740_v48 }
0x1367   :  { %v5758_v49 = vsub.f32 %v8211_v46, %v5756_v18 }
0x1369   :  { %5760 = vst [vmem:[#allocation13 + $0x8] sm:$0xff] %v5758_v49 }
0x136a   :  { %7023 = shalt.err (!%p7020_p4)
}
0x136b   :  { %s7024_s28 = scalar_lea.hbm %s8261_s7, 256 }
0x136c   :  { %p7025_p5 = scmp.ne.s32.totalorder %s8261_s7, %s7024_s28  ;;  %p7028_p6 = scmp.lt.u32.totalorder %s7024_s28, %s8261_s7 }
0x136e   :  { %p7030_p7 = pnand %p7028_p6, %p7025_p5 }
0x1370   :  { %7033 = shalt.err (!%p7030_p7)
}
0x1371   :  { %s7058_s11 = smov 128   ;;  %s7059_s12 = smov 8  }
0x1372   :  { %5772 = dma.vmem_to_hbm [thread:$0]  %s5767_s0, 256, %s8261_s7, [#allocation9], %s7058_s11, %s7058_s11, %s7059_s12  }
0x1373   :  { %7038 = dma.done.wait [#allocation9], 256  }
0x1374   :  { %7039 = vsyncadd [#allocation9], 4294967040 }
0x1375   :  { %7040 = dma.done.wait [#allocation15], 32  }
0x1376   :  { %7041 = vsyncadd [#allocation15], 4294967264 }
0x1377   :  { %5802 = vsyncpa [#allocation8], 1 }
0x1378   :  { %5803 = vsyncpa [#allocation11], 1 }
0x1379   :  { %5804 = vsyncpa [#allocation9], 1 }
0x137a   :  { %5805 = vsyncpa [#allocation15], 1 }

</bundles_post_ra>
